<compile_context>
chip_gen: v7x
topology: tpu7x:2x2x1
jax: 0.10.0
libtpu: 0.0.40
codegen_flags: <defaults>
</compile_context>

<pallas_src>
import functools

import jax
import jax.numpy as jnp
from jax.experimental import pallas as pl
from jax.experimental.pallas import tpu as pltpu


# ----------------------------------------------------------------------------
# Tiling helpers
# ----------------------------------------------------------------------------
def _round_up(x, m):
    return (x + m - 1) // m * m


def _mm_tiles(M, N, K):
    """Pick (tm, tn, tk) and padded (Mp, Np, Kp) for the tiled GEMM."""
    if M <= 256:
        tm = _round_up(M, 8)
        Mp = tm
    else:
        tm = 256
        Mp = _round_up(M, tm)
    Np = _round_up(N, 128)                       # lane-dense output
    tn = 256 if (Np % 256 == 0 and Np >= 256) else 128
    Kp = _round_up(K, 128)
    if Kp <= 2048:
        tk = Kp                                  # small K: single K step
    else:
        tk = next(t for t in (512, 256, 128) if Kp % t == 0)
    return tm, tn, tk, Mp, Np, Kp


def _ew_tiles(M, N):
    if M <= 512:
        tm = _round_up(M, 8)
        Mp = tm
    else:
        tm = 512
        Mp = _round_up(M, tm)
    Np = _round_up(N, 128)
    tn = Np if Np <= 512 else next(t for t in (512, 256, 128) if Np % t == 0)
    return tm, tn, Mp, Np


# ----------------------------------------------------------------------------
# Pallas kernels
# ----------------------------------------------------------------------------
def _mm_bias_act_kernel(a_ref, b_ref, bias_ref, o_ref, acc_ref, *, act):
    """Tiled GEMM with f32 accumulator; bias + activation fused at last K step."""
    @pl.when(pl.program_id(2) == 0)
    def _():
        acc_ref[...] = jnp.zeros_like(acc_ref)

    acc_ref[...] += jnp.dot(a_ref[...], b_ref[...],
                            preferred_element_type=jnp.float32)

    @pl.when(pl.program_id(2) == pl.num_programs(2) - 1)
    def _():
        out = acc_ref[...] + bias_ref[...]
        if act == "relu":
            out = jnp.maximum(out, 0.0)
        elif act == "sigmoid":
            out = jax.nn.sigmoid(out)
        o_ref[...] = out.astype(o_ref.dtype)


def matmul_bias_act(a, b, bias, act="none", out_dtype=jnp.float32):
    """out = act(a @ b + bias).  a:(M,K)  b:(K,N)  bias:(N,) -> (M,N)."""
    M, K = a.shape
    K2, N = b.shape
    assert K == K2
    tm, tn, tk, Mp, Np, Kp = _mm_tiles(M, N, K)

    ap = jnp.pad(a.astype(jnp.bfloat16), ((0, Mp - M), (0, Kp - K)))
    bp = jnp.pad(b.astype(jnp.bfloat16), ((0, Kp - K), (0, Np - N)))
    biasp = jnp.pad(bias.astype(jnp.float32), (0, Np - N)).reshape(1, Np)

    kernel = functools.partial(_mm_bias_act_kernel, act=act)
    out = pl.pallas_call(
        kernel,
        out_shape=jax.ShapeDtypeStruct((Mp, Np), out_dtype),
        grid=(Mp // tm, Np // tn, Kp // tk),
        in_specs=[
            pl.BlockSpec((tm, tk), lambda i, j, k: (i, k)),
            pl.BlockSpec((tk, tn), lambda i, j, k: (k, j)),
            pl.BlockSpec((1, tn), lambda i, j, k: (0, j)),
        ],
        out_specs=pl.BlockSpec((tm, tn), lambda i, j, k: (i, j)),
        scratch_shapes=[pltpu.VMEM((tm, tn), jnp.float32)],
        compiler_params=pltpu.CompilerParams(
            dimension_semantics=("parallel", "parallel", "arbitrary")),
    )(ap, bp, biasp)
    return out[:M, :N]


def _scale_shift_relu_kernel(x_ref, s_ref, t_ref, o_ref):
    o_ref[...] = jnp.maximum(x_ref[...] * s_ref[...] + t_ref[...],
                             0.0).astype(o_ref.dtype)


def scale_shift_relu(x, scale, shift, out_dtype=jnp.bfloat16):
    """out = relu(x * scale + shift), per-column scale/shift (BN pass 2)."""
    M, N = x.shape
    tm, tn, Mp, Np = _ew_tiles(M, N)
    xp = jnp.pad(x.astype(jnp.float32), ((0, Mp - M), (0, Np - N)))
    sp = jnp.pad(scale.astype(jnp.float32), (0, Np - N)).reshape(1, Np)
    tp = jnp.pad(shift.astype(jnp.float32), (0, Np - N)).reshape(1, Np)
    out = pl.pallas_call(
        _scale_shift_relu_kernel,
        out_shape=jax.ShapeDtypeStruct((Mp, Np), out_dtype),
        grid=(Mp // tm, Np // tn),
        in_specs=[
            pl.BlockSpec((tm, tn), lambda i, j: (i, j)),
            pl.BlockSpec((1, tn), lambda i, j: (0, j)),
            pl.BlockSpec((1, tn), lambda i, j: (0, j)),
        ],
        out_specs=pl.BlockSpec((tm, tn), lambda i, j: (i, j)),
        compiler_params=pltpu.CompilerParams(
            dimension_semantics=("parallel", "parallel")),
    )(xp, sp, tp)
    return out[:M, :N]


# ----------------------------------------------------------------------------
# Glue: NHWC im2col, conv and conv-transpose wrappers
# ----------------------------------------------------------------------------
def im2col_nhwc(x, K, stride, pad):
    """x:(N,H,W,C) -> ((N*OH*OW, K*K*C), (N,OH,OW)); feature order (kh, kw, c)."""
    N, H, W, C = x.shape
    if pad > 0:
        x = jnp.pad(x, ((0, 0), (pad, pad), (pad, pad), (0, 0)))
    OH = (H + 2 * pad - K) // stride + 1
    OW = (W + 2 * pad - K) // stride + 1
    cols = []
    for kh in range(K):
        for kw in range(K):
            cols.append(x[:, kh:kh + stride * (OH - 1) + 1:stride,
                          kw:kw + stride * (OW - 1) + 1:stride, :])
    p = jnp.stack(cols, axis=3)                    # (N, OH, OW, K*K, C)
    return p.reshape(N * OH * OW, K * K * C), (N, OH, OW)


def conv2d_relu(x, w, b, stride=2, pad=2):
    """nn.Conv2d(C->OC, 5, stride=2, padding=2) + ReLU, NHWC in/out."""
    OC, IC, K, _ = w.shape
    a, (N, OH, OW) = im2col_nhwc(x, K, stride, pad)
    wm = jnp.transpose(w, (2, 3, 1, 0)).reshape(K * K * IC, OC)
    out = matmul_bias_act(a, wm, b, act="relu", out_dtype=jnp.bfloat16)
    return out.reshape(N, OH, OW, OC)


def _convT_prep(x, w):
    """ConvTranspose2d(k=3, s=2, p=1, output_padding=1) as a stride-1 conv over
    the zero-dilated, (1,2)-padded NHWC input with flipped/transposed weights."""
    N, H, W, C = x.shape
    IC, OC, K, _ = w.shape                          # PyTorch: (in, out, K, K)
    assert C == IC and K == 3
    xd = jnp.zeros((N, 2 * H - 1, 2 * W - 1, C), x.dtype).at[:, ::2, ::2, :].set(x)
    xp = jnp.pad(xd, ((0, 0), (1, 2), (1, 2), (0, 0)))   # (K-1-p, K-1-p+out_pad)
    a, (N2, OH, OW) = im2col_nhwc(xp, K, stride=1, pad=0)
    wm = jnp.flip(w, (2, 3)).transpose(2, 3, 0, 1).reshape(K * K * IC, OC)
    return a, wm, (N2, OH, OW, OC)


def convT_bn_relu(x, w, b, gamma, beta):
    """ConvTranspose + training-mode BatchNorm2d + ReLU (two-pass BN)."""
    a, wm, (N, OH, OW, OC) = _convT_prep(x, w)
    y = matmul_bias_act(a, wm, b, act="none", out_dtype=jnp.float32)   # (M, OC)
    # Per-channel batch statistics over the full N*OH*OW extent (biased var,
    # eps=1e-5, matching PyTorch training-mode BN normalization).
    mean = jnp.mean(y, axis=0)
    var = jnp.mean(jnp.square(y - mean), axis=0)
    scale = gamma * jax.lax.rsqrt(var + 1e-5)
    shift = beta - mean * scale
    out = scale_shift_relu(y, scale, shift, out_dtype=jnp.bfloat16)
    return out.reshape(N, OH, OW, OC)


def convT_sigmoid(x, w, b):
    a, wm, (N, OH, OW, OC) = _convT_prep(x, w)
    out = matmul_bias_act(a, wm, b, act="sigmoid", out_dtype=jnp.float32)
    return out.reshape(N, OH, OW, OC)


# ----------------------------------------------------------------------------
# Parameter init (deterministic, shapes per CVAE1.__init__)
# ----------------------------------------------------------------------------
def init_params(key, nz, imSize, fSize):
    inSize = imSize // 2 ** 4
    flat = fSize * 8 * inSize * inSize
    keys = iter(jax.random.split(key, 32))

    def rnd(shape, scale=0.05):
        return jax.random.normal(next(keys), shape, jnp.float32) * scale

    p = {}
    # encoder convs: Conv2d weight (OC, IC, 5, 5)
    p["enc1_w"], p["enc1_b"] = rnd((fSize, 3, 5, 5)), rnd((fSize,))
    p["enc2_w"], p["enc2_b"] = rnd((fSize * 2, fSize, 5, 5)), rnd((fSize * 2,))
    p["enc3_w"], p["enc3_b"] = rnd((fSize * 4, fSize * 2, 5, 5)), rnd((fSize * 4,))
    p["enc4_w"], p["enc4_b"] = rnd((fSize * 8, fSize * 4, 5, 5)), rnd((fSize * 8,))
    # linears: Linear weight (out, in)
    p["encMu_w"], p["encMu_b"] = rnd((nz, flat)), rnd((nz,))
    p["encLogVar_w"], p["encLogVar_b"] = rnd((nz, flat)), rnd((nz,))
    p["encY_w"], p["encY_b"] = rnd((1, flat)), rnd((1,))
    p["dec1_w"], p["dec1_b"] = rnd((flat, nz + 1)), rnd((flat,))
    # decoder conv-transposes: ConvTranspose2d weight (IC, OC, 3, 3)
    p["dec2_w"], p["dec2_b"] = rnd((fSize * 8, fSize * 4, 3, 3)), rnd((fSize * 4,))
    p["dec3_w"], p["dec3_b"] = rnd((fSize * 4, fSize * 2, 3, 3)), rnd((fSize * 2,))
    p["dec4_w"], p["dec4_b"] = rnd((fSize * 2, fSize, 3, 3)), rnd((fSize,))
    p["dec5_w"], p["dec5_b"] = rnd((fSize, 3, 3, 3)), rnd((3,))
    # batch-norm affine params (PyTorch default init: weight=1, bias=0)
    p["dec2b_g"], p["dec2b_b"] = jnp.ones((fSize * 4,)), jnp.zeros((fSize * 4,))
    p["dec3b_g"], p["dec3b_b"] = jnp.ones((fSize * 2,)), jnp.zeros((fSize * 2,))
    p["dec4b_g"], p["dec4b_b"] = jnp.ones((fSize,)), jnp.zeros((fSize,))
    return p


# ----------------------------------------------------------------------------
# CVAE1 forward (NHWC internally, NCHW at the PyTorch interface)
# ----------------------------------------------------------------------------
def cvae1_forward(params, x, eps_key, *, nz, fSize, inSize):
    N = x.shape[0]
    xh = jnp.transpose(x, (0, 2, 3, 1))             # NCHW -> NHWC (once)

    # --- encode ---
    h = conv2d_relu(xh, params["enc1_w"], params["enc1_b"])
    h = conv2d_relu(h, params["enc2_w"], params["enc2_b"])
    h = conv2d_relu(h, params["enc3_w"], params["enc3_b"])
    h = conv2d_relu(h, params["enc4_w"], params["enc4_b"])
    # PyTorch .view(N, -1) flattens in NCHW order (tiny transpose).
    hf = jnp.transpose(h, (0, 3, 1, 2)).reshape(N, -1)

    # fused heads: [mu | log_var | y] in one lane-dense GEMM
    w_heads = jnp.concatenate([params["encMu_w"], params["encLogVar_w"],
                               params["encY_w"]], axis=0).T       # (flat, 2nz+1)
    b_heads = jnp.concatenate([params["encMu_b"], params["encLogVar_b"],
                               params["encY_b"]], axis=0)
    heads = matmul_bias_act(hf, w_heads, b_heads, act="none",
                            out_dtype=jnp.float32)
    mu = heads[:, :nz]
    log_var = heads[:, nz:2 * nz]
    y = jax.nn.sigmoid(heads[:, 2 * nz:2 * nz + 1])   # encY(x.detach()): same fwd

    # --- re_param ---  (tiny (N, nz) tensors; plain-JAX, fused under jit)
    eps = jax.random.normal(eps_key, (N, nz), jnp.float32)
    z = mu + jnp.exp(log_var / 2.0) * eps

    # --- decode ---
    zc = jnp.concatenate([y, z], axis=1)            # (N, nz+1), y first
    d = matmul_bias_act(zc, params["dec1_w"].T, params["dec1_b"],
                        act="relu", out_dtype=jnp.bfloat16)
    d = d.reshape(N, fSize * 8, inSize, inSize)     # PyTorch NCHW view
    d = jnp.transpose(d, (0, 2, 3, 1))              # -> NHWC (tiny)
    d = convT_bn_relu(d, params["dec2_w"], params["dec2_b"],
                      params["dec2b_g"], params["dec2b_b"])
    d = convT_bn_relu(d, params["dec3_w"], params["dec3_b"],
                      params["dec3b_g"], params["dec3b_b"])
    d = convT_bn_relu(d, params["dec4_w"], params["dec4_b"],
                      params["dec4b_g"], params["dec4b_b"])
    rec = convT_sigmoid(d, params["dec5_w"], params["dec5_b"])
    rec = jnp.transpose(rec, (0, 3, 1, 2))          # NHWC -> NCHW output
    return rec, mu, log_var, y


# ----------------------------------------------------------------------------
if __name__ == "__main__":
    nz, imSize, fSize = 8, 16, 8                    # small, imSize divisible by 16
    inSize = imSize // 2 ** 4

    key = jax.random.PRNGKey(0)
    pkey, xkey, ekey = jax.random.split(key, 3)
    params = init_params(pkey, nz, imSize, fSize)
    x = jax.random.uniform(xkey, (2, 3, imSize, imSize), jnp.float32)

    fwd = jax.jit(functools.partial(cvae1_forward, nz=nz, fSize=fSize,
                                    inSize=inSize))
    rec, mu, log_var, y = fwd(params, x, ekey)
    jax.block_until_ready((rec, mu, log_var, y))

    assert rec.shape == (2, 3, imSize, imSize)
    assert mu.shape == (2, nz)
    assert log_var.shape == (2, nz)
    assert y.shape == (2, 1)
    assert bool(jnp.all(jnp.isfinite(rec)))
    assert bool(jnp.all((rec >= 0.0) & (rec <= 1.0)))
    print("KERNEL_OK")
</pallas_src>

<mosaic_0001>
module attributes {stable_mosaic.version = 11 : i64} {
  func.func @_mm_bias_act_kernel(%arg0: i32, %arg1: i32, %arg2: i32, %arg3: memref<128x128xbf16, #tpu.memory_space<vmem>>, %arg4: memref<128x128xbf16, #tpu.memory_space<vmem>>, %arg5: memref<1x128xf32, #tpu.memory_space<vmem>>, %arg6: memref<128x128xbf16, #tpu.memory_space<vmem>>, %arg7: memref<128x128xf32, #tpu.memory_space<vmem>>) attributes {dimension_semantics = [#tpu.dimension_semantics<parallel>, #tpu.dimension_semantics<parallel>, #tpu.dimension_semantics<arbitrary>], iteration_bounds = array<i64: 1, 1, 1>, scalar_prefetch = 0 : i64, scratch_operands = 1 : i64, tpu.core_type = #tpu.core_type<tc>, window_params = [{transform_indices = @transform_0, window_bounds = array<i64: 128, 128>}, {transform_indices = @transform_1, window_bounds = array<i64: 128, 128>}, {transform_indices = @transform_2, window_bounds = array<i64: 1, 128>}, {transform_indices = @transform_3, window_bounds = array<i64: 128, 128>}]} {
    %c0_i32 = arith.constant 0 : i32
    %0 = arith.cmpi eq, %arg2, %c0_i32 : i32
    %1 = arith.extui %0 : i1 to i32
    %c0_i32_0 = arith.constant 0 : i32
    %2 = arith.cmpi ne, %1, %c0_i32_0 : i32
    scf.if %2 {
      %cst_10 = arith.constant 0.000000e+00 : f32
      %12 = vector.broadcast %cst_10 : f32 to vector<128x128xf32>
      %c0_11 = arith.constant 0 : index
      %c0_12 = arith.constant 0 : index
      %13 = vector.load %arg7[%c0_11, %c0_12] : memref<128x128xf32, #tpu.memory_space<vmem>>, vector<128x128xf32>
      tpu.vector_store %arg7[%c0_11, %c0_12], %12 {strides = array<i32>} : memref<128x128xf32, #tpu.memory_space<vmem>>, vector<128x128xf32>,
    } else {
    }
    %c0 = arith.constant 0 : index
    %c0_1 = arith.constant 0 : index
    %3 = vector.load %arg7[%c0, %c0_1] : memref<128x128xf32, #tpu.memory_space<vmem>>, vector<128x128xf32>
    %c0_2 = arith.constant 0 : index
    %c0_3 = arith.constant 0 : index
    %4 = vector.load %arg3[%c0_2, %c0_3] : memref<128x128xbf16, #tpu.memory_space<vmem>>, vector<128x128xbf16>
    %c0_4 = arith.constant 0 : index
    %c0_5 = arith.constant 0 : index
    %5 = vector.load %arg4[%c0_4, %c0_5] : memref<128x128xbf16, #tpu.memory_space<vmem>>, vector<128x128xbf16>
    %cst = arith.constant dense<0.000000e+00> : vector<128x128xf32>
    %6 = tpu.matmul %4, %5, %cst {dimension_numbers = #tpu.dot_dimension_numbers<[1], [0], [0], [1], [0, 0, 1, 1], [], []>} : vector<128x128xbf16>, vector<128x128xbf16>, vector<128x128xf32> -> vector<128x128xf32>
    %7 = arith.addf %3, %6 : vector<128x128xf32>
    %c0_6 = arith.constant 0 : index
    %c0_7 = arith.constant 0 : index
    %8 = vector.load %arg7[%c0_6, %c0_7] : memref<128x128xf32, #tpu.memory_space<vmem>>, vector<128x128xf32>
    tpu.vector_store %arg7[%c0_6, %c0_7], %7 {strides = array<i32>} : memref<128x128xf32, #tpu.memory_space<vmem>>, vector<128x128xf32>,
    %c0_i32_8 = arith.constant 0 : i32
    %9 = arith.cmpi eq, %arg2, %c0_i32_8 : i32
    %10 = arith.extui %9 : i1 to i32
    %c0_i32_9 = arith.constant 0 : i32
    %11 = arith.cmpi ne, %10, %c0_i32_9 : i32
    scf.if %11 {
      %c0_10 = arith.constant 0 : index
      %c0_11 = arith.constant 0 : index
      %12 = vector.load %arg7[%c0_10, %c0_11] : memref<128x128xf32, #tpu.memory_space<vmem>>, vector<128x128xf32>
      %c0_12 = arith.constant 0 : index
      %c0_13 = arith.constant 0 : index
      %13 = vector.load %arg5[%c0_12, %c0_13] : memref<1x128xf32, #tpu.memory_space<vmem>>, vector<1x128xf32>
      %14 = vector.broadcast %13 : vector<1x128xf32> to vector<128x128xf32>
      %15 = arith.addf %12, %14 : vector<128x128xf32>
      %cst_14 = arith.constant 0.000000e+00 : f32
      %16 = vector.broadcast %cst_14 : f32 to vector<128x128xf32>
      %17 = arith.maximumf %15, %16 : vector<128x128xf32>
      %18 = arith.truncf %17 : vector<128x128xf32> to vector<128x128xbf16>
      %c0_15 = arith.constant 0 : index
      %c0_16 = arith.constant 0 : index
      %19 = vector.load %arg6[%c0_15, %c0_16] : memref<128x128xbf16, #tpu.memory_space<vmem>>, vector<128x128xbf16>
      tpu.vector_store %arg6[%c0_15, %c0_16], %18 {strides = array<i32>} : memref<128x128xbf16, #tpu.memory_space<vmem>>, vector<128x128xbf16>,
    } else {
    }
    return
  }
  func.func @transform_0(%arg0: i32, %arg1: i32, %arg2: i32) -> (i32, i32) {
    %c0_i32 = arith.constant 0 : i32
    return %arg0, %arg2 : i32, i32
  }
  func.func @transform_1(%arg0: i32, %arg1: i32, %arg2: i32) -> (i32, i32) {
    %c0_i32 = arith.constant 0 : i32
    return %arg2, %arg1 : i32, i32
  }
  func.func @transform_2(%arg0: i32, %arg1: i32, %arg2: i32) -> (i32, i32) {
    %c0_i32 = arith.constant 0 : i32
    %c0_i32_0 = arith.constant 0 : i32
    return %c0_i32, %arg1 : i32, i32
  }
  func.func @transform_3(%arg0: i32, %arg1: i32, %arg2: i32) -> (i32, i32) {
    %c0_i32 = arith.constant 0 : i32
    return %arg0, %arg1 : i32, i32
  }
}

module attributes {stable_mosaic.version = 11 : i64} {
  func.func @_mm_bias_act_kernel(%arg0: i32, %arg1: i32, %arg2: i32, %arg3: memref<32x256xbf16, #tpu.memory_space<vmem>>, %arg4: memref<256x128xbf16, #tpu.memory_space<vmem>>, %arg5: memref<1x128xf32, #tpu.memory_space<vmem>>, %arg6: memref<32x128xbf16, #tpu.memory_space<vmem>>, %arg7: memref<32x128xf32, #tpu.memory_space<vmem>>) attributes {dimension_semantics = [#tpu.dimension_semantics<parallel>, #tpu.dimension_semantics<parallel>, #tpu.dimension_semantics<arbitrary>], iteration_bounds = array<i64: 1, 1, 1>, scalar_prefetch = 0 : i64, scratch_operands = 1 : i64, tpu.core_type = #tpu.core_type<tc>, window_params = [{transform_indices = @transform_0, window_bounds = array<i64: 32, 256>}, {transform_indices = @transform_1, window_bounds = array<i64: 256, 128>}, {transform_indices = @transform_2, window_bounds = array<i64: 1, 128>}, {transform_indices = @transform_3, window_bounds = array<i64: 32, 128>}]} {
    %c0_i32 = arith.constant 0 : i32
    %0 = arith.cmpi eq, %arg2, %c0_i32 : i32
    %1 = arith.extui %0 : i1 to i32
    %c0_i32_0 = arith.constant 0 : i32
    %2 = arith.cmpi ne, %1, %c0_i32_0 : i32
    scf.if %2 {
      %cst_10 = arith.constant 0.000000e+00 : f32
      %12 = vector.broadcast %cst_10 : f32 to vector<32x128xf32>
      %c0_11 = arith.constant 0 : index
      %c0_12 = arith.constant 0 : index
      %13 = vector.load %arg7[%c0_11, %c0_12] : memref<32x128xf32, #tpu.memory_space<vmem>>, vector<32x128xf32>
      tpu.vector_store %arg7[%c0_11, %c0_12], %12 {strides = array<i32>} : memref<32x128xf32, #tpu.memory_space<vmem>>, vector<32x128xf32>,
    } else {
    }
    %c0 = arith.constant 0 : index
    %c0_1 = arith.constant 0 : index
    %3 = vector.load %arg7[%c0, %c0_1] : memref<32x128xf32, #tpu.memory_space<vmem>>, vector<32x128xf32>
    %c0_2 = arith.constant 0 : index
    %c0_3 = arith.constant 0 : index
    %4 = vector.load %arg3[%c0_2, %c0_3] : memref<32x256xbf16, #tpu.memory_space<vmem>>, vector<32x256xbf16>
    %c0_4 = arith.constant 0 : index
    %c0_5 = arith.constant 0 : index
    %5 = vector.load %arg4[%c0_4, %c0_5] : memref<256x128xbf16, #tpu.memory_space<vmem>>, vector<256x128xbf16>
    %cst = arith.constant dense<0.000000e+00> : vector<32x128xf32>
    %6 = tpu.matmul %4, %5, %cst {dimension_numbers = #tpu.dot_dimension_numbers<[1], [0], [0], [1], [0, 0, 1, 1], [], []>} : vector<32x256xbf16>, vector<256x128xbf16>, vector<32x128xf32> -> vector<32x128xf32>
    %7 = arith.addf %3, %6 : vector<32x128xf32>
    %c0_6 = arith.constant 0 : index
    %c0_7 = arith.constant 0 : index
    %8 = vector.load %arg7[%c0_6, %c0_7] : memref<32x128xf32, #tpu.memory_space<vmem>>, vector<32x128xf32>
    tpu.vector_store %arg7[%c0_6, %c0_7], %7 {strides = array<i32>} : memref<32x128xf32, #tpu.memory_space<vmem>>, vector<32x128xf32>,
    %c0_i32_8 = arith.constant 0 : i32
    %9 = arith.cmpi eq, %arg2, %c0_i32_8 : i32
    %10 = arith.extui %9 : i1 to i32
    %c0_i32_9 = arith.constant 0 : i32
    %11 = arith.cmpi ne, %10, %c0_i32_9 : i32
    scf.if %11 {
      %c0_10 = arith.constant 0 : index
      %c0_11 = arith.constant 0 : index
      %12 = vector.load %arg7[%c0_10, %c0_11] : memref<32x128xf32, #tpu.memory_space<vmem>>, vector<32x128xf32>
      %c0_12 = arith.constant 0 : index
      %c0_13 = arith.constant 0 : index
      %13 = vector.load %arg5[%c0_12, %c0_13] : memref<1x128xf32, #tpu.memory_space<vmem>>, vector<1x128xf32>
      %14 = vector.broadcast %13 : vector<1x128xf32> to vector<32x128xf32>
      %15 = arith.addf %12, %14 : vector<32x128xf32>
      %cst_14 = arith.constant 0.000000e+00 : f32
      %16 = vector.broadcast %cst_14 : f32 to vector<32x128xf32>
      %17 = arith.maximumf %15, %16 : vector<32x128xf32>
      %18 = arith.truncf %17 : vector<32x128xf32> to vector<32x128xbf16>
      %c0_15 = arith.constant 0 : index
      %c0_16 = arith.constant 0 : index
      %19 = vector.load %arg6[%c0_15, %c0_16] : memref<32x128xbf16, #tpu.memory_space<vmem>>, vector<32x128xbf16>
      tpu.vector_store %arg6[%c0_15, %c0_16], %18 {strides = array<i32>} : memref<32x128xbf16, #tpu.memory_space<vmem>>, vector<32x128xbf16>,
    } else {
    }
    return
  }
  func.func @transform_0(%arg0: i32, %arg1: i32, %arg2: i32) -> (i32, i32) {
    %c0_i32 = arith.constant 0 : i32
    return %arg0, %arg2 : i32, i32
  }
  func.func @transform_1(%arg0: i32, %arg1: i32, %arg2: i32) -> (i32, i32) {
    %c0_i32 = arith.constant 0 : i32
    return %arg2, %arg1 : i32, i32
  }
  func.func @transform_2(%arg0: i32, %arg1: i32, %arg2: i32) -> (i32, i32) {
    %c0_i32 = arith.constant 0 : i32
    %c0_i32_0 = arith.constant 0 : i32
    return %c0_i32, %arg1 : i32, i32
  }
  func.func @transform_3(%arg0: i32, %arg1: i32, %arg2: i32) -> (i32, i32) {
    %c0_i32 = arith.constant 0 : i32
    return %arg0, %arg1 : i32, i32
  }
}

module attributes {stable_mosaic.version = 11 : i64} {
  func.func @_mm_bias_act_kernel(%arg0: i32, %arg1: i32, %arg2: i32, %arg3: memref<8x512xbf16, #tpu.memory_space<vmem>>, %arg4: memref<512x128xbf16, #tpu.memory_space<vmem>>, %arg5: memref<1x128xf32, #tpu.memory_space<vmem>>, %arg6: memref<8x128xbf16, #tpu.memory_space<vmem>>, %arg7: memref<8x128xf32, #tpu.memory_space<vmem>>) attributes {dimension_semantics = [#tpu.dimension_semantics<parallel>, #tpu.dimension_semantics<parallel>, #tpu.dimension_semantics<arbitrary>], iteration_bounds = array<i64: 1, 1, 1>, scalar_prefetch = 0 : i64, scratch_operands = 1 : i64, tpu.core_type = #tpu.core_type<tc>, window_params = [{transform_indices = @transform_0, window_bounds = array<i64: 8, 512>}, {transform_indices = @transform_1, window_bounds = array<i64: 512, 128>}, {transform_indices = @transform_2, window_bounds = array<i64: 1, 128>}, {transform_indices = @transform_3, window_bounds = array<i64: 8, 128>}]} {
    %c0_i32 = arith.constant 0 : i32
    %0 = arith.cmpi eq, %arg2, %c0_i32 : i32
    %1 = arith.extui %0 : i1 to i32
    %c0_i32_0 = arith.constant 0 : i32
    %2 = arith.cmpi ne, %1, %c0_i32_0 : i32
    scf.if %2 {
      %cst_10 = arith.constant 0.000000e+00 : f32
      %12 = vector.broadcast %cst_10 : f32 to vector<8x128xf32>
      %c0_11 = arith.constant 0 : index
      %c0_12 = arith.constant 0 : index
      %13 = vector.load %arg7[%c0_11, %c0_12] : memref<8x128xf32, #tpu.memory_space<vmem>>, vector<8x128xf32>
      tpu.vector_store %arg7[%c0_11, %c0_12], %12 {strides = array<i32>} : memref<8x128xf32, #tpu.memory_space<vmem>>, vector<8x128xf32>,
    } else {
    }
    %c0 = arith.constant 0 : index
    %c0_1 = arith.constant 0 : index
    %3 = vector.load %arg7[%c0, %c0_1] : memref<8x128xf32, #tpu.memory_space<vmem>>, vector<8x128xf32>
    %c0_2 = arith.constant 0 : index
    %c0_3 = arith.constant 0 : index
    %4 = vector.load %arg3[%c0_2, %c0_3] : memref<8x512xbf16, #tpu.memory_space<vmem>>, vector<8x512xbf16>
    %c0_4 = arith.constant 0 : index
    %c0_5 = arith.constant 0 : index
    %5 = vector.load %arg4[%c0_4, %c0_5] : memref<512x128xbf16, #tpu.memory_space<vmem>>, vector<512x128xbf16>
    %cst = arith.constant dense<0.000000e+00> : vector<8x128xf32>
    %6 = tpu.matmul %4, %5, %cst {dimension_numbers = #tpu.dot_dimension_numbers<[1], [0], [0], [1], [0, 0, 1, 1], [], []>} : vector<8x512xbf16>, vector<512x128xbf16>, vector<8x128xf32> -> vector<8x128xf32>
    %7 = arith.addf %3, %6 : vector<8x128xf32>
    %c0_6 = arith.constant 0 : index
    %c0_7 = arith.constant 0 : index
    %8 = vector.load %arg7[%c0_6, %c0_7] : memref<8x128xf32, #tpu.memory_space<vmem>>, vector<8x128xf32>
    tpu.vector_store %arg7[%c0_6, %c0_7], %7 {strides = array<i32>} : memref<8x128xf32, #tpu.memory_space<vmem>>, vector<8x128xf32>,
    %c0_i32_8 = arith.constant 0 : i32
    %9 = arith.cmpi eq, %arg2, %c0_i32_8 : i32
    %10 = arith.extui %9 : i1 to i32
    %c0_i32_9 = arith.constant 0 : i32
    %11 = arith.cmpi ne, %10, %c0_i32_9 : i32
    scf.if %11 {
      %c0_10 = arith.constant 0 : index
      %c0_11 = arith.constant 0 : index
      %12 = vector.load %arg7[%c0_10, %c0_11] : memref<8x128xf32, #tpu.memory_space<vmem>>, vector<8x128xf32>
      %c0_12 = arith.constant 0 : index
      %c0_13 = arith.constant 0 : index
      %13 = vector.load %arg5[%c0_12, %c0_13] : memref<1x128xf32, #tpu.memory_space<vmem>>, vector<1x128xf32>
      %14 = vector.broadcast %13 : vector<1x128xf32> to vector<8x128xf32>
      %15 = arith.addf %12, %14 : vector<8x128xf32>
      %cst_14 = arith.constant 0.000000e+00 : f32
      %16 = vector.broadcast %cst_14 : f32 to vector<8x128xf32>
      %17 = arith.maximumf %15, %16 : vector<8x128xf32>
      %18 = arith.truncf %17 : vector<8x128xf32> to vector<8x128xbf16>
      %c0_15 = arith.constant 0 : index
      %c0_16 = arith.constant 0 : index
      %19 = vector.load %arg6[%c0_15, %c0_16] : memref<8x128xbf16, #tpu.memory_space<vmem>>, vector<8x128xbf16>
      tpu.vector_store %arg6[%c0_15, %c0_16], %18 {strides = array<i32>} : memref<8x128xbf16, #tpu.memory_space<vmem>>, vector<8x128xbf16>,
    } else {
    }
    return
  }
  func.func @transform_0(%arg0: i32, %arg1: i32, %arg2: i32) -> (i32, i32) {
    %c0_i32 = arith.constant 0 : i32
    return %arg0, %arg2 : i32, i32
  }
  func.func @transform_1(%arg0: i32, %arg1: i32, %arg2: i32) -> (i32, i32) {
    %c0_i32 = arith.constant 0 : i32
    return %arg2, %arg1 : i32, i32
  }
  func.func @transform_2(%arg0: i32, %arg1: i32, %arg2: i32) -> (i32, i32) {
    %c0_i32 = arith.constant 0 : i32
    %c0_i32_0 = arith.constant 0 : i32
    return %c0_i32, %arg1 : i32, i32
  }
  func.func @transform_3(%arg0: i32, %arg1: i32, %arg2: i32) -> (i32, i32) {
    %c0_i32 = arith.constant 0 : i32
    return %arg0, %arg1 : i32, i32
  }
}

module attributes {stable_mosaic.version = 11 : i64} {
  func.func @_mm_bias_act_kernel(%arg0: i32, %arg1: i32, %arg2: i32, %arg3: memref<8x896xbf16, #tpu.memory_space<vmem>>, %arg4: memref<896x128xbf16, #tpu.memory_space<vmem>>, %arg5: memref<1x128xf32, #tpu.memory_space<vmem>>, %arg6: memref<8x128xbf16, #tpu.memory_space<vmem>>, %arg7: memref<8x128xf32, #tpu.memory_space<vmem>>) attributes {dimension_semantics = [#tpu.dimension_semantics<parallel>, #tpu.dimension_semantics<parallel>, #tpu.dimension_semantics<arbitrary>], iteration_bounds = array<i64: 1, 1, 1>, scalar_prefetch = 0 : i64, scratch_operands = 1 : i64, tpu.core_type = #tpu.core_type<tc>, window_params = [{transform_indices = @transform_0, window_bounds = array<i64: 8, 896>}, {transform_indices = @transform_1, window_bounds = array<i64: 896, 128>}, {transform_indices = @transform_2, window_bounds = array<i64: 1, 128>}, {transform_indices = @transform_3, window_bounds = array<i64: 8, 128>}]} {
    %c0_i32 = arith.constant 0 : i32
    %0 = arith.cmpi eq, %arg2, %c0_i32 : i32
    %1 = arith.extui %0 : i1 to i32
    %c0_i32_0 = arith.constant 0 : i32
    %2 = arith.cmpi ne, %1, %c0_i32_0 : i32
    scf.if %2 {
      %cst_10 = arith.constant 0.000000e+00 : f32
      %12 = vector.broadcast %cst_10 : f32 to vector<8x128xf32>
      %c0_11 = arith.constant 0 : index
      %c0_12 = arith.constant 0 : index
      %13 = vector.load %arg7[%c0_11, %c0_12] : memref<8x128xf32, #tpu.memory_space<vmem>>, vector<8x128xf32>
      tpu.vector_store %arg7[%c0_11, %c0_12], %12 {strides = array<i32>} : memref<8x128xf32, #tpu.memory_space<vmem>>, vector<8x128xf32>,
    } else {
    }
    %c0 = arith.constant 0 : index
    %c0_1 = arith.constant 0 : index
    %3 = vector.load %arg7[%c0, %c0_1] : memref<8x128xf32, #tpu.memory_space<vmem>>, vector<8x128xf32>
    %c0_2 = arith.constant 0 : index
    %c0_3 = arith.constant 0 : index
    %4 = vector.load %arg3[%c0_2, %c0_3] : memref<8x896xbf16, #tpu.memory_space<vmem>>, vector<8x896xbf16>
    %c0_4 = arith.constant 0 : index
    %c0_5 = arith.constant 0 : index
    %5 = vector.load %arg4[%c0_4, %c0_5] : memref<896x128xbf16, #tpu.memory_space<vmem>>, vector<896x128xbf16>
    %cst = arith.constant dense<0.000000e+00> : vector<8x128xf32>
    %6 = tpu.matmul %4, %5, %cst {dimension_numbers = #tpu.dot_dimension_numbers<[1], [0], [0], [1], [0, 0, 1, 1], [], []>} : vector<8x896xbf16>, vector<896x128xbf16>, vector<8x128xf32> -> vector<8x128xf32>
    %7 = arith.addf %3, %6 : vector<8x128xf32>
    %c0_6 = arith.constant 0 : index
    %c0_7 = arith.constant 0 : index
    %8 = vector.load %arg7[%c0_6, %c0_7] : memref<8x128xf32, #tpu.memory_space<vmem>>, vector<8x128xf32>
    tpu.vector_store %arg7[%c0_6, %c0_7], %7 {strides = array<i32>} : memref<8x128xf32, #tpu.memory_space<vmem>>, vector<8x128xf32>,
    %c0_i32_8 = arith.constant 0 : i32
    %9 = arith.cmpi eq, %arg2, %c0_i32_8 : i32
    %10 = arith.extui %9 : i1 to i32
    %c0_i32_9 = arith.constant 0 : i32
    %11 = arith.cmpi ne, %10, %c0_i32_9 : i32
    scf.if %11 {
      %c0_10 = arith.constant 0 : index
      %c0_11 = arith.constant 0 : index
      %12 = vector.load %arg7[%c0_10, %c0_11] : memref<8x128xf32, #tpu.memory_space<vmem>>, vector<8x128xf32>
      %c0_12 = arith.constant 0 : index
      %c0_13 = arith.constant 0 : index
      %13 = vector.load %arg5[%c0_12, %c0_13] : memref<1x128xf32, #tpu.memory_space<vmem>>, vector<1x128xf32>
      %14 = vector.broadcast %13 : vector<1x128xf32> to vector<8x128xf32>
      %15 = arith.addf %12, %14 : vector<8x128xf32>
      %cst_14 = arith.constant 0.000000e+00 : f32
      %16 = vector.broadcast %cst_14 : f32 to vector<8x128xf32>
      %17 = arith.maximumf %15, %16 : vector<8x128xf32>
      %18 = arith.truncf %17 : vector<8x128xf32> to vector<8x128xbf16>
      %c0_15 = arith.constant 0 : index
      %c0_16 = arith.constant 0 : index
      %19 = vector.load %arg6[%c0_15, %c0_16] : memref<8x128xbf16, #tpu.memory_space<vmem>>, vector<8x128xbf16>
      tpu.vector_store %arg6[%c0_15, %c0_16], %18 {strides = array<i32>} : memref<8x128xbf16, #tpu.memory_space<vmem>>, vector<8x128xbf16>,
    } else {
    }
    return
  }
  func.func @transform_0(%arg0: i32, %arg1: i32, %arg2: i32) -> (i32, i32) {
    %c0_i32 = arith.constant 0 : i32
    return %arg0, %arg2 : i32, i32
  }
  func.func @transform_1(%arg0: i32, %arg1: i32, %arg2: i32) -> (i32, i32) {
    %c0_i32 = arith.constant 0 : i32
    return %arg2, %arg1 : i32, i32
  }
  func.func @transform_2(%arg0: i32, %arg1: i32, %arg2: i32) -> (i32, i32) {
    %c0_i32 = arith.constant 0 : i32
    %c0_i32_0 = arith.constant 0 : i32
    return %c0_i32, %arg1 : i32, i32
  }
  func.func @transform_3(%arg0: i32, %arg1: i32, %arg2: i32) -> (i32, i32) {
    %c0_i32 = arith.constant 0 : i32
    return %arg0, %arg1 : i32, i32
  }
}

module attributes {stable_mosaic.version = 11 : i64} {
  func.func @_mm_bias_act_kernel(%arg0: i32, %arg1: i32, %arg2: i32, %arg3: memref<8x128xbf16, #tpu.memory_space<vmem>>, %arg4: memref<128x128xbf16, #tpu.memory_space<vmem>>, %arg5: memref<1x128xf32, #tpu.memory_space<vmem>>, %arg6: memref<8x128xf32, #tpu.memory_space<vmem>>, %arg7: memref<8x128xf32, #tpu.memory_space<vmem>>) attributes {dimension_semantics = [#tpu.dimension_semantics<parallel>, #tpu.dimension_semantics<parallel>, #tpu.dimension_semantics<arbitrary>], iteration_bounds = array<i64: 1, 1, 1>, scalar_prefetch = 0 : i64, scratch_operands = 1 : i64, tpu.core_type = #tpu.core_type<tc>, window_params = [{transform_indices = @transform_0, window_bounds = array<i64: 8, 128>}, {transform_indices = @transform_1, window_bounds = array<i64: 128, 128>}, {transform_indices = @transform_2, window_bounds = array<i64: 1, 128>}, {transform_indices = @transform_3, window_bounds = array<i64: 8, 128>}]} {
    %c0_i32 = arith.constant 0 : i32
    %0 = arith.cmpi eq, %arg2, %c0_i32 : i32
    %1 = arith.extui %0 : i1 to i32
    %c0_i32_0 = arith.constant 0 : i32
    %2 = arith.cmpi ne, %1, %c0_i32_0 : i32
    scf.if %2 {
      %cst_10 = arith.constant 0.000000e+00 : f32
      %12 = vector.broadcast %cst_10 : f32 to vector<8x128xf32>
      %c0_11 = arith.constant 0 : index
      %c0_12 = arith.constant 0 : index
      %13 = vector.load %arg7[%c0_11, %c0_12] : memref<8x128xf32, #tpu.memory_space<vmem>>, vector<8x128xf32>
      tpu.vector_store %arg7[%c0_11, %c0_12], %12 {strides = array<i32>} : memref<8x128xf32, #tpu.memory_space<vmem>>, vector<8x128xf32>,
    } else {
    }
    %c0 = arith.constant 0 : index
    %c0_1 = arith.constant 0 : index
    %3 = vector.load %arg7[%c0, %c0_1] : memref<8x128xf32, #tpu.memory_space<vmem>>, vector<8x128xf32>
    %c0_2 = arith.constant 0 : index
    %c0_3 = arith.constant 0 : index
    %4 = vector.load %arg3[%c0_2, %c0_3] : memref<8x128xbf16, #tpu.memory_space<vmem>>, vector<8x128xbf16>
    %c0_4 = arith.constant 0 : index
    %c0_5 = arith.constant 0 : index
    %5 = vector.load %arg4[%c0_4, %c0_5] : memref<128x128xbf16, #tpu.memory_space<vmem>>, vector<128x128xbf16>
    %cst = arith.constant dense<0.000000e+00> : vector<8x128xf32>
    %6 = tpu.matmul %4, %5, %cst {dimension_numbers = #tpu.dot_dimension_numbers<[1], [0], [0], [1], [0, 0, 1, 1], [], []>} : vector<8x128xbf16>, vector<128x128xbf16>, vector<8x128xf32> -> vector<8x128xf32>
    %7 = arith.addf %3, %6 : vector<8x128xf32>
    %c0_6 = arith.constant 0 : index
    %c0_7 = arith.constant 0 : index
    %8 = vector.load %arg7[%c0_6, %c0_7] : memref<8x128xf32, #tpu.memory_space<vmem>>, vector<8x128xf32>
    tpu.vector_store %arg7[%c0_6, %c0_7], %7 {strides = array<i32>} : memref<8x128xf32, #tpu.memory_space<vmem>>, vector<8x128xf32>,
    %c0_i32_8 = arith.constant 0 : i32
    %9 = arith.cmpi eq, %arg2, %c0_i32_8 : i32
    %10 = arith.extui %9 : i1 to i32
    %c0_i32_9 = arith.constant 0 : i32
    %11 = arith.cmpi ne, %10, %c0_i32_9 : i32
    scf.if %11 {
      %c0_10 = arith.constant 0 : index
      %c0_11 = arith.constant 0 : index
      %12 = vector.load %arg7[%c0_10, %c0_11] : memref<8x128xf32, #tpu.memory_space<vmem>>, vector<8x128xf32>
      %c0_12 = arith.constant 0 : index
      %c0_13 = arith.constant 0 : index
      %13 = vector.load %arg5[%c0_12, %c0_13] : memref<1x128xf32, #tpu.memory_space<vmem>>, vector<1x128xf32>
      %14 = vector.broadcast %13 : vector<1x128xf32> to vector<8x128xf32>
      %15 = arith.addf %12, %14 : vector<8x128xf32>
      %c0_14 = arith.constant 0 : index
      %c0_15 = arith.constant 0 : index
      %16 = vector.load %arg6[%c0_14, %c0_15] : memref<8x128xf32, #tpu.memory_space<vmem>>, vector<8x128xf32>
      tpu.vector_store %arg6[%c0_14, %c0_15], %15 {strides = array<i32>} : memref<8x128xf32, #tpu.memory_space<vmem>>, vector<8x128xf32>,
    } else {
    }
    return
  }
  func.func @transform_0(%arg0: i32, %arg1: i32, %arg2: i32) -> (i32, i32) {
    %c0_i32 = arith.constant 0 : i32
    return %arg0, %arg2 : i32, i32
  }
  func.func @transform_1(%arg0: i32, %arg1: i32, %arg2: i32) -> (i32, i32) {
    %c0_i32 = arith.constant 0 : i32
    return %arg2, %arg1 : i32, i32
  }
  func.func @transform_2(%arg0: i32, %arg1: i32, %arg2: i32) -> (i32, i32) {
    %c0_i32 = arith.constant 0 : i32
    %c0_i32_0 = arith.constant 0 : i32
    return %c0_i32, %arg1 : i32, i32
  }
  func.func @transform_3(%arg0: i32, %arg1: i32, %arg2: i32) -> (i32, i32) {
    %c0_i32 = arith.constant 0 : i32
    return %arg0, %arg1 : i32, i32
  }
}

module attributes {stable_mosaic.version = 11 : i64} {
  func.func @_mm_bias_act_kernel(%arg0: i32, %arg1: i32, %arg2: i32, %arg3: memref<8x128xbf16, #tpu.memory_space<vmem>>, %arg4: memref<128x128xbf16, #tpu.memory_space<vmem>>, %arg5: memref<1x128xf32, #tpu.memory_space<vmem>>, %arg6: memref<8x128xbf16, #tpu.memory_space<vmem>>, %arg7: memref<8x128xf32, #tpu.memory_space<vmem>>) attributes {dimension_semantics = [#tpu.dimension_semantics<parallel>, #tpu.dimension_semantics<parallel>, #tpu.dimension_semantics<arbitrary>], iteration_bounds = array<i64: 1, 1, 1>, scalar_prefetch = 0 : i64, scratch_operands = 1 : i64, tpu.core_type = #tpu.core_type<tc>, window_params = [{transform_indices = @transform_0, window_bounds = array<i64: 8, 128>}, {transform_indices = @transform_1, window_bounds = array<i64: 128, 128>}, {transform_indices = @transform_2, window_bounds = array<i64: 1, 128>}, {transform_indices = @transform_3, window_bounds = array<i64: 8, 128>}]} {
    %c0_i32 = arith.constant 0 : i32
    %0 = arith.cmpi eq, %arg2, %c0_i32 : i32
    %1 = arith.extui %0 : i1 to i32
    %c0_i32_0 = arith.constant 0 : i32
    %2 = arith.cmpi ne, %1, %c0_i32_0 : i32
    scf.if %2 {
      %cst_10 = arith.constant 0.000000e+00 : f32
      %12 = vector.broadcast %cst_10 : f32 to vector<8x128xf32>
      %c0_11 = arith.constant 0 : index
      %c0_12 = arith.constant 0 : index
      %13 = vector.load %arg7[%c0_11, %c0_12] : memref<8x128xf32, #tpu.memory_space<vmem>>, vector<8x128xf32>
      tpu.vector_store %arg7[%c0_11, %c0_12], %12 {strides = array<i32>} : memref<8x128xf32, #tpu.memory_space<vmem>>, vector<8x128xf32>,
    } else {
    }
    %c0 = arith.constant 0 : index
    %c0_1 = arith.constant 0 : index
    %3 = vector.load %arg7[%c0, %c0_1] : memref<8x128xf32, #tpu.memory_space<vmem>>, vector<8x128xf32>
    %c0_2 = arith.constant 0 : index
    %c0_3 = arith.constant 0 : index
    %4 = vector.load %arg3[%c0_2, %c0_3] : memref<8x128xbf16, #tpu.memory_space<vmem>>, vector<8x128xbf16>
    %c0_4 = arith.constant 0 : index
    %c0_5 = arith.constant 0 : index
    %5 = vector.load %arg4[%c0_4, %c0_5] : memref<128x128xbf16, #tpu.memory_space<vmem>>, vector<128x128xbf16>
    %cst = arith.constant dense<0.000000e+00> : vector<8x128xf32>
    %6 = tpu.matmul %4, %5, %cst {dimension_numbers = #tpu.dot_dimension_numbers<[1], [0], [0], [1], [0, 0, 1, 1], [], []>} : vector<8x128xbf16>, vector<128x128xbf16>, vector<8x128xf32> -> vector<8x128xf32>
    %7 = arith.addf %3, %6 : vector<8x128xf32>
    %c0_6 = arith.constant 0 : index
    %c0_7 = arith.constant 0 : index
    %8 = vector.load %arg7[%c0_6, %c0_7] : memref<8x128xf32, #tpu.memory_space<vmem>>, vector<8x128xf32>
    tpu.vector_store %arg7[%c0_6, %c0_7], %7 {strides = array<i32>} : memref<8x128xf32, #tpu.memory_space<vmem>>, vector<8x128xf32>,
    %c0_i32_8 = arith.constant 0 : i32
    %9 = arith.cmpi eq, %arg2, %c0_i32_8 : i32
    %10 = arith.extui %9 : i1 to i32
    %c0_i32_9 = arith.constant 0 : i32
    %11 = arith.cmpi ne, %10, %c0_i32_9 : i32
    scf.if %11 {
      %c0_10 = arith.constant 0 : index
      %c0_11 = arith.constant 0 : index
      %12 = vector.load %arg7[%c0_10, %c0_11] : memref<8x128xf32, #tpu.memory_space<vmem>>, vector<8x128xf32>
      %c0_12 = arith.constant 0 : index
      %c0_13 = arith.constant 0 : index
      %13 = vector.load %arg5[%c0_12, %c0_13] : memref<1x128xf32, #tpu.memory_space<vmem>>, vector<1x128xf32>
      %14 = vector.broadcast %13 : vector<1x128xf32> to vector<8x128xf32>
      %15 = arith.addf %12, %14 : vector<8x128xf32>
      %cst_14 = arith.constant 0.000000e+00 : f32
      %16 = vector.broadcast %cst_14 : f32 to vector<8x128xf32>
      %17 = arith.maximumf %15, %16 : vector<8x128xf32>
      %18 = arith.truncf %17 : vector<8x128xf32> to vector<8x128xbf16>
      %c0_15 = arith.constant 0 : index
      %c0_16 = arith.constant 0 : index
      %19 = vector.load %arg6[%c0_15, %c0_16] : memref<8x128xbf16, #tpu.memory_space<vmem>>, vector<8x128xbf16>
      tpu.vector_store %arg6[%c0_15, %c0_16], %18 {strides = array<i32>} : memref<8x128xbf16, #tpu.memory_space<vmem>>, vector<8x128xbf16>,
    } else {
    }
    return
  }
  func.func @transform_0(%arg0: i32, %arg1: i32, %arg2: i32) -> (i32, i32) {
    %c0_i32 = arith.constant 0 : i32
    return %arg0, %arg2 : i32, i32
  }
  func.func @transform_1(%arg0: i32, %arg1: i32, %arg2: i32) -> (i32, i32) {
    %c0_i32 = arith.constant 0 : i32
    return %arg2, %arg1 : i32, i32
  }
  func.func @transform_2(%arg0: i32, %arg1: i32, %arg2: i32) -> (i32, i32) {
    %c0_i32 = arith.constant 0 : i32
    %c0_i32_0 = arith.constant 0 : i32
    return %c0_i32, %arg1 : i32, i32
  }
  func.func @transform_3(%arg0: i32, %arg1: i32, %arg2: i32) -> (i32, i32) {
    %c0_i32 = arith.constant 0 : i32
    return %arg0, %arg1 : i32, i32
  }
}

module attributes {stable_mosaic.version = 11 : i64} {
  func.func @_mm_bias_act_kernel(%arg0: i32, %arg1: i32, %arg2: i32, %arg3: memref<8x640xbf16, #tpu.memory_space<vmem>>, %arg4: memref<640x128xbf16, #tpu.memory_space<vmem>>, %arg5: memref<1x128xf32, #tpu.memory_space<vmem>>, %arg6: memref<8x128xf32, #tpu.memory_space<vmem>>, %arg7: memref<8x128xf32, #tpu.memory_space<vmem>>) attributes {dimension_semantics = [#tpu.dimension_semantics<parallel>, #tpu.dimension_semantics<parallel>, #tpu.dimension_semantics<arbitrary>], iteration_bounds = array<i64: 1, 1, 1>, scalar_prefetch = 0 : i64, scratch_operands = 1 : i64, tpu.core_type = #tpu.core_type<tc>, window_params = [{transform_indices = @transform_0, window_bounds = array<i64: 8, 640>}, {transform_indices = @transform_1, window_bounds = array<i64: 640, 128>}, {transform_indices = @transform_2, window_bounds = array<i64: 1, 128>}, {transform_indices = @transform_3, window_bounds = array<i64: 8, 128>}]} {
    %c0_i32 = arith.constant 0 : i32
    %0 = arith.cmpi eq, %arg2, %c0_i32 : i32
    %1 = arith.extui %0 : i1 to i32
    %c0_i32_0 = arith.constant 0 : i32
    %2 = arith.cmpi ne, %1, %c0_i32_0 : i32
    scf.if %2 {
      %cst_10 = arith.constant 0.000000e+00 : f32
      %12 = vector.broadcast %cst_10 : f32 to vector<8x128xf32>
      %c0_11 = arith.constant 0 : index
      %c0_12 = arith.constant 0 : index
      %13 = vector.load %arg7[%c0_11, %c0_12] : memref<8x128xf32, #tpu.memory_space<vmem>>, vector<8x128xf32>
      tpu.vector_store %arg7[%c0_11, %c0_12], %12 {strides = array<i32>} : memref<8x128xf32, #tpu.memory_space<vmem>>, vector<8x128xf32>,
    } else {
    }
    %c0 = arith.constant 0 : index
    %c0_1 = arith.constant 0 : index
    %3 = vector.load %arg7[%c0, %c0_1] : memref<8x128xf32, #tpu.memory_space<vmem>>, vector<8x128xf32>
    %c0_2 = arith.constant 0 : index
    %c0_3 = arith.constant 0 : index
    %4 = vector.load %arg3[%c0_2, %c0_3] : memref<8x640xbf16, #tpu.memory_space<vmem>>, vector<8x640xbf16>
    %c0_4 = arith.constant 0 : index
    %c0_5 = arith.constant 0 : index
    %5 = vector.load %arg4[%c0_4, %c0_5] : memref<640x128xbf16, #tpu.memory_space<vmem>>, vector<640x128xbf16>
    %cst = arith.constant dense<0.000000e+00> : vector<8x128xf32>
    %6 = tpu.matmul %4, %5, %cst {dimension_numbers = #tpu.dot_dimension_numbers<[1], [0], [0], [1], [0, 0, 1, 1], [], []>} : vector<8x640xbf16>, vector<640x128xbf16>, vector<8x128xf32> -> vector<8x128xf32>
    %7 = arith.addf %3, %6 : vector<8x128xf32>
    %c0_6 = arith.constant 0 : index
    %c0_7 = arith.constant 0 : index
    %8 = vector.load %arg7[%c0_6, %c0_7] : memref<8x128xf32, #tpu.memory_space<vmem>>, vector<8x128xf32>
    tpu.vector_store %arg7[%c0_6, %c0_7], %7 {strides = array<i32>} : memref<8x128xf32, #tpu.memory_space<vmem>>, vector<8x128xf32>,
    %c0_i32_8 = arith.constant 0 : i32
    %9 = arith.cmpi eq, %arg2, %c0_i32_8 : i32
    %10 = arith.extui %9 : i1 to i32
    %c0_i32_9 = arith.constant 0 : i32
    %11 = arith.cmpi ne, %10, %c0_i32_9 : i32
    scf.if %11 {
      %c0_10 = arith.constant 0 : index
      %c0_11 = arith.constant 0 : index
      %12 = vector.load %arg7[%c0_10, %c0_11] : memref<8x128xf32, #tpu.memory_space<vmem>>, vector<8x128xf32>
      %c0_12 = arith.constant 0 : index
      %c0_13 = arith.constant 0 : index
      %13 = vector.load %arg5[%c0_12, %c0_13] : memref<1x128xf32, #tpu.memory_space<vmem>>, vector<1x128xf32>
      %14 = vector.broadcast %13 : vector<1x128xf32> to vector<8x128xf32>
      %15 = arith.addf %12, %14 : vector<8x128xf32>
      %c0_14 = arith.constant 0 : index
      %c0_15 = arith.constant 0 : index
      %16 = vector.load %arg6[%c0_14, %c0_15] : memref<8x128xf32, #tpu.memory_space<vmem>>, vector<8x128xf32>
      tpu.vector_store %arg6[%c0_14, %c0_15], %15 {strides = array<i32>} : memref<8x128xf32, #tpu.memory_space<vmem>>, vector<8x128xf32>,
    } else {
    }
    return
  }
  func.func @transform_0(%arg0: i32, %arg1: i32, %arg2: i32) -> (i32, i32) {
    %c0_i32 = arith.constant 0 : i32
    return %arg0, %arg2 : i32, i32
  }
  func.func @transform_1(%arg0: i32, %arg1: i32, %arg2: i32) -> (i32, i32) {
    %c0_i32 = arith.constant 0 : i32
    return %arg2, %arg1 : i32, i32
  }
  func.func @transform_2(%arg0: i32, %arg1: i32, %arg2: i32) -> (i32, i32) {
    %c0_i32 = arith.constant 0 : i32
    %c0_i32_0 = arith.constant 0 : i32
    return %c0_i32, %arg1 : i32, i32
  }
  func.func @transform_3(%arg0: i32, %arg1: i32, %arg2: i32) -> (i32, i32) {
    %c0_i32 = arith.constant 0 : i32
    return %arg0, %arg1 : i32, i32
  }
}

module attributes {stable_mosaic.version = 11 : i64} {
  func.func @_scale_shift_relu_kernel(%arg0: i32, %arg1: i32, %arg2: memref<8x128xf32, #tpu.memory_space<vmem>>, %arg3: memref<1x128xf32, #tpu.memory_space<vmem>>, %arg4: memref<1x128xf32, #tpu.memory_space<vmem>>, %arg5: memref<8x128xbf16, #tpu.memory_space<vmem>>) attributes {dimension_semantics = [#tpu.dimension_semantics<parallel>, #tpu.dimension_semantics<parallel>], iteration_bounds = array<i64: 1, 1>, scalar_prefetch = 0 : i64, scratch_operands = 0 : i64, tpu.core_type = #tpu.core_type<tc>, window_params = [{transform_indices = @transform_0, window_bounds = array<i64: 8, 128>}, {transform_indices = @transform_1, window_bounds = array<i64: 1, 128>}, {transform_indices = @transform_2, window_bounds = array<i64: 1, 128>}, {transform_indices = @transform_3, window_bounds = array<i64: 8, 128>}]} {
    %c0 = arith.constant 0 : index
    %c0_0 = arith.constant 0 : index
    %0 = vector.load %arg2[%c0, %c0_0] : memref<8x128xf32, #tpu.memory_space<vmem>>, vector<8x128xf32>
    %c0_1 = arith.constant 0 : index
    %c0_2 = arith.constant 0 : index
    %1 = vector.load %arg3[%c0_1, %c0_2] : memref<1x128xf32, #tpu.memory_space<vmem>>, vector<1x128xf32>
    %2 = vector.broadcast %1 : vector<1x128xf32> to vector<8x128xf32>
    %3 = arith.mulf %0, %2 : vector<8x128xf32>
    %c0_3 = arith.constant 0 : index
    %c0_4 = arith.constant 0 : index
    %4 = vector.load %arg4[%c0_3, %c0_4] : memref<1x128xf32, #tpu.memory_space<vmem>>, vector<1x128xf32>
    %5 = vector.broadcast %4 : vector<1x128xf32> to vector<8x128xf32>
    %6 = arith.addf %3, %5 : vector<8x128xf32>
    %cst = arith.constant 0.000000e+00 : f32
    %7 = vector.broadcast %cst : f32 to vector<8x128xf32>
    %8 = arith.maximumf %6, %7 : vector<8x128xf32>
    %9 = arith.truncf %8 : vector<8x128xf32> to vector<8x128xbf16>
    %c0_5 = arith.constant 0 : index
    %c0_6 = arith.constant 0 : index
    %10 = vector.load %arg5[%c0_5, %c0_6] : memref<8x128xbf16, #tpu.memory_space<vmem>>, vector<8x128xbf16>
    tpu.vector_store %arg5[%c0_5, %c0_6], %9 {strides = array<i32>} : memref<8x128xbf16, #tpu.memory_space<vmem>>, vector<8x128xbf16>,
    return
  }
  func.func @transform_0(%arg0: i32, %arg1: i32) -> (i32, i32) {
    %c0_i32 = arith.constant 0 : i32
    return %arg0, %arg1 : i32, i32
  }
  func.func @transform_1(%arg0: i32, %arg1: i32) -> (i32, i32) {
    %c0_i32 = arith.constant 0 : i32
    %c0_i32_0 = arith.constant 0 : i32
    return %c0_i32, %arg1 : i32, i32
  }
  func.func @transform_2(%arg0: i32, %arg1: i32) -> (i32, i32) {
    %c0_i32 = arith.constant 0 : i32
    %c0_i32_0 = arith.constant 0 : i32
    return %c0_i32, %arg1 : i32, i32
  }
  func.func @transform_3(%arg0: i32, %arg1: i32) -> (i32, i32) {
    %c0_i32 = arith.constant 0 : i32
    return %arg0, %arg1 : i32, i32
  }
}

module attributes {stable_mosaic.version = 11 : i64} {
  func.func @_mm_bias_act_kernel(%arg0: i32, %arg1: i32, %arg2: i32, %arg3: memref<32x384xbf16, #tpu.memory_space<vmem>>, %arg4: memref<384x128xbf16, #tpu.memory_space<vmem>>, %arg5: memref<1x128xf32, #tpu.memory_space<vmem>>, %arg6: memref<32x128xf32, #tpu.memory_space<vmem>>, %arg7: memref<32x128xf32, #tpu.memory_space<vmem>>) attributes {dimension_semantics = [#tpu.dimension_semantics<parallel>, #tpu.dimension_semantics<parallel>, #tpu.dimension_semantics<arbitrary>], iteration_bounds = array<i64: 1, 1, 1>, scalar_prefetch = 0 : i64, scratch_operands = 1 : i64, tpu.core_type = #tpu.core_type<tc>, window_params = [{transform_indices = @transform_0, window_bounds = array<i64: 32, 384>}, {transform_indices = @transform_1, window_bounds = array<i64: 384, 128>}, {transform_indices = @transform_2, window_bounds = array<i64: 1, 128>}, {transform_indices = @transform_3, window_bounds = array<i64: 32, 128>}]} {
    %c0_i32 = arith.constant 0 : i32
    %0 = arith.cmpi eq, %arg2, %c0_i32 : i32
    %1 = arith.extui %0 : i1 to i32
    %c0_i32_0 = arith.constant 0 : i32
    %2 = arith.cmpi ne, %1, %c0_i32_0 : i32
    scf.if %2 {
      %cst_10 = arith.constant 0.000000e+00 : f32
      %12 = vector.broadcast %cst_10 : f32 to vector<32x128xf32>
      %c0_11 = arith.constant 0 : index
      %c0_12 = arith.constant 0 : index
      %13 = vector.load %arg7[%c0_11, %c0_12] : memref<32x128xf32, #tpu.memory_space<vmem>>, vector<32x128xf32>
      tpu.vector_store %arg7[%c0_11, %c0_12], %12 {strides = array<i32>} : memref<32x128xf32, #tpu.memory_space<vmem>>, vector<32x128xf32>,
    } else {
    }
    %c0 = arith.constant 0 : index
    %c0_1 = arith.constant 0 : index
    %3 = vector.load %arg7[%c0, %c0_1] : memref<32x128xf32, #tpu.memory_space<vmem>>, vector<32x128xf32>
    %c0_2 = arith.constant 0 : index
    %c0_3 = arith.constant 0 : index
    %4 = vector.load %arg3[%c0_2, %c0_3] : memref<32x384xbf16, #tpu.memory_space<vmem>>, vector<32x384xbf16>
    %c0_4 = arith.constant 0 : index
    %c0_5 = arith.constant 0 : index
    %5 = vector.load %arg4[%c0_4, %c0_5] : memref<384x128xbf16, #tpu.memory_space<vmem>>, vector<384x128xbf16>
    %cst = arith.constant dense<0.000000e+00> : vector<32x128xf32>
    %6 = tpu.matmul %4, %5, %cst {dimension_numbers = #tpu.dot_dimension_numbers<[1], [0], [0], [1], [0, 0, 1, 1], [], []>} : vector<32x384xbf16>, vector<384x128xbf16>, vector<32x128xf32> -> vector<32x128xf32>
    %7 = arith.addf %3, %6 : vector<32x128xf32>
    %c0_6 = arith.constant 0 : index
    %c0_7 = arith.constant 0 : index
    %8 = vector.load %arg7[%c0_6, %c0_7] : memref<32x128xf32, #tpu.memory_space<vmem>>, vector<32x128xf32>
    tpu.vector_store %arg7[%c0_6, %c0_7], %7 {strides = array<i32>} : memref<32x128xf32, #tpu.memory_space<vmem>>, vector<32x128xf32>,
    %c0_i32_8 = arith.constant 0 : i32
    %9 = arith.cmpi eq, %arg2, %c0_i32_8 : i32
    %10 = arith.extui %9 : i1 to i32
    %c0_i32_9 = arith.constant 0 : i32
    %11 = arith.cmpi ne, %10, %c0_i32_9 : i32
    scf.if %11 {
      %c0_10 = arith.constant 0 : index
      %c0_11 = arith.constant 0 : index
      %12 = vector.load %arg7[%c0_10, %c0_11] : memref<32x128xf32, #tpu.memory_space<vmem>>, vector<32x128xf32>
      %c0_12 = arith.constant 0 : index
      %c0_13 = arith.constant 0 : index
      %13 = vector.load %arg5[%c0_12, %c0_13] : memref<1x128xf32, #tpu.memory_space<vmem>>, vector<1x128xf32>
      %14 = vector.broadcast %13 : vector<1x128xf32> to vector<32x128xf32>
      %15 = arith.addf %12, %14 : vector<32x128xf32>
      %c0_14 = arith.constant 0 : index
      %c0_15 = arith.constant 0 : index
      %16 = vector.load %arg6[%c0_14, %c0_15] : memref<32x128xf32, #tpu.memory_space<vmem>>, vector<32x128xf32>
      tpu.vector_store %arg6[%c0_14, %c0_15], %15 {strides = array<i32>} : memref<32x128xf32, #tpu.memory_space<vmem>>, vector<32x128xf32>,
    } else {
    }
    return
  }
  func.func @transform_0(%arg0: i32, %arg1: i32, %arg2: i32) -> (i32, i32) {
    %c0_i32 = arith.constant 0 : i32
    return %arg0, %arg2 : i32, i32
  }
  func.func @transform_1(%arg0: i32, %arg1: i32, %arg2: i32) -> (i32, i32) {
    %c0_i32 = arith.constant 0 : i32
    return %arg2, %arg1 : i32, i32
  }
  func.func @transform_2(%arg0: i32, %arg1: i32, %arg2: i32) -> (i32, i32) {
    %c0_i32 = arith.constant 0 : i32
    %c0_i32_0 = arith.constant 0 : i32
    return %c0_i32, %arg1 : i32, i32
  }
  func.func @transform_3(%arg0: i32, %arg1: i32, %arg2: i32) -> (i32, i32) {
    %c0_i32 = arith.constant 0 : i32
    return %arg0, %arg1 : i32, i32
  }
}

module attributes {stable_mosaic.version = 11 : i64} {
  func.func @_scale_shift_relu_kernel(%arg0: i32, %arg1: i32, %arg2: memref<32x128xf32, #tpu.memory_space<vmem>>, %arg3: memref<1x128xf32, #tpu.memory_space<vmem>>, %arg4: memref<1x128xf32, #tpu.memory_space<vmem>>, %arg5: memref<32x128xbf16, #tpu.memory_space<vmem>>) attributes {dimension_semantics = [#tpu.dimension_semantics<parallel>, #tpu.dimension_semantics<parallel>], iteration_bounds = array<i64: 1, 1>, scalar_prefetch = 0 : i64, scratch_operands = 0 : i64, tpu.core_type = #tpu.core_type<tc>, window_params = [{transform_indices = @transform_0, window_bounds = array<i64: 32, 128>}, {transform_indices = @transform_1, window_bounds = array<i64: 1, 128>}, {transform_indices = @transform_2, window_bounds = array<i64: 1, 128>}, {transform_indices = @transform_3, window_bounds = array<i64: 32, 128>}]} {
    %c0 = arith.constant 0 : index
    %c0_0 = arith.constant 0 : index
    %0 = vector.load %arg2[%c0, %c0_0] : memref<32x128xf32, #tpu.memory_space<vmem>>, vector<32x128xf32>
    %c0_1 = arith.constant 0 : index
    %c0_2 = arith.constant 0 : index
    %1 = vector.load %arg3[%c0_1, %c0_2] : memref<1x128xf32, #tpu.memory_space<vmem>>, vector<1x128xf32>
    %2 = vector.broadcast %1 : vector<1x128xf32> to vector<32x128xf32>
    %3 = arith.mulf %0, %2 : vector<32x128xf32>
    %c0_3 = arith.constant 0 : index
    %c0_4 = arith.constant 0 : index
    %4 = vector.load %arg4[%c0_3, %c0_4] : memref<1x128xf32, #tpu.memory_space<vmem>>, vector<1x128xf32>
    %5 = vector.broadcast %4 : vector<1x128xf32> to vector<32x128xf32>
    %6 = arith.addf %3, %5 : vector<32x128xf32>
    %cst = arith.constant 0.000000e+00 : f32
    %7 = vector.broadcast %cst : f32 to vector<32x128xf32>
    %8 = arith.maximumf %6, %7 : vector<32x128xf32>
    %9 = arith.truncf %8 : vector<32x128xf32> to vector<32x128xbf16>
    %c0_5 = arith.constant 0 : index
    %c0_6 = arith.constant 0 : index
    %10 = vector.load %arg5[%c0_5, %c0_6] : memref<32x128xbf16, #tpu.memory_space<vmem>>, vector<32x128xbf16>
    tpu.vector_store %arg5[%c0_5, %c0_6], %9 {strides = array<i32>} : memref<32x128xbf16, #tpu.memory_space<vmem>>, vector<32x128xbf16>,
    return
  }
  func.func @transform_0(%arg0: i32, %arg1: i32) -> (i32, i32) {
    %c0_i32 = arith.constant 0 : i32
    return %arg0, %arg1 : i32, i32
  }
  func.func @transform_1(%arg0: i32, %arg1: i32) -> (i32, i32) {
    %c0_i32 = arith.constant 0 : i32
    %c0_i32_0 = arith.constant 0 : i32
    return %c0_i32, %arg1 : i32, i32
  }
  func.func @transform_2(%arg0: i32, %arg1: i32) -> (i32, i32) {
    %c0_i32 = arith.constant 0 : i32
    %c0_i32_0 = arith.constant 0 : i32
    return %c0_i32, %arg1 : i32, i32
  }
  func.func @transform_3(%arg0: i32, %arg1: i32) -> (i32, i32) {
    %c0_i32 = arith.constant 0 : i32
    return %arg0, %arg1 : i32, i32
  }
}

module attributes {stable_mosaic.version = 11 : i64} {
  func.func @_mm_bias_act_kernel(%arg0: i32, %arg1: i32, %arg2: i32, %arg3: memref<128x256xbf16, #tpu.memory_space<vmem>>, %arg4: memref<256x128xbf16, #tpu.memory_space<vmem>>, %arg5: memref<1x128xf32, #tpu.memory_space<vmem>>, %arg6: memref<128x128xf32, #tpu.memory_space<vmem>>, %arg7: memref<128x128xf32, #tpu.memory_space<vmem>>) attributes {dimension_semantics = [#tpu.dimension_semantics<parallel>, #tpu.dimension_semantics<parallel>, #tpu.dimension_semantics<arbitrary>], iteration_bounds = array<i64: 1, 1, 1>, scalar_prefetch = 0 : i64, scratch_operands = 1 : i64, tpu.core_type = #tpu.core_type<tc>, window_params = [{transform_indices = @transform_0, window_bounds = array<i64: 128, 256>}, {transform_indices = @transform_1, window_bounds = array<i64: 256, 128>}, {transform_indices = @transform_2, window_bounds = array<i64: 1, 128>}, {transform_indices = @transform_3, window_bounds = array<i64: 128, 128>}]} {
    %c0_i32 = arith.constant 0 : i32
    %0 = arith.cmpi eq, %arg2, %c0_i32 : i32
    %1 = arith.extui %0 : i1 to i32
    %c0_i32_0 = arith.constant 0 : i32
    %2 = arith.cmpi ne, %1, %c0_i32_0 : i32
    scf.if %2 {
      %cst_10 = arith.constant 0.000000e+00 : f32
      %12 = vector.broadcast %cst_10 : f32 to vector<128x128xf32>
      %c0_11 = arith.constant 0 : index
      %c0_12 = arith.constant 0 : index
      %13 = vector.load %arg7[%c0_11, %c0_12] : memref<128x128xf32, #tpu.memory_space<vmem>>, vector<128x128xf32>
      tpu.vector_store %arg7[%c0_11, %c0_12], %12 {strides = array<i32>} : memref<128x128xf32, #tpu.memory_space<vmem>>, vector<128x128xf32>,
    } else {
    }
    %c0 = arith.constant 0 : index
    %c0_1 = arith.constant 0 : index
    %3 = vector.load %arg7[%c0, %c0_1] : memref<128x128xf32, #tpu.memory_space<vmem>>, vector<128x128xf32>
    %c0_2 = arith.constant 0 : index
    %c0_3 = arith.constant 0 : index
    %4 = vector.load %arg3[%c0_2, %c0_3] : memref<128x256xbf16, #tpu.memory_space<vmem>>, vector<128x256xbf16>
    %c0_4 = arith.constant 0 : index
    %c0_5 = arith.constant 0 : index
    %5 = vector.load %arg4[%c0_4, %c0_5] : memref<256x128xbf16, #tpu.memory_space<vmem>>, vector<256x128xbf16>
    %cst = arith.constant dense<0.000000e+00> : vector<128x128xf32>
    %6 = tpu.matmul %4, %5, %cst {dimension_numbers = #tpu.dot_dimension_numbers<[1], [0], [0], [1], [0, 0, 1, 1], [], []>} : vector<128x256xbf16>, vector<256x128xbf16>, vector<128x128xf32> -> vector<128x128xf32>
    %7 = arith.addf %3, %6 : vector<128x128xf32>
    %c0_6 = arith.constant 0 : index
    %c0_7 = arith.constant 0 : index
    %8 = vector.load %arg7[%c0_6, %c0_7] : memref<128x128xf32, #tpu.memory_space<vmem>>, vector<128x128xf32>
    tpu.vector_store %arg7[%c0_6, %c0_7], %7 {strides = array<i32>} : memref<128x128xf32, #tpu.memory_space<vmem>>, vector<128x128xf32>,
    %c0_i32_8 = arith.constant 0 : i32
    %9 = arith.cmpi eq, %arg2, %c0_i32_8 : i32
    %10 = arith.extui %9 : i1 to i32
    %c0_i32_9 = arith.constant 0 : i32
    %11 = arith.cmpi ne, %10, %c0_i32_9 : i32
    scf.if %11 {
      %c0_10 = arith.constant 0 : index
      %c0_11 = arith.constant 0 : index
      %12 = vector.load %arg7[%c0_10, %c0_11] : memref<128x128xf32, #tpu.memory_space<vmem>>, vector<128x128xf32>
      %c0_12 = arith.constant 0 : index
      %c0_13 = arith.constant 0 : index
      %13 = vector.load %arg5[%c0_12, %c0_13] : memref<1x128xf32, #tpu.memory_space<vmem>>, vector<1x128xf32>
      %14 = vector.broadcast %13 : vector<1x128xf32> to vector<128x128xf32>
      %15 = arith.addf %12, %14 : vector<128x128xf32>
      %c0_14 = arith.constant 0 : index
      %c0_15 = arith.constant 0 : index
      %16 = vector.load %arg6[%c0_14, %c0_15] : memref<128x128xf32, #tpu.memory_space<vmem>>, vector<128x128xf32>
      tpu.vector_store %arg6[%c0_14, %c0_15], %15 {strides = array<i32>} : memref<128x128xf32, #tpu.memory_space<vmem>>, vector<128x128xf32>,
    } else {
    }
    return
  }
  func.func @transform_0(%arg0: i32, %arg1: i32, %arg2: i32) -> (i32, i32) {
    %c0_i32 = arith.constant 0 : i32
    return %arg0, %arg2 : i32, i32
  }
  func.func @transform_1(%arg0: i32, %arg1: i32, %arg2: i32) -> (i32, i32) {
    %c0_i32 = arith.constant 0 : i32
    return %arg2, %arg1 : i32, i32
  }
  func.func @transform_2(%arg0: i32, %arg1: i32, %arg2: i32) -> (i32, i32) {
    %c0_i32 = arith.constant 0 : i32
    %c0_i32_0 = arith.constant 0 : i32
    return %c0_i32, %arg1 : i32, i32
  }
  func.func @transform_3(%arg0: i32, %arg1: i32, %arg2: i32) -> (i32, i32) {
    %c0_i32 = arith.constant 0 : i32
    return %arg0, %arg1 : i32, i32
  }
}

module attributes {stable_mosaic.version = 11 : i64} {
  func.func @_scale_shift_relu_kernel(%arg0: i32, %arg1: i32, %arg2: memref<128x128xf32, #tpu.memory_space<vmem>>, %arg3: memref<1x128xf32, #tpu.memory_space<vmem>>, %arg4: memref<1x128xf32, #tpu.memory_space<vmem>>, %arg5: memref<128x128xbf16, #tpu.memory_space<vmem>>) attributes {dimension_semantics = [#tpu.dimension_semantics<parallel>, #tpu.dimension_semantics<parallel>], iteration_bounds = array<i64: 1, 1>, scalar_prefetch = 0 : i64, scratch_operands = 0 : i64, tpu.core_type = #tpu.core_type<tc>, window_params = [{transform_indices = @transform_0, window_bounds = array<i64: 128, 128>}, {transform_indices = @transform_1, window_bounds = array<i64: 1, 128>}, {transform_indices = @transform_2, window_bounds = array<i64: 1, 128>}, {transform_indices = @transform_3, window_bounds = array<i64: 128, 128>}]} {
    %c0 = arith.constant 0 : index
    %c0_0 = arith.constant 0 : index
    %0 = vector.load %arg2[%c0, %c0_0] : memref<128x128xf32, #tpu.memory_space<vmem>>, vector<128x128xf32>
    %c0_1 = arith.constant 0 : index
    %c0_2 = arith.constant 0 : index
    %1 = vector.load %arg3[%c0_1, %c0_2] : memref<1x128xf32, #tpu.memory_space<vmem>>, vector<1x128xf32>
    %2 = vector.broadcast %1 : vector<1x128xf32> to vector<128x128xf32>
    %3 = arith.mulf %0, %2 : vector<128x128xf32>
    %c0_3 = arith.constant 0 : index
    %c0_4 = arith.constant 0 : index
    %4 = vector.load %arg4[%c0_3, %c0_4] : memref<1x128xf32, #tpu.memory_space<vmem>>, vector<1x128xf32>
    %5 = vector.broadcast %4 : vector<1x128xf32> to vector<128x128xf32>
    %6 = arith.addf %3, %5 : vector<128x128xf32>
    %cst = arith.constant 0.000000e+00 : f32
    %7 = vector.broadcast %cst : f32 to vector<128x128xf32>
    %8 = arith.maximumf %6, %7 : vector<128x128xf32>
    %9 = arith.truncf %8 : vector<128x128xf32> to vector<128x128xbf16>
    %c0_5 = arith.constant 0 : index
    %c0_6 = arith.constant 0 : index
    %10 = vector.load %arg5[%c0_5, %c0_6] : memref<128x128xbf16, #tpu.memory_space<vmem>>, vector<128x128xbf16>
    tpu.vector_store %arg5[%c0_5, %c0_6], %9 {strides = array<i32>} : memref<128x128xbf16, #tpu.memory_space<vmem>>, vector<128x128xbf16>,
    return
  }
  func.func @transform_0(%arg0: i32, %arg1: i32) -> (i32, i32) {
    %c0_i32 = arith.constant 0 : i32
    return %arg0, %arg1 : i32, i32
  }
  func.func @transform_1(%arg0: i32, %arg1: i32) -> (i32, i32) {
    %c0_i32 = arith.constant 0 : i32
    %c0_i32_0 = arith.constant 0 : i32
    return %c0_i32, %arg1 : i32, i32
  }
  func.func @transform_2(%arg0: i32, %arg1: i32) -> (i32, i32) {
    %c0_i32 = arith.constant 0 : i32
    %c0_i32_0 = arith.constant 0 : i32
    return %c0_i32, %arg1 : i32, i32
  }
  func.func @transform_3(%arg0: i32, %arg1: i32) -> (i32, i32) {
    %c0_i32 = arith.constant 0 : i32
    return %arg0, %arg1 : i32, i32
  }
}

module attributes {stable_mosaic.version = 11 : i64} {
  func.func @_mm_bias_act_kernel(%arg0: i32, %arg1: i32, %arg2: i32, %arg3: memref<256x128xbf16, #tpu.memory_space<vmem>>, %arg4: memref<128x128xbf16, #tpu.memory_space<vmem>>, %arg5: memref<1x128xf32, #tpu.memory_space<vmem>>, %arg6: memref<256x128xf32, #tpu.memory_space<vmem>>, %arg7: memref<256x128xf32, #tpu.memory_space<vmem>>) attributes {dimension_semantics = [#tpu.dimension_semantics<parallel>, #tpu.dimension_semantics<parallel>, #tpu.dimension_semantics<arbitrary>], iteration_bounds = array<i64: 2, 1, 1>, scalar_prefetch = 0 : i64, scratch_operands = 1 : i64, tpu.core_type = #tpu.core_type<tc>, window_params = [{transform_indices = @transform_0, window_bounds = array<i64: 256, 128>}, {transform_indices = @transform_1, window_bounds = array<i64: 128, 128>}, {transform_indices = @transform_2, window_bounds = array<i64: 1, 128>}, {transform_indices = @transform_3, window_bounds = array<i64: 256, 128>}]} {
    %c0_i32 = arith.constant 0 : i32
    %0 = arith.cmpi eq, %arg2, %c0_i32 : i32
    %1 = arith.extui %0 : i1 to i32
    %c0_i32_0 = arith.constant 0 : i32
    %2 = arith.cmpi ne, %1, %c0_i32_0 : i32
    scf.if %2 {
      %cst_10 = arith.constant 0.000000e+00 : f32
      %12 = vector.broadcast %cst_10 : f32 to vector<256x128xf32>
      %c0_11 = arith.constant 0 : index
      %c0_12 = arith.constant 0 : index
      %13 = vector.load %arg7[%c0_11, %c0_12] : memref<256x128xf32, #tpu.memory_space<vmem>>, vector<256x128xf32>
      tpu.vector_store %arg7[%c0_11, %c0_12], %12 {strides = array<i32>} : memref<256x128xf32, #tpu.memory_space<vmem>>, vector<256x128xf32>,
    } else {
    }
    %c0 = arith.constant 0 : index
    %c0_1 = arith.constant 0 : index
    %3 = vector.load %arg7[%c0, %c0_1] : memref<256x128xf32, #tpu.memory_space<vmem>>, vector<256x128xf32>
    %c0_2 = arith.constant 0 : index
    %c0_3 = arith.constant 0 : index
    %4 = vector.load %arg3[%c0_2, %c0_3] : memref<256x128xbf16, #tpu.memory_space<vmem>>, vector<256x128xbf16>
    %c0_4 = arith.constant 0 : index
    %c0_5 = arith.constant 0 : index
    %5 = vector.load %arg4[%c0_4, %c0_5] : memref<128x128xbf16, #tpu.memory_space<vmem>>, vector<128x128xbf16>
    %cst = arith.constant dense<0.000000e+00> : vector<256x128xf32>
    %6 = tpu.matmul %4, %5, %cst {dimension_numbers = #tpu.dot_dimension_numbers<[1], [0], [0], [1], [0, 0, 1, 1], [], []>} : vector<256x128xbf16>, vector<128x128xbf16>, vector<256x128xf32> -> vector<256x128xf32>
    %7 = arith.addf %3, %6 : vector<256x128xf32>
    %c0_6 = arith.constant 0 : index
    %c0_7 = arith.constant 0 : index
    %8 = vector.load %arg7[%c0_6, %c0_7] : memref<256x128xf32, #tpu.memory_space<vmem>>, vector<256x128xf32>
    tpu.vector_store %arg7[%c0_6, %c0_7], %7 {strides = array<i32>} : memref<256x128xf32, #tpu.memory_space<vmem>>, vector<256x128xf32>,
    %c0_i32_8 = arith.constant 0 : i32
    %9 = arith.cmpi eq, %arg2, %c0_i32_8 : i32
    %10 = arith.extui %9 : i1 to i32
    %c0_i32_9 = arith.constant 0 : i32
    %11 = arith.cmpi ne, %10, %c0_i32_9 : i32
    scf.if %11 {
      %c0_10 = arith.constant 0 : index
      %c0_11 = arith.constant 0 : index
      %12 = vector.load %arg7[%c0_10, %c0_11] : memref<256x128xf32, #tpu.memory_space<vmem>>, vector<256x128xf32>
      %c0_12 = arith.constant 0 : index
      %c0_13 = arith.constant 0 : index
      %13 = vector.load %arg5[%c0_12, %c0_13] : memref<1x128xf32, #tpu.memory_space<vmem>>, vector<1x128xf32>
      %14 = vector.broadcast %13 : vector<1x128xf32> to vector<256x128xf32>
      %15 = arith.addf %12, %14 : vector<256x128xf32>
      %16 = arith.negf %15 : vector<256x128xf32>
      %17 = math.exp %16 : vector<256x128xf32>
      %cst_14 = arith.constant 1.000000e+00 : f32
      %18 = vector.broadcast %cst_14 : f32 to vector<256x128xf32>
      %19 = arith.addf %18, %17 : vector<256x128xf32>
      %20 = arith.divf %18, %19 : vector<256x128xf32>
      %c0_15 = arith.constant 0 : index
      %c0_16 = arith.constant 0 : index
      %21 = vector.load %arg6[%c0_15, %c0_16] : memref<256x128xf32, #tpu.memory_space<vmem>>, vector<256x128xf32>
      tpu.vector_store %arg6[%c0_15, %c0_16], %20 {strides = array<i32>} : memref<256x128xf32, #tpu.memory_space<vmem>>, vector<256x128xf32>,
    } else {
    }
    return
  }
  func.func @transform_0(%arg0: i32, %arg1: i32, %arg2: i32) -> (i32, i32) {
    %c0_i32 = arith.constant 0 : i32
    return %arg0, %arg2 : i32, i32
  }
  func.func @transform_1(%arg0: i32, %arg1: i32, %arg2: i32) -> (i32, i32) {
    %c0_i32 = arith.constant 0 : i32
    return %arg2, %arg1 : i32, i32
  }
  func.func @transform_2(%arg0: i32, %arg1: i32, %arg2: i32) -> (i32, i32) {
    %c0_i32 = arith.constant 0 : i32
    %c0_i32_0 = arith.constant 0 : i32
    return %c0_i32, %arg1 : i32, i32
  }
  func.func @transform_3(%arg0: i32, %arg1: i32, %arg2: i32) -> (i32, i32) {
    %c0_i32 = arith.constant 0 : i32
    return %arg0, %arg1 : i32, i32
  }
}

</mosaic_0001>

<bundles_post_ra>
// kernel: cvae1_forward.13
= control target key start
LH: loop header
LB: loop body
LE: loop exit
PB: predicated region body
PF: predicated region fallthrough
CT: control target
= control target key end

     0   :  { %s721_s1 = inlined_call_operand.vmem [shape: bf16[128,128], index: 1, kind: input, shape index: {}]   ;;  %s722_s0 = inlined_call_operand.vmem [shape: bf16[128,128], index: 0, kind: input, shape index: {}]   ;;  %s723_s2 = inlined_call_operand.vmem [shape: f32[1,128], index: 2, kind: input, shape index: {}]   ;;  %s724_s3 = inlined_call_operand.vmem [shape: bf16[128,128], index: 3, kind: output, shape index: {}]  }
   0x1   :  { %v610_v0 = vld [vmem:[%s721_s1] sm:$0xff]   ;;  %v611_v1 = vld [vmem:[%s721_s1 + $0x8] sm:$0xff]   ;;  %v612_v2 = vld [vmem:[%s721_s1 + $0x10] sm:$0xff]  }
   0x2   :  { %562 = vmatprep.subr.bf16.mxu0 %v610_v0  ;;  %594 = vmatprep.subr.bf16.mxu1 %v610_v0  ;;  %v613_v3 = vld [vmem:[%s721_s1 + $0x18] sm:$0xff]   ;;  %v618_v4 = vld [vmem:[%s722_s0] sm:$0xff]   ;;  %v615_v7 = vld [vmem:[%s721_s1 + $0x28] sm:$0xff]  }
   0x3   :  { %563 = vmatpush3.bf16.msra.mxu0 %v610_v0  ;;  %602 = vmatpush3.bf16.msra.mxu1 %v610_v0  ;;  %v619_v5 = vld [vmem:[%s722_s0 + $0x20] sm:$0xff]   ;;  %v616_v8 = vld [vmem:[%s721_s1 + $0x30] sm:$0xff]   ;;  %v617_v9 = vld [vmem:[%s721_s1 + $0x38] sm:$0xff]  }
   0x4   :  { %564 = vmatprep.subr.bf16.mxu0 %v611_v1  ;;  %595 = vmatprep.subr.bf16.mxu1 %v611_v1  ;;  %v614_v6 = vld [vmem:[%s721_s1 + $0x20] sm:$0xff]   ;;  %v620_v10 = vld [vmem:[%s722_s0 + $0x8] sm:$0xff]   ;;  %v622_v12 = vld [vmem:[%s722_s0 + $0x10] sm:$0xff]  }
   0x5   :  { %578 = vmatprep.mubr.bf16.mxu0 %v618_v4  ;;  %586 = vmatprep.mubr.bf16.mxu1 %v619_v5  ;;  %v621_v11 = vld [vmem:[%s722_s0 + $0x28] sm:$0xff]   ;;  %v623_v13 = vld [vmem:[%s722_s0 + $0x30] sm:$0xff]   ;;  %v624_v14 = vld [vmem:[%s722_s0 + $0x18] sm:$0xff]  }
   0x6   :  { %v625_v15 = vld [vmem:[%s722_s0 + $0x38] sm:$0xff]   ;;  %v466_v16 = vld [vmem:[%s723_s2] ss:$0 sm:$0xff] }
   0x7   :  { %565 = vmatpush3.bf16.msra.mxu0 %v611_v1  ;;  %603 = vmatpush3.bf16.msra.mxu1 %v611_v1 }
   0x8   :  { %566 = vmatprep.subr.bf16.mxu0 %v612_v2  ;;  %596 = vmatprep.subr.bf16.mxu1 %v612_v2 }
   0xb   :  { %567 = vmatpush3.bf16.msra.mxu0 %v612_v2  ;;  %604 = vmatpush3.bf16.msra.mxu1 %v612_v2 }
   0xc   :  { %568 = vmatprep.subr.bf16.mxu0 %v613_v3  ;;  %597 = vmatprep.subr.bf16.mxu1 %v613_v3 }
   0xf   :  { %569 = vmatpush3.bf16.msra.mxu0 %v613_v3  ;;  %605 = vmatpush3.bf16.msra.mxu1 %v613_v3 }
  0x10   :  { %570 = vmatprep.subr.bf16.mxu0 %v614_v6  ;;  %598 = vmatprep.subr.bf16.mxu1 %v614_v6 }
  0x13   :  { %571 = vmatpush3.bf16.msra.mxu0 %v614_v6  ;;  %606 = vmatpush3.bf16.msra.mxu1 %v614_v6 }
  0x14   :  { %572 = vmatprep.subr.bf16.mxu0 %v615_v7  ;;  %599 = vmatprep.subr.bf16.mxu1 %v615_v7 }
  0x17   :  { %573 = vmatpush3.bf16.msra.mxu0 %v615_v7  ;;  %607 = vmatpush3.bf16.msra.mxu1 %v615_v7 }
  0x18   :  { %574 = vmatprep.subr.bf16.mxu0 %v616_v8  ;;  %600 = vmatprep.subr.bf16.mxu1 %v616_v8 }
  0x1b   :  { %575 = vmatpush3.bf16.msra.mxu0 %v616_v8  ;;  %608 = vmatpush3.bf16.msra.mxu1 %v616_v8 }
  0x1c   :  { %576 = vmatprep.subr.bf16.mxu0 %v617_v9  ;;  %601 = vmatprep.subr.bf16.mxu1 %v617_v9 }
  0x1f   :  { %577 = vmatpush3.bf16.msra.mxu0 %v617_v9  ;;  %609 = vmatpush3.bf16.msra.mxu1 %v617_v9 }
  0x22   :  { %579 = vmatmul.mubr.bf16.vlgmr.msra.gmra.mrb[0].mxu0 %v620_v10  ;;  %587 = vmatmul.mubr.bf16.vlgmr.msra.gmra.mrb[0].mxu1 %v621_v11 }
  0x23   :  { %582 = vmatprep.mubr.bf16.mxu0 %v622_v12  ;;  %590 = vmatprep.mubr.bf16.mxu1 %v623_v13 }
  0x2a   :  { %583 = vmatmul.mubr.bf16.gmra.mrb[4].mxu0 %v624_v14  ;;  %591 = vmatmul.mubr.bf16.gmra.mrb[4].mxu1 %v625_v15 }
  0xf5   :  { %v580_v17 = vpop.f32.mrb[0].mxu0  ;;  %v588_v18 = vpop.f32.mrb[0].mxu1 }
  0xf6   :  { %v336_v19 = vadd.f32 %v580_v17, %v466_v16  ;;  %v344_v20 = vadd.f32 %v588_v18, %v466_v16  ;;  %v213_v21 = vpop.f32.mrb[1].mxu0  ;;  %v245_v22 = vpop.f32.mrb[1].mxu1 }
  0xf7   :  { %v334_v23 = vadd.f32 %v466_v16, %v213_v21  ;;  %v342_v24 = vadd.f32 %v466_v16, %v245_v22  ;;  %v581_v25 = vpop.f32.mrb[2].mxu0  ;;  %v589_v26 = vpop.f32.mrb[2].mxu1 }
  0xf8   :  { %v337_v27 = vadd.f32 %v581_v25, %v466_v16  ;;  %v345_v28 = vadd.f32 %v589_v26, %v466_v16  ;;  %v216_v29 = vpop.f32.mrb[3].mxu0  ;;  %v248_v30 = vpop.f32.mrb[3].mxu1  ;;  %v352_v33 = vmax.f32 %v336_v19, 0.0  ;;  %v360_v34 = vmax.f32 %v344_v20, 0.0 }
  0xf9   :  { %v335_v31 = vadd.f32 %v466_v16, %v216_v29  ;;  %v343_v32 = vadd.f32 %v466_v16, %v248_v30  ;;  %v350_v37 = vmax.f32 %v334_v23, 0.0  ;;  %v358_v38 = vmax.f32 %v342_v24, 0.0 }
  0xfa   :  { %v353_v35 = vmax.f32 %v337_v27, 0.0  ;;  %v361_v36 = vmax.f32 %v345_v28, 0.0 }
  0xfb   :  { %v351_v39 = vmax.f32 %v335_v31, 0.0  ;;  %v359_v40 = vmax.f32 %v343_v32, 0.0 }
  0xfc   :  { %v507_v41 = vpack.c.bf16 %v353_v35, %v352_v33  ;;  %v527_v42 = vpack.c.bf16 %v361_v36, %v360_v34 }
  0xfd   :  { %v502_v43 = vpack.c.bf16 %v351_v39, %v350_v37  ;;  %v522_v44 = vpack.c.bf16 %v359_v40, %v358_v38  ;;  %v584_v45 = vpop.f32.mrb[4].mxu0  ;;  %v592_v46 = vpop.f32.mrb[4].mxu1 }
  0xfe   :  { %539 = vst [vmem:[%s724_s3 + $0x8] sm:$0xff] %v507_v41   ;;  %543 = vst [vmem:[%s724_s3 + $0x28] sm:$0xff] %v527_v42   ;;  %v340_v47 = vadd.f32 %v584_v45, %v466_v16  ;;  %v348_v48 = vadd.f32 %v592_v46, %v466_v16  ;;  %v229_v49 = vpop.f32.mrb[5].mxu0  ;;  %v261_v50 = vpop.f32.mrb[5].mxu1 }
  0xff   :  { %503 = vst [vmem:[%s724_s3] sm:$0xff] %v502_v43   ;;  %542 = vst [vmem:[%s724_s3 + $0x20] sm:$0xff] %v522_v44   ;;  %v338_v51 = vadd.f32 %v466_v16, %v229_v49  ;;  %v346_v52 = vadd.f32 %v466_v16, %v261_v50  ;;  %v585_v53 = vpop.f32.mrb[6].mxu0  ;;  %v593_v54 = vpop.f32.mrb[6].mxu1 }
 0x100   :  { %v341_v55 = vadd.f32 %v585_v53, %v466_v16  ;;  %v349_v56 = vadd.f32 %v593_v54, %v466_v16  ;;  %v232_v57 = vpop.f32.mrb[7].mxu0  ;;  %v264_v58 = vpop.f32.mrb[7].mxu1  ;;  %v356_v61 = vmax.f32 %v340_v47, 0.0  ;;  %v364_v62 = vmax.f32 %v348_v48, 0.0 }
 0x101   :  { %v339_v59 = vadd.f32 %v466_v16, %v232_v57  ;;  %v347_v60 = vadd.f32 %v466_v16, %v264_v58  ;;  %v354_v1 = vmax.f32 %v338_v51, 0.0  ;;  %v362_v2 = vmax.f32 %v346_v52, 0.0 }
 0x102   :  { %v357_v63 = vmax.f32 %v341_v55, 0.0  ;;  %v365_v0 = vmax.f32 %v349_v56, 0.0 }
 0x103   :  { %v355_v3 = vmax.f32 %v339_v59, 0.0  ;;  %v363_v4 = vmax.f32 %v347_v60, 0.0 }
 0x104   :  { %v517_v5 = vpack.c.bf16 %v357_v63, %v356_v61  ;;  %v537_v6 = vpack.c.bf16 %v365_v0, %v364_v62 }
 0x105   :  { %v512_v7 = vpack.c.bf16 %v355_v3, %v354_v1  ;;  %v532_v8 = vpack.c.bf16 %v363_v4, %v362_v2 }
 0x106   :  { %541 = vst [vmem:[%s724_s3 + $0x18] sm:$0xff] %v517_v5   ;;  %545 = vst [vmem:[%s724_s3 + $0x38] sm:$0xff] %v537_v6  }
 0x107   :  { %540 = vst [vmem:[%s724_s3 + $0x10] sm:$0xff] %v512_v7   ;;  %544 = vst [vmem:[%s724_s3 + $0x30] sm:$0xff] %v532_v8  }

// kernel: cvae1_forward.14
= control target key start
LH: loop header
LB: loop body
LE: loop exit
PB: predicated region body
PF: predicated region fallthrough
CT: control target
= control target key end

     0   :  { %s477_s1 = inlined_call_operand.vmem [shape: bf16[256,128], index: 1, kind: input, shape index: {}]   ;;  %s478_s0 = inlined_call_operand.vmem [shape: bf16[32,256], index: 0, kind: input, shape index: {}]   ;;  %s479_s2 = inlined_call_operand.vmem [shape: f32[1,128], index: 2, kind: input, shape index: {}]   ;;  %s480_s3 = inlined_call_operand.vmem [shape: bf16[32,128], index: 3, kind: output, shape index: {}]  }
   0x1   :  { %v366_v0 = vld [vmem:[%s477_s1 + $0x40] sm:$0xff]   ;;  %v368_v2 = vld [vmem:[%s477_s1 + $0x48] sm:$0xff]   ;;  %v370_v4 = vld [vmem:[%s477_s1 + $0x50] sm:$0xff]  }
   0x2   :  { %v367_v1 = vld [vmem:[%s477_s1] sm:$0xff]   ;;  %322 = vmatprep.subr.bf16.mxu0 %v366_v0  ;;  %350 = vmatprep.subr.bf16.mxu1 %v366_v0  ;;  %v369_v3 = vld [vmem:[%s477_s1 + $0x8] sm:$0xff]   ;;  %v371_v5 = vld [vmem:[%s477_s1 + $0x10] sm:$0xff]  }
   0x3   :  { %323 = vmatpush3.bf16.msra.mxu0 %v367_v1  ;;  %358 = vmatpush3.bf16.msra.mxu1 %v367_v1  ;;  %v372_v6 = vld [vmem:[%s477_s1 + $0x58] sm:$0xff]   ;;  %v374_v8 = vld [vmem:[%s477_s1 + $0x60] sm:$0xff]   ;;  %v376_v10 = vld [vmem:[%s477_s1 + $0x68] sm:$0xff]  }
   0x4   :  { %324 = vmatprep.subr.bf16.mxu0 %v368_v2  ;;  %351 = vmatprep.subr.bf16.mxu1 %v368_v2  ;;  %v373_v7 = vld [vmem:[%s477_s1 + $0x18] sm:$0xff]   ;;  %v375_v9 = vld [vmem:[%s477_s1 + $0x20] sm:$0xff]   ;;  %v377_v13 = vld [vmem:[%s477_s1 + $0x28] sm:$0xff]  }
   0x5   :  { %v384_v11 = vld [vmem:[%s478_s0 + $0x4] ss:$8 sps:$4 sm:$0xff]   ;;  %v387_v12 = vld [vmem:[%s478_s0 + $0x14] ss:$8 sps:$4 sm:$0xff]   ;;  %v382_v18 = vld [vmem:[%s478_s0] ss:$8 sps:$4 sm:$0xff]  }
   0x6   :  { %v378_v14 = vld [vmem:[%s477_s1 + $0x70] sm:$0xff]   ;;  %211 = vmatprep.mubr.bf16.mxu0 %v384_v11  ;;  %219 = vmatprep.mubr.bf16.mxu1 %v387_v12  ;;  %v380_v16 = vld [vmem:[%s477_s1 + $0x78] sm:$0xff]   ;;  %v302_v23 = vld [vmem:[%s479_s2] ss:$0 sm:$0xff] }
   0x7   :  { %325 = vmatpush3.bf16.msra.mxu0 %v369_v3  ;;  %359 = vmatpush3.bf16.msra.mxu1 %v369_v3  ;;  %v379_v15 = vld [vmem:[%s477_s1 + $0x30] sm:$0xff]   ;;  %v381_v17 = vld [vmem:[%s477_s1 + $0x38] sm:$0xff]  }
   0x8   :  { %326 = vmatprep.subr.bf16.mxu0 %v370_v4  ;;  %352 = vmatprep.subr.bf16.mxu1 %v370_v4  ;;  %v385_v19 = vld [vmem:[%s478_s0 + $0x10] ss:$8 sps:$4 sm:$0xff]  }
   0xb   :  { %327 = vmatpush3.bf16.msra.mxu0 %v371_v5  ;;  %360 = vmatpush3.bf16.msra.mxu1 %v371_v5 }
   0xc   :  { %328 = vmatprep.subr.bf16.mxu0 %v372_v6  ;;  %353 = vmatprep.subr.bf16.mxu1 %v372_v6 }
   0xf   :  { %329 = vmatpush3.bf16.msra.mxu0 %v373_v7  ;;  %361 = vmatpush3.bf16.msra.mxu1 %v373_v7 }
  0x10   :  { %330 = vmatprep.subr.bf16.mxu0 %v374_v8  ;;  %354 = vmatprep.subr.bf16.mxu1 %v374_v8 }
  0x13   :  { %331 = vmatpush3.bf16.msra.mxu0 %v375_v9  ;;  %362 = vmatpush3.bf16.msra.mxu1 %v375_v9 }
  0x14   :  { %332 = vmatprep.subr.bf16.mxu0 %v376_v10  ;;  %355 = vmatprep.subr.bf16.mxu1 %v376_v10 }
  0x17   :  { %333 = vmatpush3.bf16.msra.mxu0 %v377_v13  ;;  %363 = vmatpush3.bf16.msra.mxu1 %v377_v13 }
  0x18   :  { %334 = vmatprep.subr.bf16.mxu0 %v378_v14  ;;  %356 = vmatprep.subr.bf16.mxu1 %v378_v14 }
  0x1b   :  { %335 = vmatpush3.bf16.msra.mxu0 %v379_v15  ;;  %364 = vmatpush3.bf16.msra.mxu1 %v379_v15 }
  0x1c   :  { %336 = vmatprep.subr.bf16.mxu0 %v380_v16  ;;  %357 = vmatprep.subr.bf16.mxu1 %v380_v16 }
  0x1f   :  { %337 = vmatpush3.bf16.msra.mxu0 %v381_v17  ;;  %365 = vmatpush3.bf16.msra.mxu1 %v381_v17 }
  0x22   :  { %212 = vmatmul.mubr.bf16.vlgmr.msra.gmra.mrb[0].mxu0 %v382_v18  ;;  %220 = vmatmul.mubr.bf16.vlgmr.msra.gmra.mrb[0].mxu1 %v385_v19 }
  0xf5   :  { %v338_v20 = vpop.f32.mrb[0].mxu0  ;;  %v344_v21 = vpop.f32.mrb[0].mxu1 }
  0xf6   :  { %v339_v22 = vpop.f32.mrb[1].mxu0  ;;  %v345_v24 = vpop.f32.mrb[1].mxu1 }
  0xf7   :  { %v340_v25 = vadd.f32 %v339_v22, %v338_v20  ;;  %v346_v26 = vadd.f32 %v345_v24, %v344_v21  ;;  %v341_v27 = vpop.f32.mrb[2].mxu0  ;;  %v347_v28 = vpop.f32.mrb[2].mxu1 }
  0xf8   :  { %v342_v29 = vpop.f32.mrb[3].mxu0  ;;  %v348_v30 = vpop.f32.mrb[3].mxu1 }
  0xf9   :  { %v250_v31 = vadd.f32 %v340_v25, %v302_v23  ;;  %v252_v32 = vadd.f32 %v346_v26, %v302_v23  ;;  %v343_v33 = vadd.f32 %v342_v29, %v341_v27  ;;  %v349_v34 = vadd.f32 %v348_v30, %v347_v28 }
  0xfb   :  { %v251_v35 = vadd.f32 %v343_v33, %v302_v23  ;;  %v253_v36 = vadd.f32 %v349_v34, %v302_v23  ;;  %v254_v37 = vmax.f32 %v250_v31, 0.0  ;;  %v256_v38 = vmax.f32 %v252_v32, 0.0 }
  0xfd   :  { %v255_v39 = vmax.f32 %v251_v35, 0.0  ;;  %v257_v40 = vmax.f32 %v253_v36, 0.0 }
  0xff   :  { %v314_v41 = vpack.c.bf16 %v255_v39, %v254_v37  ;;  %v319_v42 = vpack.c.bf16 %v257_v40, %v256_v38 }
 0x101   :  { %315 = vst [vmem:[%s480_s3] sm:$0xff] %v314_v41   ;;  %321 = vst [vmem:[%s480_s3 + $0x8] sm:$0xff] %v319_v42  }

// kernel: cvae1_forward.15
= control target key start
LH: loop header
LB: loop body
LE: loop exit
PB: predicated region body
PF: predicated region fallthrough
CT: control target
= control target key end

     0   :  { %s639_s1 = inlined_call_operand.vmem [shape: bf16[512,128], index: 1, kind: input, shape index: {}]   ;;  %s640_s0 = inlined_call_operand.vmem [shape: bf16[8,512], index: 0, kind: input, shape index: {}]   ;;  %s641_s2 = inlined_call_operand.vmem [shape: f32[1,128], index: 2, kind: input, shape index: {}]   ;;  %s642_s3 = inlined_call_operand.vmem [shape: bf16[8,128], index: 3, kind: output, shape index: {}]  }
   0x1   :  { %v475_v0 = vld [vmem:[%s639_s1 + $0x40] sm:$0xff]   ;;  %v479_v4 = vld [vmem:[%s639_s1 + $0x48] sm:$0xff]   ;;  %v483_v8 = vld [vmem:[%s639_s1 + $0x50] sm:$0xff]  }
   0x2   :  { %v476_v1 = vld [vmem:[%s639_s1 + $0xc0] sm:$0xff]   ;;  %431 = vmatprep.subr.bf16.mxu0 %v475_v0  ;;  %v480_v5 = vld [vmem:[%s639_s1 + $0xc8] sm:$0xff]   ;;  %v484_v9 = vld [vmem:[%s639_s1 + $0xd0] sm:$0xff]  }
   0x3   :  { %v477_v2 = vld [vmem:[%s639_s1] sm:$0xff]   ;;  %453 = vmatprep.subr.bf16.mxu1 %v476_v1  ;;  %v481_v6 = vld [vmem:[%s639_s1 + $0x8] sm:$0xff]   ;;  %v485_v10 = vld [vmem:[%s639_s1 + $0x10] sm:$0xff]  }
   0x4   :  { %v478_v3 = vld [vmem:[%s639_s1 + $0x80] sm:$0xff]   ;;  %432 = vmatpush3.bf16.msra.mxu0 %v477_v2  ;;  %v482_v7 = vld [vmem:[%s639_s1 + $0x88] sm:$0xff]   ;;  %v486_v11 = vld [vmem:[%s639_s1 + $0x90] sm:$0xff]  }
   0x5   :  { %454 = vmatpush3.bf16.msra.mxu1 %v478_v3  ;;  %433 = vmatprep.subr.bf16.mxu0 %v479_v4  ;;  %v487_v12 = vld [vmem:[%s639_s1 + $0x58] sm:$0xff]   ;;  %v491_v16 = vld [vmem:[%s639_s1 + $0x60] sm:$0xff]   ;;  %v495_v20 = vld [vmem:[%s639_s1 + $0x68] sm:$0xff]  }
   0x6   :  { %455 = vmatprep.subr.bf16.mxu1 %v480_v5  ;;  %v488_v13 = vld [vmem:[%s639_s1 + $0xd8] sm:$0xff]   ;;  %v492_v17 = vld [vmem:[%s639_s1 + $0xe0] sm:$0xff]   ;;  %v496_v21 = vld [vmem:[%s639_s1 + $0xe8] sm:$0xff]  }
   0x7   :  { %v489_v14 = vld [vmem:[%s639_s1 + $0x18] sm:$0xff]   ;;  %v493_v18 = vld [vmem:[%s639_s1 + $0x20] sm:$0xff]   ;;  %v497_v22 = vld [vmem:[%s639_s1 + $0x28] sm:$0xff]  }
   0x8   :  { %434 = vmatpush3.bf16.msra.mxu0 %v481_v6  ;;  %v490_v15 = vld [vmem:[%s639_s1 + $0x98] sm:$0xff]   ;;  %v494_v19 = vld [vmem:[%s639_s1 + $0xa0] sm:$0xff]   ;;  %v498_v23 = vld [vmem:[%s639_s1 + $0xa8] sm:$0xff]  }
   0x9   :  { %456 = vmatpush3.bf16.msra.mxu1 %v482_v7  ;;  %435 = vmatprep.subr.bf16.mxu0 %v483_v8  ;;  %v499_v24 = vld [vmem:[%s639_s1 + $0x70] sm:$0xff]   ;;  %v503_v28 = vld [vmem:[%s639_s1 + $0x78] sm:$0xff]   ;;  %v21_v32 = vld [vmem:[%s640_s0] sm:$0xff] }
   0xa   :  { %457 = vmatprep.subr.bf16.mxu1 %v484_v9  ;;  %v500_v25 = vld [vmem:[%s639_s1 + $0xf0] sm:$0xff]   ;;  %v504_v29 = vld [vmem:[%s639_s1 + $0xf8] sm:$0xff]   ;;  %v22_v33 = vld [vmem:[%s640_s0 + $0x8] sm:$0xff]  ;;  %v394_v34 = vcombine.low %v21_v32, %v21_v32  ;;  %v395_v35 = vcombine.high %v21_v32, %v21_v32 }
   0xb   :  { %v501_v26 = vld [vmem:[%s639_s1 + $0x30] sm:$0xff]   ;;  %v505_v30 = vld [vmem:[%s639_s1 + $0x38] sm:$0xff]   ;;  %v396_v36 = vcombine.low %v22_v33, %v22_v33  ;;  %v397_v37 = vcombine.high %v22_v33, %v22_v33  ;;  %v430_v46 = vld [vmem:[%s641_s2] ss:$0 sm:$0xff] }
   0xc   :  { %436 = vmatpush3.bf16.msra.mxu0 %v485_v10  ;;  %v502_v27 = vld [vmem:[%s639_s1 + $0xb0] sm:$0xff]   ;;  %v506_v31 = vld [vmem:[%s639_s1 + $0xb8] sm:$0xff]   ;;  %325 = vmatprep.mubr.bf16.mxu0 %v395_v35 }
   0xd   :  { %458 = vmatpush3.bf16.msra.mxu1 %v486_v11  ;;  %437 = vmatprep.subr.bf16.mxu0 %v487_v12 }
   0xe   :  { %459 = vmatprep.subr.bf16.mxu1 %v488_v13  ;;  %365 = vmatprep.mubr.bf16.mxu1 %v397_v37 }
  0x10   :  { %438 = vmatpush3.bf16.msra.mxu0 %v489_v14 }
  0x11   :  { %460 = vmatpush3.bf16.msra.mxu1 %v490_v15  ;;  %439 = vmatprep.subr.bf16.mxu0 %v491_v16 }
  0x12   :  { %461 = vmatprep.subr.bf16.mxu1 %v492_v17 }
  0x14   :  { %440 = vmatpush3.bf16.msra.mxu0 %v493_v18 }
  0x15   :  { %462 = vmatpush3.bf16.msra.mxu1 %v494_v19  ;;  %441 = vmatprep.subr.bf16.mxu0 %v495_v20 }
  0x16   :  { %463 = vmatprep.subr.bf16.mxu1 %v496_v21 }
  0x18   :  { %442 = vmatpush3.bf16.msra.mxu0 %v497_v22 }
  0x19   :  { %464 = vmatpush3.bf16.msra.mxu1 %v498_v23  ;;  %443 = vmatprep.subr.bf16.mxu0 %v499_v24 }
  0x1a   :  { %465 = vmatprep.subr.bf16.mxu1 %v500_v25 }
  0x1c   :  { %444 = vmatpush3.bf16.msra.mxu0 %v501_v26 }
  0x1d   :  { %466 = vmatpush3.bf16.msra.mxu1 %v502_v27  ;;  %445 = vmatprep.subr.bf16.mxu0 %v503_v28 }
  0x1e   :  { %467 = vmatprep.subr.bf16.mxu1 %v504_v29 }
  0x20   :  { %446 = vmatpush3.bf16.msra.mxu0 %v505_v30 }
  0x21   :  { %468 = vmatpush3.bf16.msra.mxu1 %v506_v31 }
  0x23   :  { %326 = vmatmul.mubr.bf16.vlgmr.msra.gmra.mrb[0].mxu0 %v394_v34 }
  0x24   :  { %366 = vmatmul.mubr.bf16.vlgmr.msra.gmra.mrb[0].mxu1 %v396_v36 }
  0xf6   :  { %v447_v38 = vpop.f32.mrb[0].mxu0 }
  0xf7   :  { %v469_v39 = vpop.f32.mrb[0].mxu1  ;;  %v448_v40 = vpop.f32.mrb[1].mxu0 }
  0xf8   :  { %v470_v41 = vpop.f32.mrb[1].mxu1  ;;  %v449_v42 = vadd.f32 %v448_v40, %v447_v38  ;;  %v450_v44 = vpop.f32.mrb[2].mxu0 }
  0xf9   :  { %v471_v43 = vadd.f32 %v470_v41, %v469_v39  ;;  %v472_v45 = vpop.f32.mrb[2].mxu1  ;;  %v451_v47 = vpop.f32.mrb[3].mxu0 }
  0xfa   :  { %v473_v48 = vpop.f32.mrb[3].mxu1 }
  0xfb   :  { %v368_v49 = vadd.f32 %v471_v43, %v449_v42 }
  0xfd   :  { %v386_v50 = vadd.f32 %v430_v46, %v368_v49 }
  0xff   :  { %v387_v51 = vmax.f32 %v386_v50, 0.0 }
 0x101   :  { %v388_v52 = vpack.c.bf16 %v387_v51, %v387_v51 }
 0x103   :  { %389 = vst [vmem:[%s642_s3] sm:$0xf] %v388_v52 }

// kernel: cvae1_forward.17
= control target key start
LH: loop header
LB: loop body
LE: loop exit
PB: predicated region body
PF: predicated region fallthrough
CT: control target
= control target key end

     0   :  { %v193_v0 = vmov 0.0   ;;  %vm194_vm0 = vmmov 0   ;;  %s248_s1 = inlined_call_operand.vmem [shape: bf16[128,128], index: 1, kind: input, shape index: {}]   ;;  %s249_s0 = inlined_call_operand.vmem [shape: bf16[8,128], index: 0, kind: input, shape index: {}]   ;;  %s250_s2 = inlined_call_operand.vmem [shape: f32[1,128], index: 2, kind: input, shape index: {}]   ;;  %s251_s3 = inlined_call_operand.vmem [shape: f32[8,128], index: 3, kind: output, shape index: {}]  }
   0x1   :  { %163 = vmatprep.subr.bf16.mxu0 %v193_v0  ;;  %v185_v1 = vld [vmem:[%s248_s1] sm:$0xff]   ;;  %179 = vmatprep.mubr.msk.bf16.mxu0 %vm194_vm0, %v193_v0  ;;  %v186_v2 = vld [vmem:[%s248_s1 + $0x8] sm:$0xff]   ;;  %v187_v3 = vld [vmem:[%s248_s1 + $0x10] sm:$0xff]  }
   0x2   :  { %164 = vmatpush3.bf16.msra.mxu0 %v185_v1  ;;  %v188_v4 = vld [vmem:[%s248_s1 + $0x18] sm:$0xff]   ;;  %v189_v5 = vld [vmem:[%s248_s1 + $0x20] sm:$0xff]   ;;  %v190_v6 = vld [vmem:[%s248_s1 + $0x28] sm:$0xff]  }
   0x3   :  { %165 = vmatprep.subr.bf16.mxu0 %v193_v0  ;;  %v191_v7 = vld [vmem:[%s248_s1 + $0x30] sm:$0xff]   ;;  %v192_v8 = vld [vmem:[%s248_s1 + $0x38] sm:$0xff]   ;;  %v21_v9 = vld [vmem:[%s249_s0] sm:$0xf] }
   0x4   :  { %v153_v10 = vld [vmem:[%s250_s2] ss:$0 sm:$0xff] }
   0x6   :  { %166 = vmatpush3.bf16.msra.mxu0 %v186_v2 }
   0x7   :  { %167 = vmatprep.subr.bf16.mxu0 %v193_v0 }
   0xa   :  { %168 = vmatpush3.bf16.msra.mxu0 %v187_v3 }
   0xb   :  { %169 = vmatprep.subr.bf16.mxu0 %v193_v0 }
   0xe   :  { %170 = vmatpush3.bf16.msra.mxu0 %v188_v4 }
   0xf   :  { %171 = vmatprep.subr.bf16.mxu0 %v193_v0 }
  0x12   :  { %172 = vmatpush3.bf16.msra.mxu0 %v189_v5 }
  0x13   :  { %173 = vmatprep.subr.bf16.mxu0 %v193_v0 }
  0x16   :  { %174 = vmatpush3.bf16.msra.mxu0 %v190_v6 }
  0x17   :  { %175 = vmatprep.subr.bf16.mxu0 %v193_v0 }
  0x1a   :  { %176 = vmatpush3.bf16.msra.mxu0 %v191_v7 }
  0x1b   :  { %177 = vmatprep.subr.bf16.mxu0 %v193_v0 }
  0x1e   :  { %178 = vmatpush3.bf16.msra.mxu0 %v192_v8 }
  0x21   :  { %180 = vmatmul.mubr.bf16.vlgmr.msra.gmra.mrb[0].mxu0 %v21_v9 }
  0xf4   :  { %v120_v11 = vpop.f32.mrb[0].mxu0 }
  0xf5   :  { %v139_v12 = vadd.f32 %v153_v10, %v120_v11  ;;  %v181_v13 = vpop.f32.mrb[1].mxu0 }
  0xf6   :  { %v123_v14 = vpop.f32.mrb[2].mxu0 }
  0xf7   :  { %140 = vst [vmem:[%s251_s3] sm:$0xff] %v139_v12  ;;  %v182_v15 = vpop.f32.mrb[3].mxu0 }

// kernel: cvae1_forward.16
= control target key start
LH: loop header
LB: loop body
LE: loop exit
PB: predicated region body
PF: predicated region fallthrough
CT: control target
= control target key end

     0   :  { %v903_v40 = vmov 0.0   ;;  %vm904_vm0 = vmmov 0   ;;  %s1111_s1 = inlined_call_operand.vmem [shape: bf16[896,128], index: 1, kind: input, shape index: {}]   ;;  %s1112_s0 = inlined_call_operand.vmem [shape: bf16[8,896], index: 0, kind: input, shape index: {}]   ;;  %s1113_s2 = inlined_call_operand.vmem [shape: f32[1,128], index: 2, kind: input, shape index: {}]   ;;  %s1114_s3 = inlined_call_operand.vmem [shape: bf16[8,128], index: 3, kind: output, shape index: {}]  }
   0x1   :  { %v840_v0 = vld [vmem:[%s1111_s1 + $0x40] sm:$0xff]   ;;  %v844_v4 = vld [vmem:[%s1111_s1 + $0x48] sm:$0xff]   ;;  %v848_v8 = vld [vmem:[%s1111_s1 + $0x50] sm:$0xff]  }
   0x2   :  { %v841_v1 = vld [vmem:[%s1111_s1 + $0xc0] sm:$0xff]   ;;  %743 = vmatprep.subr.bf16.mxu0 %v840_v0  ;;  %v845_v5 = vld [vmem:[%s1111_s1 + $0xc8] sm:$0xff]   ;;  %v849_v9 = vld [vmem:[%s1111_s1 + $0xd0] sm:$0xff]  }
   0x3   :  { %v842_v2 = vld [vmem:[%s1111_s1] sm:$0xff]   ;;  %765 = vmatprep.subr.bf16.mxu1 %v841_v1  ;;  %v846_v6 = vld [vmem:[%s1111_s1 + $0x8] sm:$0xff]   ;;  %v850_v10 = vld [vmem:[%s1111_s1 + $0x10] sm:$0xff]  }
   0x4   :  { %v843_v3 = vld [vmem:[%s1111_s1 + $0x80] sm:$0xff]   ;;  %744 = vmatpush3.bf16.msra.mxu0 %v842_v2  ;;  %v847_v7 = vld [vmem:[%s1111_s1 + $0x88] sm:$0xff]   ;;  %v851_v11 = vld [vmem:[%s1111_s1 + $0x90] sm:$0xff]  }
   0x5   :  { %766 = vmatpush3.bf16.msra.mxu1 %v843_v3  ;;  %745 = vmatprep.subr.bf16.mxu0 %v844_v4  ;;  %v852_v12 = vld [vmem:[%s1111_s1 + $0x58] sm:$0xff]   ;;  %v856_v16 = vld [vmem:[%s1111_s1 + $0x60] sm:$0xff]   ;;  %v860_v20 = vld [vmem:[%s1111_s1 + $0x68] sm:$0xff]  }
   0x6   :  { %767 = vmatprep.subr.bf16.mxu1 %v845_v5  ;;  %v853_v13 = vld [vmem:[%s1111_s1 + $0xd8] sm:$0xff]   ;;  %v857_v17 = vld [vmem:[%s1111_s1 + $0xe0] sm:$0xff]   ;;  %v861_v21 = vld [vmem:[%s1111_s1 + $0xe8] sm:$0xff]  }
   0x7   :  { %v854_v14 = vld [vmem:[%s1111_s1 + $0x18] sm:$0xff]   ;;  %v858_v18 = vld [vmem:[%s1111_s1 + $0x20] sm:$0xff]   ;;  %v862_v22 = vld [vmem:[%s1111_s1 + $0x28] sm:$0xff]  }
   0x8   :  { %746 = vmatpush3.bf16.msra.mxu0 %v846_v6  ;;  %v855_v15 = vld [vmem:[%s1111_s1 + $0x98] sm:$0xff]   ;;  %v859_v19 = vld [vmem:[%s1111_s1 + $0xa0] sm:$0xff]   ;;  %v863_v23 = vld [vmem:[%s1111_s1 + $0xa8] sm:$0xff]  }
   0x9   :  { %768 = vmatpush3.bf16.msra.mxu1 %v847_v7  ;;  %747 = vmatprep.subr.bf16.mxu0 %v848_v8  ;;  %v864_v24 = vld [vmem:[%s1111_s1 + $0x70] sm:$0xff]   ;;  %v868_v28 = vld [vmem:[%s1111_s1 + $0x78] sm:$0xff]   ;;  %v21_v32 = vld [vmem:[%s1112_s0] sm:$0xff] }
   0xa   :  { %769 = vmatprep.subr.bf16.mxu1 %v849_v9  ;;  %v865_v25 = vld [vmem:[%s1111_s1 + $0xf0] sm:$0xff]   ;;  %v869_v29 = vld [vmem:[%s1111_s1 + $0xf8] sm:$0xff]   ;;  %v22_v33 = vld [vmem:[%s1112_s0 + $0x8] sm:$0xff]  ;;  %v679_v34 = vcombine.low %v21_v32, %v21_v32  ;;  %v680_v35 = vcombine.high %v21_v32, %v21_v32 }
   0xb   :  { %v866_v26 = vld [vmem:[%s1111_s1 + $0x30] sm:$0xff]   ;;  %v870_v30 = vld [vmem:[%s1111_s1 + $0x38] sm:$0xff]   ;;  %v681_v36 = vcombine.low %v22_v33, %v22_v33  ;;  %v682_v37 = vcombine.high %v22_v33, %v22_v33  ;;  %v876_v38 = vld [vmem:[%s1111_s1 + $0x140] sm:$0xff]  }
   0xc   :  { %748 = vmatpush3.bf16.msra.mxu0 %v850_v10  ;;  %v867_v27 = vld [vmem:[%s1111_s1 + $0xb0] sm:$0xff]   ;;  %v871_v31 = vld [vmem:[%s1111_s1 + $0xb8] sm:$0xff]   ;;  %v877_v39 = vld [vmem:[%s1111_s1 + $0x100] sm:$0xff]   ;;  %530 = vmatprep.mubr.bf16.mxu0 %v680_v35 }
   0xd   :  { %770 = vmatpush3.bf16.msra.mxu1 %v851_v11  ;;  %749 = vmatprep.subr.bf16.mxu0 %v852_v12  ;;  %v878_v41 = vld [vmem:[%s1111_s1 + $0x180] sm:$0xff]   ;;  %v879_v42 = vld [vmem:[%s1111_s1 + $0x148] sm:$0xff]   ;;  %v882_v45 = vld [vmem:[%s1111_s1 + $0x150] sm:$0xff]  }
   0xe   :  { %771 = vmatprep.subr.bf16.mxu1 %v853_v13  ;;  %570 = vmatprep.mubr.bf16.mxu1 %v682_v37  ;;  %v880_v43 = vld [vmem:[%s1111_s1 + $0x108] sm:$0xff]   ;;  %v884_v46 = vld [vmem:[%s1111_s1 + $0x190] sm:$0xff]   ;;  %v885_v48 = vld [vmem:[%s1111_s1 + $0x158] sm:$0xff]  }
   0xf   :  { %v881_v44 = vld [vmem:[%s1111_s1 + $0x188] sm:$0xff]   ;;  %v883_v47 = vld [vmem:[%s1111_s1 + $0x110] sm:$0xff]   ;;  %v887_v49 = vld [vmem:[%s1111_s1 + $0x198] sm:$0xff]  }
  0x10   :  { %750 = vmatpush3.bf16.msra.mxu0 %v854_v14  ;;  %v886_v50 = vld [vmem:[%s1111_s1 + $0x118] sm:$0xff]   ;;  %v888_v51 = vld [vmem:[%s1111_s1 + $0x160] sm:$0xff]   ;;  %v891_v54 = vld [vmem:[%s1111_s1 + $0x168] sm:$0xff]  }
  0x11   :  { %772 = vmatpush3.bf16.msra.mxu1 %v855_v15  ;;  %751 = vmatprep.subr.bf16.mxu0 %v856_v16  ;;  %v890_v52 = vld [vmem:[%s1111_s1 + $0x1a0] sm:$0xff]   ;;  %v893_v55 = vld [vmem:[%s1111_s1 + $0x1a8] sm:$0xff]   ;;  %v894_v57 = vld [vmem:[%s1111_s1 + $0x170] sm:$0xff]  }
  0x12   :  { %773 = vmatprep.subr.bf16.mxu1 %v857_v17  ;;  %v889_v53 = vld [vmem:[%s1111_s1 + $0x120] sm:$0xff]   ;;  %v892_v56 = vld [vmem:[%s1111_s1 + $0x128] sm:$0xff]   ;;  %v23_v58 = vld [vmem:[%s1112_s0 + $0x10] sm:$0xff] }
  0x13   :  { %v684_v59 = vcombine.high %v23_v58, %v23_v58  ;;  %v896_v60 = vld [vmem:[%s1111_s1 + $0x1b0] sm:$0xff]   ;;  %v897_v62 = vld [vmem:[%s1111_s1 + $0x178] sm:$0xff]   ;;  %v683_v2 = vcombine.low %v23_v58, %v23_v58 }
  0x14   :  { %752 = vmatpush3.bf16.msra.mxu0 %v858_v18  ;;  %v895_v61 = vld [vmem:[%s1111_s1 + $0x130] sm:$0xff]   ;;  %v901_v63 = vld [vmem:[%s1111_s1 + $0x1b8] sm:$0xff]  }
  0x15   :  { %774 = vmatpush3.bf16.msra.mxu1 %v859_v19  ;;  %753 = vmatprep.subr.bf16.mxu0 %v860_v20  ;;  %v898_v0 = vld [vmem:[%s1111_s1 + $0x138] sm:$0xff]  }
  0x16   :  { %775 = vmatprep.subr.bf16.mxu1 %v861_v21  ;;  %v902_v1 = vld [vmem:[%s1112_s0 + $0x18] ss:$0 sps:$4 sm:$0xff]  }
  0x18   :  { %754 = vmatpush3.bf16.msra.mxu0 %v862_v22 }
  0x19   :  { %776 = vmatpush3.bf16.msra.mxu1 %v863_v23  ;;  %755 = vmatprep.subr.bf16.mxu0 %v864_v24  ;;  %v742_v24 = vld [vmem:[%s1113_s2] ss:$0 sm:$0xff] }
  0x1a   :  { %777 = vmatprep.subr.bf16.mxu1 %v865_v25 }
  0x1c   :  { %756 = vmatpush3.bf16.msra.mxu0 %v866_v26 }
  0x1d   :  { %778 = vmatpush3.bf16.msra.mxu1 %v867_v27  ;;  %757 = vmatprep.subr.bf16.mxu0 %v868_v28 }
  0x1e   :  { %779 = vmatprep.subr.bf16.mxu1 %v869_v29 }
  0x20   :  { %758 = vmatpush3.bf16.msra.mxu0 %v870_v30 }
  0x21   :  { %780 = vmatpush3.bf16.msra.mxu1 %v871_v31  ;;  %787 = vmatprep.subr.bf16.mxu0 %v876_v38 }
  0x22   :  { %818 = vmatprep.subr.bf16.mxu1 %v903_v40 }
  0x23   :  { %531 = vmatmul.mubr.bf16.vlgmr.msra.gmra.mrb[0].mxu0 %v679_v34 }
  0x24   :  { %571 = vmatmul.mubr.bf16.vlgmr.msra.gmra.mrb[0].mxu1 %v681_v36  ;;  %788 = vmatpush3.bf16.msra.mxu0 %v877_v39 }
  0x25   :  { %819 = vmatpush3.bf16.msra.mxu1 %v878_v41  ;;  %789 = vmatprep.subr.bf16.mxu0 %v879_v42 }
  0x26   :  { %820 = vmatprep.subr.bf16.mxu1 %v903_v40  ;;  %834 = vmatprep.mubr.msk.bf16.mxu1 %vm904_vm0, %v903_v40 }
  0x27   :  { %610 = vmatprep.mubr.bf16.mxu0 %v684_v59 }
  0x28   :  { %790 = vmatpush3.bf16.msra.mxu0 %v880_v43 }
  0x29   :  { %821 = vmatpush3.bf16.msra.mxu1 %v881_v44  ;;  %791 = vmatprep.subr.bf16.mxu0 %v882_v45 }
  0x2a   :  { %822 = vmatprep.subr.bf16.mxu1 %v903_v40 }
  0x2c   :  { %792 = vmatpush3.bf16.msra.mxu0 %v883_v47 }
  0x2d   :  { %823 = vmatpush3.bf16.msra.mxu1 %v884_v46  ;;  %793 = vmatprep.subr.bf16.mxu0 %v885_v48 }
  0x2e   :  { %824 = vmatprep.subr.bf16.mxu1 %v903_v40 }
  0x30   :  { %794 = vmatpush3.bf16.msra.mxu0 %v886_v50 }
  0x31   :  { %825 = vmatpush3.bf16.msra.mxu1 %v887_v49  ;;  %795 = vmatprep.subr.bf16.mxu0 %v888_v51 }
  0x32   :  { %826 = vmatprep.subr.bf16.mxu1 %v903_v40 }
  0x34   :  { %796 = vmatpush3.bf16.msra.mxu0 %v889_v53 }
  0x35   :  { %827 = vmatpush3.bf16.msra.mxu1 %v890_v52  ;;  %797 = vmatprep.subr.bf16.mxu0 %v891_v54 }
  0x36   :  { %828 = vmatprep.subr.bf16.mxu1 %v903_v40 }
  0x38   :  { %798 = vmatpush3.bf16.msra.mxu0 %v892_v56 }
  0x39   :  { %829 = vmatpush3.bf16.msra.mxu1 %v893_v55  ;;  %799 = vmatprep.subr.bf16.mxu0 %v894_v57 }
  0x3a   :  { %830 = vmatprep.subr.bf16.mxu1 %v903_v40 }
  0x3c   :  { %800 = vmatpush3.bf16.msra.mxu0 %v895_v61 }
  0x3d   :  { %831 = vmatpush3.bf16.msra.mxu1 %v896_v60  ;;  %801 = vmatprep.subr.bf16.mxu0 %v897_v62 }
  0x3e   :  { %832 = vmatprep.subr.bf16.mxu1 %v903_v40 }
  0x40   :  { %802 = vmatpush3.bf16.msra.mxu0 %v898_v0 }
  0x41   :  { %833 = vmatpush3.bf16.msra.mxu1 %v901_v63 }
  0x43   :  { %611 = vmatmul.mubr.bf16.vlgmr.msra.gmra.mrb[4].mxu0 %v683_v2 }
  0x44   :  { %835 = vmatmul.mubr.bf16.vlgmr.msra.gmra.mrb[4].mxu1 %v902_v1 }
  0xf6   :  { %v759_v3 = vpop.f32.mrb[0].mxu0 }
  0xf7   :  { %v781_v4 = vpop.f32.mrb[0].mxu1  ;;  %v760_v5 = vpop.f32.mrb[1].mxu0 }
  0xf8   :  { %v782_v6 = vpop.f32.mrb[1].mxu1  ;;  %v761_v7 = vadd.f32 %v760_v5, %v759_v3  ;;  %v762_v9 = vpop.f32.mrb[2].mxu0 }
  0xf9   :  { %v783_v8 = vadd.f32 %v782_v6, %v781_v4  ;;  %v784_v10 = vpop.f32.mrb[2].mxu1  ;;  %v763_v11 = vpop.f32.mrb[3].mxu0 }
  0xfa   :  { %v785_v12 = vpop.f32.mrb[3].mxu1 }
  0xfb   :  { %v573_v13 = vadd.f32 %v783_v8, %v761_v7 }
 0x116   :  { %v803_v15 = vpop.f32.mrb[4].mxu0 }
 0x117   :  { %v652_v14 = vpop.f32.mrb[4].mxu1  ;;  %v804_v17 = vpop.f32.mrb[5].mxu0 }
 0x118   :  { %v836_v16 = vpop.f32.mrb[5].mxu1  ;;  %v805_v19 = vadd.f32 %v804_v17, %v803_v15  ;;  %v806_v20 = vpop.f32.mrb[6].mxu0 }
 0x119   :  { %v655_v18 = vpop.f32.mrb[6].mxu1  ;;  %v807_v22 = vpop.f32.mrb[7].mxu0 }
 0x11a   :  { %v837_v21 = vpop.f32.mrb[7].mxu1  ;;  %v613_v23 = vadd.f32 %v805_v19, %v573_v13 }
 0x11c   :  { %v653_v25 = vadd.f32 %v652_v14, %v613_v23 }
 0x11e   :  { %v671_v26 = vadd.f32 %v742_v24, %v653_v25 }
 0x120   :  { %v672_v27 = vmax.f32 %v671_v26, 0.0 }
 0x122   :  { %v673_v28 = vpack.c.bf16 %v672_v27, %v672_v27 }
 0x124   :  { %674 = vst [vmem:[%s1114_s3] sm:$0xf] %v673_v28 }

// kernel: cvae1_forward.18
= control target key start
LH: loop header
LB: loop body
LE: loop exit
PB: predicated region body
PF: predicated region fallthrough
CT: control target
= control target key end

     0   :  { %v195_v0 = vmov 0.0   ;;  %vm196_vm0 = vmmov 0   ;;  %s250_s1 = inlined_call_operand.vmem [shape: bf16[128,128], index: 1, kind: input, shape index: {}]   ;;  %s251_s0 = inlined_call_operand.vmem [shape: bf16[8,128], index: 0, kind: input, shape index: {}]   ;;  %s252_s2 = inlined_call_operand.vmem [shape: f32[1,128], index: 2, kind: input, shape index: {}]   ;;  %s253_s3 = inlined_call_operand.vmem [shape: bf16[8,128], index: 3, kind: output, shape index: {}]  }
   0x1   :  { %165 = vmatprep.subr.bf16.mxu0 %v195_v0  ;;  %v187_v1 = vld [vmem:[%s250_s1] sm:$0xff]   ;;  %181 = vmatprep.mubr.msk.bf16.mxu0 %vm196_vm0, %v195_v0  ;;  %v188_v2 = vld [vmem:[%s250_s1 + $0x8] sm:$0xff]   ;;  %v189_v3 = vld [vmem:[%s250_s1 + $0x10] sm:$0xff]  }
   0x2   :  { %166 = vmatpush3.bf16.msra.mxu0 %v187_v1  ;;  %v190_v4 = vld [vmem:[%s250_s1 + $0x18] sm:$0xff]   ;;  %v191_v5 = vld [vmem:[%s250_s1 + $0x20] sm:$0xff]   ;;  %v192_v6 = vld [vmem:[%s250_s1 + $0x28] sm:$0xff]  }
   0x3   :  { %167 = vmatprep.subr.bf16.mxu0 %v195_v0  ;;  %v193_v7 = vld [vmem:[%s250_s1 + $0x30] sm:$0xff]   ;;  %v194_v8 = vld [vmem:[%s250_s1 + $0x38] sm:$0xff]   ;;  %v21_v9 = vld [vmem:[%s251_s0] sm:$0xf] }
   0x4   :  { %v155_v10 = vld [vmem:[%s252_s2] ss:$0 sm:$0xff] }
   0x6   :  { %168 = vmatpush3.bf16.msra.mxu0 %v188_v2 }
   0x7   :  { %169 = vmatprep.subr.bf16.mxu0 %v195_v0 }
   0xa   :  { %170 = vmatpush3.bf16.msra.mxu0 %v189_v3 }
   0xb   :  { %171 = vmatprep.subr.bf16.mxu0 %v195_v0 }
   0xe   :  { %172 = vmatpush3.bf16.msra.mxu0 %v190_v4 }
   0xf   :  { %173 = vmatprep.subr.bf16.mxu0 %v195_v0 }
  0x12   :  { %174 = vmatpush3.bf16.msra.mxu0 %v191_v5 }
  0x13   :  { %175 = vmatprep.subr.bf16.mxu0 %v195_v0 }
  0x16   :  { %176 = vmatpush3.bf16.msra.mxu0 %v192_v6 }
  0x17   :  { %177 = vmatprep.subr.bf16.mxu0 %v195_v0 }
  0x1a   :  { %178 = vmatpush3.bf16.msra.mxu0 %v193_v7 }
  0x1b   :  { %179 = vmatprep.subr.bf16.mxu0 %v195_v0 }
  0x1e   :  { %180 = vmatpush3.bf16.msra.mxu0 %v194_v8 }
  0x21   :  { %182 = vmatmul.mubr.bf16.vlgmr.msra.gmra.mrb[0].mxu0 %v21_v9 }
  0xf4   :  { %v120_v11 = vpop.f32.mrb[0].mxu0 }
  0xf5   :  { %v139_v12 = vadd.f32 %v155_v10, %v120_v11  ;;  %v183_v13 = vpop.f32.mrb[1].mxu0 }
  0xf6   :  { %v123_v14 = vpop.f32.mrb[2].mxu0 }
  0xf7   :  { %v140_v15 = vmax.f32 %v139_v12, 0.0  ;;  %v184_v16 = vpop.f32.mrb[3].mxu0 }
  0xf9   :  { %v141_v17 = vpack.c.bf16 %v140_v15, %v140_v15 }
  0xfb   :  { %142 = vst [vmem:[%s253_s3] sm:$0xf] %v141_v17 }

// kernel: cvae1_forward.20
= control target key start
LH: loop header
LB: loop body
LE: loop exit
PB: predicated region body
PF: predicated region fallthrough
CT: control target
= control target key end

     0   :  { %s72_s0 = inlined_call_operand.vmem [shape: f32[8,128], index: 0, kind: input, shape index: {}]   ;;  %s73_s1 = inlined_call_operand.vmem [shape: f32[1,128], index: 1, kind: input, shape index: {}]   ;;  %s74_s2 = inlined_call_operand.vmem [shape: f32[1,128], index: 2, kind: input, shape index: {}]   ;;  %s75_s3 = inlined_call_operand.vmem [shape: bf16[8,128], index: 3, kind: output, shape index: {}]  }
   0x1   :  { %v14_v0 = vld [vmem:[%s72_s0] sm:$0xff] }
   0x2   :  { %v38_v1 = vld [vmem:[%s73_s1] ss:$0 sm:$0xff] }
   0x3   :  { %v39_v2 = vld [vmem:[%s74_s2] ss:$0 sm:$0xff]  ;;  %v22_v3 = vmul.f32 %v38_v1, %v14_v0 }
   0x5   :  { %v30_v4 = vadd.f32 %v39_v2, %v22_v3 }
   0x7   :  { %v31_v5 = vmax.f32 %v30_v4, 0.0 }
   0x9   :  { %v32_v6 = vpack.c.bf16 %v31_v5, %v31_v5 }
   0xb   :  { %33 = vst [vmem:[%s75_s3] sm:$0xf] %v32_v6 }

// kernel: cvae1_forward.19
= control target key start
LH: loop header
LB: loop body
LE: loop exit
PB: predicated region body
PF: predicated region fallthrough
CT: control target
= control target key end

     0   :  { %v667_v36 = vmov 0.0   ;;  %vm668_vm0 = vmmov 0   ;;  %s824_s1 = inlined_call_operand.vmem [shape: bf16[640,128], index: 1, kind: input, shape index: {}]   ;;  %s825_s0 = inlined_call_operand.vmem [shape: bf16[8,640], index: 0, kind: input, shape index: {}]   ;;  %s826_s2 = inlined_call_operand.vmem [shape: f32[1,128], index: 2, kind: input, shape index: {}]   ;;  %s827_s3 = inlined_call_operand.vmem [shape: f32[8,128], index: 3, kind: output, shape index: {}]  }
   0x1   :  { %v622_v0 = vld [vmem:[%s824_s1 + $0x40] sm:$0xff]   ;;  %v626_v4 = vld [vmem:[%s824_s1 + $0x48] sm:$0xff]   ;;  %v630_v8 = vld [vmem:[%s824_s1 + $0x50] sm:$0xff]  }
   0x2   :  { %v623_v1 = vld [vmem:[%s824_s1 + $0xc0] sm:$0xff]   ;;  %547 = vmatprep.subr.bf16.mxu0 %v622_v0  ;;  %v627_v5 = vld [vmem:[%s824_s1 + $0xc8] sm:$0xff]   ;;  %v631_v9 = vld [vmem:[%s824_s1 + $0xd0] sm:$0xff]  }
   0x3   :  { %v624_v2 = vld [vmem:[%s824_s1] sm:$0xff]   ;;  %569 = vmatprep.subr.bf16.mxu1 %v623_v1  ;;  %v628_v6 = vld [vmem:[%s824_s1 + $0x8] sm:$0xff]   ;;  %v632_v10 = vld [vmem:[%s824_s1 + $0x10] sm:$0xff]  }
   0x4   :  { %v625_v3 = vld [vmem:[%s824_s1 + $0x80] sm:$0xff]   ;;  %548 = vmatpush3.bf16.msra.mxu0 %v624_v2  ;;  %v629_v7 = vld [vmem:[%s824_s1 + $0x88] sm:$0xff]   ;;  %v633_v11 = vld [vmem:[%s824_s1 + $0x90] sm:$0xff]  }
   0x5   :  { %570 = vmatpush3.bf16.msra.mxu1 %v625_v3  ;;  %549 = vmatprep.subr.bf16.mxu0 %v626_v4  ;;  %v634_v12 = vld [vmem:[%s824_s1 + $0x58] sm:$0xff]   ;;  %v638_v16 = vld [vmem:[%s824_s1 + $0x60] sm:$0xff]   ;;  %v642_v20 = vld [vmem:[%s824_s1 + $0x68] sm:$0xff]  }
   0x6   :  { %571 = vmatprep.subr.bf16.mxu1 %v627_v5  ;;  %v635_v13 = vld [vmem:[%s824_s1 + $0xd8] sm:$0xff]   ;;  %v639_v17 = vld [vmem:[%s824_s1 + $0xe0] sm:$0xff]   ;;  %v643_v21 = vld [vmem:[%s824_s1 + $0xe8] sm:$0xff]  }
   0x7   :  { %v636_v14 = vld [vmem:[%s824_s1 + $0x18] sm:$0xff]   ;;  %v640_v18 = vld [vmem:[%s824_s1 + $0x20] sm:$0xff]   ;;  %v644_v22 = vld [vmem:[%s824_s1 + $0x28] sm:$0xff]  }
   0x8   :  { %550 = vmatpush3.bf16.msra.mxu0 %v628_v6  ;;  %v637_v15 = vld [vmem:[%s824_s1 + $0x98] sm:$0xff]   ;;  %v641_v19 = vld [vmem:[%s824_s1 + $0xa0] sm:$0xff]   ;;  %v645_v23 = vld [vmem:[%s824_s1 + $0xa8] sm:$0xff]  }
   0x9   :  { %572 = vmatpush3.bf16.msra.mxu1 %v629_v7  ;;  %551 = vmatprep.subr.bf16.mxu0 %v630_v8  ;;  %v646_v24 = vld [vmem:[%s824_s1 + $0x70] sm:$0xff]   ;;  %v650_v28 = vld [vmem:[%s824_s1 + $0x78] sm:$0xff]   ;;  %v21_v32 = vld [vmem:[%s825_s0] sm:$0xff] }
   0xa   :  { %573 = vmatprep.subr.bf16.mxu1 %v631_v9  ;;  %v647_v25 = vld [vmem:[%s824_s1 + $0xf0] sm:$0xff]   ;;  %v651_v29 = vld [vmem:[%s824_s1 + $0xf8] sm:$0xff]   ;;  %v501_v33 = vcombine.low %v21_v32, %v21_v32  ;;  %v502_v34 = vcombine.high %v21_v32, %v21_v32  ;;  %v22_v35 = vld [vmem:[%s825_s0 + $0x8] sm:$0xff] }
   0xb   :  { %v648_v26 = vld [vmem:[%s824_s1 + $0x30] sm:$0xff]   ;;  %v652_v30 = vld [vmem:[%s824_s1 + $0x38] sm:$0xff]   ;;  %v503_v37 = vcombine.low %v22_v35, %v22_v35  ;;  %v504_v38 = vcombine.high %v22_v35, %v22_v35  ;;  %v659_v39 = vld [vmem:[%s824_s1 + $0x100] sm:$0xff]  }
   0xc   :  { %552 = vmatpush3.bf16.msra.mxu0 %v632_v10  ;;  %v649_v27 = vld [vmem:[%s824_s1 + $0xb0] sm:$0xff]   ;;  %v653_v31 = vld [vmem:[%s824_s1 + $0xb8] sm:$0xff]   ;;  %394 = vmatprep.mubr.bf16.mxu0 %v502_v34  ;;  %v660_v40 = vld [vmem:[%s824_s1 + $0x108] sm:$0xff]  }
   0xd   :  { %574 = vmatpush3.bf16.msra.mxu1 %v633_v11  ;;  %553 = vmatprep.subr.bf16.mxu0 %v634_v12  ;;  %v661_v41 = vld [vmem:[%s824_s1 + $0x110] sm:$0xff]   ;;  %v662_v42 = vld [vmem:[%s824_s1 + $0x118] sm:$0xff]   ;;  %v663_v43 = vld [vmem:[%s824_s1 + $0x120] sm:$0xff]  }
   0xe   :  { %575 = vmatprep.subr.bf16.mxu1 %v635_v13  ;;  %434 = vmatprep.mubr.bf16.mxu1 %v504_v38  ;;  %v664_v44 = vld [vmem:[%s824_s1 + $0x128] sm:$0xff]   ;;  %v665_v45 = vld [vmem:[%s824_s1 + $0x130] sm:$0xff]   ;;  %v666_v46 = vld [vmem:[%s824_s1 + $0x138] sm:$0xff]  }
   0xf   :  { %v656_v47 = vld [vmem:[%s825_s0 + $0x10] ss:$0 sps:$4 sm:$0xff]   ;;  %v546_v60 = vld [vmem:[%s826_s2] ss:$0 sm:$0xff] }
  0x10   :  { %554 = vmatpush3.bf16.msra.mxu0 %v636_v14 }
  0x11   :  { %576 = vmatpush3.bf16.msra.mxu1 %v637_v15  ;;  %555 = vmatprep.subr.bf16.mxu0 %v638_v16 }
  0x12   :  { %577 = vmatprep.subr.bf16.mxu1 %v639_v17 }
  0x14   :  { %556 = vmatpush3.bf16.msra.mxu0 %v640_v18 }
  0x15   :  { %578 = vmatpush3.bf16.msra.mxu1 %v641_v19  ;;  %557 = vmatprep.subr.bf16.mxu0 %v642_v20 }
  0x16   :  { %579 = vmatprep.subr.bf16.mxu1 %v643_v21 }
  0x18   :  { %558 = vmatpush3.bf16.msra.mxu0 %v644_v22 }
  0x19   :  { %580 = vmatpush3.bf16.msra.mxu1 %v645_v23  ;;  %559 = vmatprep.subr.bf16.mxu0 %v646_v24 }
  0x1a   :  { %581 = vmatprep.subr.bf16.mxu1 %v647_v25 }
  0x1c   :  { %560 = vmatpush3.bf16.msra.mxu0 %v648_v26 }
  0x1d   :  { %582 = vmatpush3.bf16.msra.mxu1 %v649_v27  ;;  %561 = vmatprep.subr.bf16.mxu0 %v650_v28 }
  0x1e   :  { %583 = vmatprep.subr.bf16.mxu1 %v651_v29 }
  0x20   :  { %562 = vmatpush3.bf16.msra.mxu0 %v652_v30 }
  0x21   :  { %584 = vmatpush3.bf16.msra.mxu1 %v653_v31  ;;  %600 = vmatprep.subr.bf16.mxu0 %v667_v36 }
  0x23   :  { %395 = vmatmul.mubr.bf16.vlgmr.msra.gmra.mrb[0].mxu0 %v501_v33 }
  0x24   :  { %435 = vmatmul.mubr.bf16.vlgmr.msra.gmra.mrb[0].mxu1 %v503_v37  ;;  %601 = vmatpush3.bf16.msra.mxu0 %v659_v39 }
  0x25   :  { %602 = vmatprep.subr.bf16.mxu0 %v667_v36  ;;  %616 = vmatprep.mubr.msk.bf16.mxu0 %vm668_vm0, %v667_v36 }
  0x28   :  { %603 = vmatpush3.bf16.msra.mxu0 %v660_v40 }
  0x29   :  { %604 = vmatprep.subr.bf16.mxu0 %v667_v36 }
  0x2c   :  { %605 = vmatpush3.bf16.msra.mxu0 %v661_v41 }
  0x2d   :  { %606 = vmatprep.subr.bf16.mxu0 %v667_v36 }
  0x30   :  { %607 = vmatpush3.bf16.msra.mxu0 %v662_v42 }
  0x31   :  { %608 = vmatprep.subr.bf16.mxu0 %v667_v36 }
  0x34   :  { %609 = vmatpush3.bf16.msra.mxu0 %v663_v43 }
  0x35   :  { %610 = vmatprep.subr.bf16.mxu0 %v667_v36 }
  0x38   :  { %611 = vmatpush3.bf16.msra.mxu0 %v664_v44 }
  0x39   :  { %612 = vmatprep.subr.bf16.mxu0 %v667_v36 }
  0x3c   :  { %613 = vmatpush3.bf16.msra.mxu0 %v665_v45 }
  0x3d   :  { %614 = vmatprep.subr.bf16.mxu0 %v667_v36 }
  0x40   :  { %615 = vmatpush3.bf16.msra.mxu0 %v666_v46 }
  0x43   :  { %617 = vmatmul.mubr.bf16.vlgmr.msra.gmra.mrb[4].mxu0 %v656_v47 }
  0xf6   :  { %v563_v48 = vpop.f32.mrb[0].mxu0 }
  0xf7   :  { %v585_v49 = vpop.f32.mrb[0].mxu1  ;;  %v564_v50 = vpop.f32.mrb[1].mxu0 }
  0xf8   :  { %v565_v51 = vadd.f32 %v564_v50, %v563_v48  ;;  %v586_v52 = vpop.f32.mrb[1].mxu1  ;;  %v566_v53 = vpop.f32.mrb[2].mxu0 }
  0xf9   :  { %v587_v54 = vadd.f32 %v586_v52, %v585_v49  ;;  %v567_v55 = vpop.f32.mrb[3].mxu0  ;;  %v588_v56 = vpop.f32.mrb[2].mxu1 }
  0xfa   :  { %v589_v57 = vpop.f32.mrb[3].mxu1 }
  0xfb   :  { %v437_v58 = vadd.f32 %v587_v54, %v565_v51 }
 0x116   :  { %v476_v59 = vpop.f32.mrb[4].mxu0 }
 0x117   :  { %v477_v61 = vadd.f32 %v476_v59, %v437_v58  ;;  %v618_v62 = vpop.f32.mrb[5].mxu0 }
 0x118   :  { %v479_v63 = vpop.f32.mrb[6].mxu0 }
 0x119   :  { %v495_v0 = vadd.f32 %v546_v60, %v477_v61  ;;  %v619_v1 = vpop.f32.mrb[7].mxu0 }
 0x11b   :  { %496 = vst [vmem:[%s827_s3] sm:$0xff] %v495_v0 }

// kernel: cvae1_forward.21
= control target key start
LH: loop header
LB: loop body
LE: loop exit
PB: predicated region body
PF: predicated region fallthrough
CT: control target
= control target key end

     0   :  { %s637_s1 = inlined_call_operand.vmem [shape: bf16[384,128], index: 1, kind: input, shape index: {}]   ;;  %s638_s0 = inlined_call_operand.vmem [shape: bf16[32,384], index: 0, kind: input, shape index: {}]   ;;  %s639_s2 = inlined_call_operand.vmem [shape: f32[1,128], index: 2, kind: input, shape index: {}]   ;;  %s640_s3 = inlined_call_operand.vmem [shape: f32[32,128], index: 3, kind: output, shape index: {}]  }
   0x1   :  { %v480_v0 = vld [vmem:[%s637_s1 + $0x40] sm:$0xff]   ;;  %v483_v3 = vld [vmem:[%s637_s1 + $0x48] sm:$0xff]   ;;  %v486_v6 = vld [vmem:[%s637_s1 + $0x50] sm:$0xff]  }
   0x2   :  { %v481_v1 = vld [vmem:[%s637_s1] sm:$0xff]   ;;  %422 = vmatprep.subr.bf16.mxu0 %v480_v0  ;;  %v484_v4 = vld [vmem:[%s637_s1 + $0x8] sm:$0xff]   ;;  %v487_v7 = vld [vmem:[%s637_s1 + $0x10] sm:$0xff]  }
   0x3   :  { %v482_v2 = vld [vmem:[%s637_s1 + $0x80] sm:$0xff]   ;;  %423 = vmatpush3.bf16.msra.mxu0 %v481_v1  ;;  %v485_v5 = vld [vmem:[%s637_s1 + $0x88] sm:$0xff]   ;;  %v488_v8 = vld [vmem:[%s637_s1 + $0x90] sm:$0xff]  }
   0x4   :  { %460 = vmatprep.subr.bf16.mxu1 %v482_v2  ;;  %424 = vmatprep.subr.bf16.mxu0 %v483_v3  ;;  %v489_v9 = vld [vmem:[%s637_s1 + $0x58] sm:$0xff]   ;;  %v492_v12 = vld [vmem:[%s637_s1 + $0x60] sm:$0xff]   ;;  %v495_v15 = vld [vmem:[%s637_s1 + $0x68] sm:$0xff]  }
   0x5   :  { %461 = vmatpush3.bf16.msra.mxu1 %v482_v2  ;;  %v490_v10 = vld [vmem:[%s637_s1 + $0x18] sm:$0xff]   ;;  %v494_v13 = vld [vmem:[%s637_s1 + $0xa0] sm:$0xff]   ;;  %v497_v16 = vld [vmem:[%s637_s1 + $0xa8] sm:$0xff]  }
   0x6   :  { %462 = vmatprep.subr.bf16.mxu1 %v485_v5  ;;  %v491_v11 = vld [vmem:[%s637_s1 + $0x98] sm:$0xff]   ;;  %v493_v14 = vld [vmem:[%s637_s1 + $0x20] sm:$0xff]   ;;  %v496_v17 = vld [vmem:[%s637_s1 + $0x28] sm:$0xff]  }
   0x7   :  { %425 = vmatpush3.bf16.msra.mxu0 %v484_v4  ;;  %v498_v18 = vld [vmem:[%s637_s1 + $0x70] sm:$0xff]   ;;  %v501_v21 = vld [vmem:[%s637_s1 + $0x78] sm:$0xff]   ;;  %v504_v26 = vld [vmem:[%s638_s0] ss:$12 sps:$4 sm:$0xff]  }
   0x8   :  { %426 = vmatprep.subr.bf16.mxu0 %v486_v6  ;;  %v499_v19 = vld [vmem:[%s637_s1 + $0x30] sm:$0xff]   ;;  %v503_v22 = vld [vmem:[%s637_s1 + $0xb8] sm:$0xff]   ;;  %v508_v28 = vld [vmem:[%s638_s0 + $0x20] ss:$12 sps:$4 sm:$0xff]  }
   0x9   :  { %463 = vmatpush3.bf16.msra.mxu1 %v485_v5  ;;  %v500_v20 = vld [vmem:[%s637_s1 + $0xb0] sm:$0xff]   ;;  %v502_v25 = vld [vmem:[%s637_s1 + $0x38] sm:$0xff]   ;;  %v421_v37 = vld [vmem:[%s639_s2] ss:$0 sm:$0xff] }
   0xa   :  { %464 = vmatprep.subr.bf16.mxu1 %v488_v8  ;;  %v506_v23 = vld [vmem:[%s638_s0 + $0x4] ss:$12 sps:$4 sm:$0xff]   ;;  %v507_v24 = vld [vmem:[%s638_s0 + $0x8] ss:$12 sps:$4 sm:$0xff]  }
   0xb   :  { %427 = vmatpush3.bf16.msra.mxu0 %v487_v7  ;;  %291 = vmatprep.mubr.bf16.mxu0 %v506_v23  ;;  %v509_v27 = vld [vmem:[%s638_s0 + $0x1c] ss:$12 sps:$4 sm:$0xff]   ;;  %v511_v29 = vld [vmem:[%s638_s0 + $0x18] ss:$12 sps:$4 sm:$0xff]  }
   0xc   :  { %428 = vmatprep.subr.bf16.mxu0 %v489_v9  ;;  %476 = vmatprep.mubr.bf16.mxu1 %v507_v24 }
   0xd   :  { %465 = vmatpush3.bf16.msra.mxu1 %v488_v8 }
   0xe   :  { %466 = vmatprep.subr.bf16.mxu1 %v491_v11 }
   0xf   :  { %429 = vmatpush3.bf16.msra.mxu0 %v490_v10 }
  0x10   :  { %430 = vmatprep.subr.bf16.mxu0 %v492_v12 }
  0x11   :  { %467 = vmatpush3.bf16.msra.mxu1 %v491_v11 }
  0x12   :  { %468 = vmatprep.subr.bf16.mxu1 %v494_v13 }
  0x13   :  { %431 = vmatpush3.bf16.msra.mxu0 %v493_v14 }
  0x14   :  { %432 = vmatprep.subr.bf16.mxu0 %v495_v15 }
  0x15   :  { %469 = vmatpush3.bf16.msra.mxu1 %v494_v13 }
  0x16   :  { %470 = vmatprep.subr.bf16.mxu1 %v497_v16 }
  0x17   :  { %433 = vmatpush3.bf16.msra.mxu0 %v496_v17 }
  0x18   :  { %434 = vmatprep.subr.bf16.mxu0 %v498_v18 }
  0x19   :  { %471 = vmatpush3.bf16.msra.mxu1 %v497_v16 }
  0x1a   :  { %472 = vmatprep.subr.bf16.mxu1 %v500_v20 }
  0x1b   :  { %435 = vmatpush3.bf16.msra.mxu0 %v499_v19 }
  0x1c   :  { %436 = vmatprep.subr.bf16.mxu0 %v501_v21 }
  0x1d   :  { %473 = vmatpush3.bf16.msra.mxu1 %v500_v20 }
  0x1e   :  { %474 = vmatprep.subr.bf16.mxu1 %v503_v22 }
  0x1f   :  { %437 = vmatpush3.bf16.msra.mxu0 %v502_v25 }
  0x21   :  { %475 = vmatpush3.bf16.msra.mxu1 %v503_v22 }
  0x22   :  { %292 = vmatmul.mubr.bf16.vlgmr.msra.gmra.mrb[0].mxu0 %v504_v26 }
  0x23   :  { %299 = vmatprep.mubr.bf16.mxu0 %v509_v27 }
  0x24   :  { %477 = vmatmul.mubr.bf16.vlgmr.msra.gmra.mrb[0].mxu1 %v508_v28 }
  0x2a   :  { %300 = vmatmul.mubr.bf16.gmra.mrb[4].mxu0 %v511_v29 }
  0xf5   :  { %v438_v30 = vpop.f32.mrb[0].mxu0 }
  0xf6   :  { %v439_v31 = vpop.f32.mrb[1].mxu0 }
  0xf7   :  { %v440_v32 = vadd.f32 %v439_v31, %v438_v30  ;;  %v441_v33 = vpop.f32.mrb[2].mxu0  ;;  %v478_v34 = vpop.f32.mrb[0].mxu1 }
  0xf8   :  { %v442_v35 = vpop.f32.mrb[3].mxu0  ;;  %v342_v36 = vpop.f32.mrb[1].mxu1 }
  0xf9   :  { %v443_v38 = vadd.f32 %v442_v35, %v441_v33  ;;  %v343_v39 = vadd.f32 %v440_v32, %v342_v36  ;;  %v479_v40 = vpop.f32.mrb[2].mxu1 }
  0xfa   :  { %v345_v41 = vpop.f32.mrb[3].mxu1 }
  0xfb   :  { %v379_v42 = vadd.f32 %v421_v37, %v343_v39  ;;  %v346_v43 = vadd.f32 %v443_v38, %v345_v41 }
  0xfd   :  { %383 = vst [vmem:[%s640_s3] sm:$0xff] %v379_v42  ;;  %v380_v44 = vadd.f32 %v421_v37, %v346_v43  ;;  %v444_v45 = vpop.f32.mrb[4].mxu0 }
  0xfe   :  { %v445_v46 = vpop.f32.mrb[5].mxu0 }
  0xff   :  { %384 = vst [vmem:[%s640_s3 + $0x8] sm:$0xff] %v380_v44  ;;  %v446_v47 = vadd.f32 %v445_v46, %v444_v45  ;;  %v447_v48 = vpop.f32.mrb[6].mxu0 }
 0x100   :  { %v448_v49 = vpop.f32.mrb[7].mxu0 }
 0x101   :  { %v351_v50 = vadd.f32 %v478_v34, %v446_v47  ;;  %v449_v51 = vadd.f32 %v448_v49, %v447_v48 }
 0x103   :  { %v381_v52 = vadd.f32 %v421_v37, %v351_v50  ;;  %v354_v53 = vadd.f32 %v479_v40, %v449_v51 }
 0x105   :  { %385 = vst [vmem:[%s640_s3 + $0x10] sm:$0xff] %v381_v52  ;;  %v382_v54 = vadd.f32 %v421_v37, %v354_v53 }
 0x107   :  { %386 = vst [vmem:[%s640_s3 + $0x18] sm:$0xff] %v382_v54 }

// kernel: cvae1_forward.22
= control target key start
LH: loop header
LB: loop body
LE: loop exit
PB: predicated region body
PF: predicated region fallthrough
CT: control target
= control target key end

     0   :  { %s133_s0 = inlined_call_operand.vmem [shape: f32[32,128], index: 0, kind: input, shape index: {}]   ;;  %s134_s1 = inlined_call_operand.vmem [shape: f32[1,128], index: 1, kind: input, shape index: {}]   ;;  %s135_s2 = inlined_call_operand.vmem [shape: f32[1,128], index: 2, kind: input, shape index: {}]   ;;  %s136_s3 = inlined_call_operand.vmem [shape: bf16[32,128], index: 3, kind: output, shape index: {}]  }
   0x1   :  { %v14_v0 = vld [vmem:[%s133_s0] sm:$0xff]  ;;  %v15_v1 = vld [vmem:[%s133_s0 + $0x8] sm:$0xff]  ;;  %v16_v6 = vld [vmem:[%s133_s0 + $0x10] sm:$0xff] }
   0x2   :  { %v68_v2 = vld [vmem:[%s134_s1] ss:$0 sm:$0xff]  ;;  %v17_v7 = vld [vmem:[%s133_s0 + $0x18] sm:$0xff] }
   0x3   :  { %v25_v3 = vmul.f32 %v68_v2, %v14_v0  ;;  %v26_v4 = vmul.f32 %v68_v2, %v15_v1  ;;  %v69_v5 = vld [vmem:[%s135_s2] ss:$0 sm:$0xff]  ;;  %v27_v8 = vmul.f32 %v68_v2, %v16_v6  ;;  %v28_v9 = vmul.f32 %v68_v2, %v17_v7 }
   0x5   :  { %v36_v10 = vadd.f32 %v69_v5, %v25_v3  ;;  %v37_v11 = vadd.f32 %v69_v5, %v26_v4  ;;  %v38_v12 = vadd.f32 %v69_v5, %v27_v8  ;;  %v39_v13 = vadd.f32 %v69_v5, %v28_v9 }
   0x7   :  { %v40_v14 = vmax.f32 %v36_v10, 0.0  ;;  %v41_v15 = vmax.f32 %v37_v11, 0.0  ;;  %v42_v16 = vmax.f32 %v38_v12, 0.0  ;;  %v43_v17 = vmax.f32 %v39_v13, 0.0 }
   0x9   :  { %v81_v18 = vpack.c.bf16 %v41_v15, %v40_v14  ;;  %v86_v19 = vpack.c.bf16 %v43_v17, %v42_v16 }
   0xb   :  { %82 = vst [vmem:[%s136_s3] sm:$0xff] %v81_v18   ;;  %88 = vst [vmem:[%s136_s3 + $0x8] sm:$0xff] %v86_v19  }

// kernel: cvae1_forward.23
= control target key start
LH: loop header
LB: loop body
LE: loop exit
PB: predicated region body
PF: predicated region fallthrough
CT: control target
= control target key end

     0   :  { %s804_s1 = inlined_call_operand.vmem [shape: bf16[256,128], index: 1, kind: input, shape index: {}]   ;;  %s805_s0 = inlined_call_operand.vmem [shape: bf16[128,256], index: 0, kind: input, shape index: {}]   ;;  %s806_s2 = inlined_call_operand.vmem [shape: f32[1,128], index: 2, kind: input, shape index: {}]   ;;  %s807_s3 = inlined_call_operand.vmem [shape: f32[128,128], index: 3, kind: output, shape index: {}]  }
   0x1   :  { %v579_v0 = vld [vmem:[%s804_s1 + $0x40] sm:$0xff]   ;;  %v581_v2 = vld [vmem:[%s804_s1 + $0x48] sm:$0xff]   ;;  %v583_v4 = vld [vmem:[%s804_s1 + $0x50] sm:$0xff]  }
   0x2   :  { %v580_v1 = vld [vmem:[%s804_s1] sm:$0xff]   ;;  %499 = vmatprep.subr.bf16.mxu0 %v579_v0  ;;  %563 = vmatprep.subr.bf16.mxu1 %v579_v0  ;;  %v582_v3 = vld [vmem:[%s804_s1 + $0x8] sm:$0xff]   ;;  %v584_v5 = vld [vmem:[%s804_s1 + $0x10] sm:$0xff]  }
   0x3   :  { %500 = vmatpush3.bf16.msra.mxu0 %v580_v1  ;;  %571 = vmatpush3.bf16.msra.mxu1 %v580_v1  ;;  %v585_v6 = vld [vmem:[%s804_s1 + $0x58] sm:$0xff]   ;;  %v587_v8 = vld [vmem:[%s804_s1 + $0x60] sm:$0xff]   ;;  %v589_v10 = vld [vmem:[%s804_s1 + $0x68] sm:$0xff]  }
   0x4   :  { %501 = vmatprep.subr.bf16.mxu0 %v581_v2  ;;  %564 = vmatprep.subr.bf16.mxu1 %v581_v2  ;;  %v586_v7 = vld [vmem:[%s804_s1 + $0x18] sm:$0xff]   ;;  %v588_v9 = vld [vmem:[%s804_s1 + $0x20] sm:$0xff]   ;;  %v590_v13 = vld [vmem:[%s804_s1 + $0x28] sm:$0xff]  }
   0x5   :  { %v597_v11 = vld [vmem:[%s805_s0 + $0x4] ss:$8 sps:$4 sm:$0xff]   ;;  %v591_v14 = vld [vmem:[%s804_s1 + $0x70] sm:$0xff]   ;;  %v593_v16 = vld [vmem:[%s804_s1 + $0x78] sm:$0xff]  }
   0x6   :  { %v600_v12 = vld [vmem:[%s805_s0 + $0x44] ss:$8 sps:$4 sm:$0xff]   ;;  %307 = vmatprep.mubr.bf16.mxu0 %v597_v11  ;;  %v592_v15 = vld [vmem:[%s804_s1 + $0x30] sm:$0xff]   ;;  %v594_v17 = vld [vmem:[%s804_s1 + $0x38] sm:$0xff]  }
   0x7   :  { %502 = vmatpush3.bf16.msra.mxu0 %v582_v3  ;;  %572 = vmatpush3.bf16.msra.mxu1 %v582_v3  ;;  %v595_v18 = vld [vmem:[%s805_s0] ss:$8 sps:$4 sm:$0xff]   ;;  %v601_v20 = vld [vmem:[%s805_s0 + $0x14] ss:$8 sps:$4 sm:$0xff]   ;;  %v605_v22 = vld [vmem:[%s805_s0 + $0x10] ss:$8 sps:$4 sm:$0xff]  }
   0x8   :  { %503 = vmatprep.subr.bf16.mxu0 %v583_v4  ;;  %565 = vmatprep.subr.bf16.mxu1 %v583_v4  ;;  %v598_v19 = vld [vmem:[%s805_s0 + $0x40] ss:$8 sps:$4 sm:$0xff]   ;;  %v603_v21 = vld [vmem:[%s805_s0 + $0x54] ss:$8 sps:$4 sm:$0xff]   ;;  %v606_v23 = vld [vmem:[%s805_s0 + $0x50] ss:$8 sps:$4 sm:$0xff]  }
   0x9   :  { %339 = vmatprep.mubr.bf16.mxu1 %v600_v12  ;;  %v607_v24 = vld [vmem:[%s805_s0 + $0x24] ss:$8 sps:$4 sm:$0xff]   ;;  %v611_v26 = vld [vmem:[%s805_s0 + $0x20] ss:$8 sps:$4 sm:$0xff]   ;;  %v613_v28 = vld [vmem:[%s805_s0 + $0x34] ss:$8 sps:$4 sm:$0xff]  }
   0xa   :  { %v609_v25 = vld [vmem:[%s805_s0 + $0x64] ss:$8 sps:$4 sm:$0xff]   ;;  %v612_v27 = vld [vmem:[%s805_s0 + $0x60] ss:$8 sps:$4 sm:$0xff]   ;;  %v615_v29 = vld [vmem:[%s805_s0 + $0x74] ss:$8 sps:$4 sm:$0xff]  }
   0xb   :  { %504 = vmatpush3.bf16.msra.mxu0 %v584_v5  ;;  %573 = vmatpush3.bf16.msra.mxu1 %v584_v5  ;;  %v617_v30 = vld [vmem:[%s805_s0 + $0x30] ss:$8 sps:$4 sm:$0xff]   ;;  %v738_v35 = vld [vmem:[%s806_s2] ss:$0 sm:$0xff] }
   0xc   :  { %505 = vmatprep.subr.bf16.mxu0 %v585_v6  ;;  %566 = vmatprep.subr.bf16.mxu1 %v585_v6  ;;  %v618_v31 = vld [vmem:[%s805_s0 + $0x70] ss:$8 sps:$4 sm:$0xff]  }
   0xf   :  { %506 = vmatpush3.bf16.msra.mxu0 %v586_v7  ;;  %574 = vmatpush3.bf16.msra.mxu1 %v586_v7 }
  0x10   :  { %507 = vmatprep.subr.bf16.mxu0 %v587_v8  ;;  %567 = vmatprep.subr.bf16.mxu1 %v587_v8 }
  0x13   :  { %508 = vmatpush3.bf16.msra.mxu0 %v588_v9  ;;  %575 = vmatpush3.bf16.msra.mxu1 %v588_v9 }
  0x14   :  { %509 = vmatprep.subr.bf16.mxu0 %v589_v10  ;;  %568 = vmatprep.subr.bf16.mxu1 %v589_v10 }
  0x17   :  { %510 = vmatpush3.bf16.msra.mxu0 %v590_v13  ;;  %576 = vmatpush3.bf16.msra.mxu1 %v590_v13 }
  0x18   :  { %511 = vmatprep.subr.bf16.mxu0 %v591_v14  ;;  %569 = vmatprep.subr.bf16.mxu1 %v591_v14 }
  0x1b   :  { %512 = vmatpush3.bf16.msra.mxu0 %v592_v15  ;;  %577 = vmatpush3.bf16.msra.mxu1 %v592_v15 }
  0x1c   :  { %513 = vmatprep.subr.bf16.mxu0 %v593_v16  ;;  %570 = vmatprep.subr.bf16.mxu1 %v593_v16 }
  0x1f   :  { %514 = vmatpush3.bf16.msra.mxu0 %v594_v17  ;;  %578 = vmatpush3.bf16.msra.mxu1 %v594_v17 }
  0x22   :  { %308 = vmatmul.mubr.bf16.vlgmr.msra.gmra.mrb[0].mxu0 %v595_v18  ;;  %340 = vmatmul.mubr.bf16.vlgmr.msra.gmra.mrb[0].mxu1 %v598_v19 }
  0x23   :  { %315 = vmatprep.mubr.bf16.mxu0 %v601_v20  ;;  %347 = vmatprep.mubr.bf16.mxu1 %v603_v21 }
  0x2a   :  { %316 = vmatmul.mubr.bf16.gmra.mrb[4].mxu0 %v605_v22  ;;  %348 = vmatmul.mubr.bf16.gmra.mrb[4].mxu1 %v606_v23 }
  0x2b   :  { %323 = vmatprep.mubr.bf16.mxu0 %v607_v24  ;;  %355 = vmatprep.mubr.bf16.mxu1 %v609_v25 }
  0x32   :  { %324 = vmatmul.mubr.bf16.gmra.mrb[8].mxu0 %v611_v26  ;;  %356 = vmatmul.mubr.bf16.gmra.mrb[8].mxu1 %v612_v27 }
  0x33   :  { %331 = vmatprep.mubr.bf16.mxu0 %v613_v28  ;;  %363 = vmatprep.mubr.bf16.mxu1 %v615_v29 }
  0x3a   :  { %332 = vmatmul.mubr.bf16.gmra.mrb[12].mxu0 %v617_v30  ;;  %364 = vmatmul.mubr.bf16.gmra.mrb[12].mxu1 %v618_v31 }
  0xf5   :  { %v515_v32 = vpop.f32.mrb[0].mxu0  ;;  %v539_v33 = vpop.f32.mrb[0].mxu1 }
  0xf6   :  { %v516_v34 = vpop.f32.mrb[1].mxu0  ;;  %v540_v36 = vpop.f32.mrb[1].mxu1 }
  0xf7   :  { %v517_v37 = vadd.f32 %v516_v34, %v515_v32  ;;  %v541_v38 = vadd.f32 %v540_v36, %v539_v33  ;;  %v518_v39 = vpop.f32.mrb[2].mxu0  ;;  %v542_v40 = vpop.f32.mrb[2].mxu1 }
  0xf8   :  { %v519_v41 = vpop.f32.mrb[3].mxu0  ;;  %v543_v42 = vpop.f32.mrb[3].mxu1 }
  0xf9   :  { %v430_v43 = vadd.f32 %v517_v37, %v738_v35  ;;  %v438_v44 = vadd.f32 %v541_v38, %v738_v35  ;;  %v520_v45 = vadd.f32 %v519_v41, %v518_v39  ;;  %v544_v46 = vadd.f32 %v543_v42, %v542_v40 }
  0xfb   :  { %446 = vst [vmem:[%s807_s3] sm:$0xff] %v430_v43  ;;  %454 = vst [vmem:[%s807_s3 + $0x40] sm:$0xff] %v438_v44  ;;  %v431_v47 = vadd.f32 %v520_v45, %v738_v35  ;;  %v439_v48 = vadd.f32 %v544_v46, %v738_v35 }
  0xfd   :  { %447 = vst [vmem:[%s807_s3 + $0x8] sm:$0xff] %v431_v47  ;;  %455 = vst [vmem:[%s807_s3 + $0x48] sm:$0xff] %v439_v48  ;;  %v521_v49 = vpop.f32.mrb[4].mxu0  ;;  %v545_v50 = vpop.f32.mrb[4].mxu1 }
  0xfe   :  { %v522_v51 = vpop.f32.mrb[5].mxu0  ;;  %v546_v52 = vpop.f32.mrb[5].mxu1 }
  0xff   :  { %v523_v53 = vadd.f32 %v522_v51, %v521_v49  ;;  %v547_v54 = vadd.f32 %v546_v52, %v545_v50  ;;  %v524_v55 = vpop.f32.mrb[6].mxu0  ;;  %v548_v56 = vpop.f32.mrb[6].mxu1 }
 0x100   :  { %v525_v57 = vpop.f32.mrb[7].mxu0  ;;  %v549_v58 = vpop.f32.mrb[7].mxu1 }
 0x101   :  { %v432_v59 = vadd.f32 %v523_v53, %v738_v35  ;;  %v440_v60 = vadd.f32 %v547_v54, %v738_v35  ;;  %v526_v61 = vadd.f32 %v525_v57, %v524_v55  ;;  %v550_v62 = vadd.f32 %v549_v58, %v548_v56 }
 0x103   :  { %448 = vst [vmem:[%s807_s3 + $0x10] sm:$0xff] %v432_v59  ;;  %456 = vst [vmem:[%s807_s3 + $0x50] sm:$0xff] %v440_v60  ;;  %v433_v63 = vadd.f32 %v526_v61, %v738_v35  ;;  %v441_v0 = vadd.f32 %v550_v62, %v738_v35 }
 0x105   :  { %449 = vst [vmem:[%s807_s3 + $0x18] sm:$0xff] %v433_v63  ;;  %457 = vst [vmem:[%s807_s3 + $0x58] sm:$0xff] %v441_v0  ;;  %v527_v1 = vpop.f32.mrb[8].mxu0  ;;  %v551_v2 = vpop.f32.mrb[8].mxu1 }
 0x106   :  { %v528_v3 = vpop.f32.mrb[9].mxu0  ;;  %v552_v4 = vpop.f32.mrb[9].mxu1 }
 0x107   :  { %v529_v5 = vadd.f32 %v528_v3, %v527_v1  ;;  %v553_v6 = vadd.f32 %v552_v4, %v551_v2  ;;  %v530_v7 = vpop.f32.mrb[10].mxu0  ;;  %v554_v8 = vpop.f32.mrb[10].mxu1 }
 0x108   :  { %v531_v9 = vpop.f32.mrb[11].mxu0  ;;  %v555_v10 = vpop.f32.mrb[11].mxu1 }
 0x109   :  { %v434_v11 = vadd.f32 %v529_v5, %v738_v35  ;;  %v442_v12 = vadd.f32 %v553_v6, %v738_v35  ;;  %v532_v13 = vadd.f32 %v531_v9, %v530_v7  ;;  %v556_v14 = vadd.f32 %v555_v10, %v554_v8 }
 0x10b   :  { %450 = vst [vmem:[%s807_s3 + $0x20] sm:$0xff] %v434_v11  ;;  %458 = vst [vmem:[%s807_s3 + $0x60] sm:$0xff] %v442_v12  ;;  %v435_v15 = vadd.f32 %v532_v13, %v738_v35  ;;  %v443_v16 = vadd.f32 %v556_v14, %v738_v35 }
 0x10d   :  { %451 = vst [vmem:[%s807_s3 + $0x28] sm:$0xff] %v435_v15  ;;  %459 = vst [vmem:[%s807_s3 + $0x68] sm:$0xff] %v443_v16  ;;  %v533_v17 = vpop.f32.mrb[12].mxu0  ;;  %v557_v18 = vpop.f32.mrb[12].mxu1 }
 0x10e   :  { %v534_v19 = vpop.f32.mrb[13].mxu0  ;;  %v558_v20 = vpop.f32.mrb[13].mxu1 }
 0x10f   :  { %v535_v21 = vadd.f32 %v534_v19, %v533_v17  ;;  %v559_v22 = vadd.f32 %v558_v20, %v557_v18  ;;  %v536_v23 = vpop.f32.mrb[14].mxu0  ;;  %v560_v24 = vpop.f32.mrb[14].mxu1 }
 0x110   :  { %v537_v25 = vpop.f32.mrb[15].mxu0  ;;  %v561_v26 = vpop.f32.mrb[15].mxu1 }
 0x111   :  { %v436_v27 = vadd.f32 %v535_v21, %v738_v35  ;;  %v444_v28 = vadd.f32 %v559_v22, %v738_v35  ;;  %v538_v29 = vadd.f32 %v537_v25, %v536_v23  ;;  %v562_v30 = vadd.f32 %v561_v26, %v560_v24 }
 0x113   :  { %452 = vst [vmem:[%s807_s3 + $0x30] sm:$0xff] %v436_v27  ;;  %460 = vst [vmem:[%s807_s3 + $0x70] sm:$0xff] %v444_v28  ;;  %v437_v31 = vadd.f32 %v538_v29, %v738_v35  ;;  %v445_v32 = vadd.f32 %v562_v30, %v738_v35 }
 0x115   :  { %453 = vst [vmem:[%s807_s3 + $0x38] sm:$0xff] %v437_v31  ;;  %461 = vst [vmem:[%s807_s3 + $0x78] sm:$0xff] %v445_v32 }

// kernel: cvae1_forward.24
= control target key start
LH: loop header
LB: loop body
LE: loop exit
PB: predicated region body
PF: predicated region fallthrough
CT: control target
= control target key end

     0   :  { %s391_s0 = inlined_call_operand.vmem [shape: f32[128,128], index: 0, kind: input, shape index: {}]   ;;  %s392_s1 = inlined_call_operand.vmem [shape: f32[1,128], index: 1, kind: input, shape index: {}]   ;;  %s393_s2 = inlined_call_operand.vmem [shape: f32[1,128], index: 2, kind: input, shape index: {}]   ;;  %s394_s3 = inlined_call_operand.vmem [shape: bf16[128,128], index: 3, kind: output, shape index: {}]  }
   0x1   :  { %v14_v0 = vld [vmem:[%s391_s0] sm:$0xff]  ;;  %v15_v1 = vld [vmem:[%s391_s0 + $0x8] sm:$0xff]  ;;  %v16_v6 = vld [vmem:[%s391_s0 + $0x10] sm:$0xff] }
   0x2   :  { %v286_v2 = vld [vmem:[%s392_s1] ss:$0 sm:$0xff]  ;;  %v17_v7 = vld [vmem:[%s391_s0 + $0x18] sm:$0xff]  ;;  %v19_v11 = vld [vmem:[%s391_s0 + $0x28] sm:$0xff] }
   0x3   :  { %v37_v3 = vmul.f32 %v286_v2, %v14_v0  ;;  %v38_v4 = vmul.f32 %v286_v2, %v15_v1  ;;  %v293_v5 = vld [vmem:[%s393_s2] ss:$0 sm:$0xff]  ;;  %v39_v8 = vmul.f32 %v286_v2, %v16_v6  ;;  %v40_v9 = vmul.f32 %v286_v2, %v17_v7  ;;  %v20_v12 = vld [vmem:[%s391_s0 + $0x30] sm:$0xff]  ;;  %v21_v17 = vld [vmem:[%s391_s0 + $0x38] sm:$0xff] }
   0x4   :  { %v18_v10 = vld [vmem:[%s391_s0 + $0x20] sm:$0xff]  ;;  %v42_v16 = vmul.f32 %v286_v2, %v19_v11  ;;  %v43_v20 = vmul.f32 %v286_v2, %v20_v12  ;;  %v44_v21 = vmul.f32 %v286_v2, %v21_v17  ;;  %v23_v27 = vld [vmem:[%s391_s0 + $0x48] sm:$0xff]  ;;  %v24_v32 = vld [vmem:[%s391_s0 + $0x50] sm:$0xff] }
   0x5   :  { %v60_v13 = vadd.f32 %v293_v5, %v37_v3  ;;  %v61_v14 = vadd.f32 %v293_v5, %v38_v4  ;;  %v41_v15 = vmul.f32 %v286_v2, %v18_v10  ;;  %v62_v18 = vadd.f32 %v293_v5, %v39_v8  ;;  %v22_v22 = vld [vmem:[%s391_s0 + $0x40] sm:$0xff]  ;;  %v25_v33 = vld [vmem:[%s391_s0 + $0x58] sm:$0xff]  ;;  %v27_v39 = vld [vmem:[%s391_s0 + $0x68] sm:$0xff] }
   0x6   :  { %v63_v19 = vadd.f32 %v293_v5, %v40_v9  ;;  %v65_v26 = vadd.f32 %v293_v5, %v42_v16  ;;  %v66_v30 = vadd.f32 %v293_v5, %v43_v20  ;;  %v67_v31 = vadd.f32 %v293_v5, %v44_v21  ;;  %v26_v38 = vld [vmem:[%s391_s0 + $0x60] sm:$0xff]  ;;  %v28_v44 = vld [vmem:[%s391_s0 + $0x70] sm:$0xff]  ;;  %v29_v49 = vld [vmem:[%s391_s0 + $0x78] sm:$0xff] }
   0x7   :  { %v76_v23 = vmax.f32 %v60_v13, 0.0  ;;  %v77_v24 = vmax.f32 %v61_v14, 0.0  ;;  %v64_v25 = vadd.f32 %v293_v5, %v41_v15  ;;  %v78_v28 = vmax.f32 %v62_v18, 0.0 }
   0x8   :  { %v79_v29 = vmax.f32 %v63_v19, 0.0  ;;  %v81_v36 = vmax.f32 %v65_v26, 0.0  ;;  %v45_v37 = vmul.f32 %v286_v2, %v22_v22  ;;  %v82_v41 = vmax.f32 %v66_v30, 0.0 }
   0x9   :  { %v213_v34 = vpack.c.bf16 %v77_v24, %v76_v23  ;;  %v80_v35 = vmax.f32 %v64_v25, 0.0  ;;  %v83_v42 = vmax.f32 %v67_v31, 0.0  ;;  %v46_v43 = vmul.f32 %v286_v2, %v23_v27 }
   0xa   :  { %v218_v40 = vpack.c.bf16 %v79_v29, %v78_v28  ;;  %v68_v46 = vadd.f32 %v293_v5, %v45_v37  ;;  %v47_v47 = vmul.f32 %v286_v2, %v24_v32  ;;  %v48_v48 = vmul.f32 %v286_v2, %v25_v33 }
   0xb   :  { %214 = vst [vmem:[%s394_s3] sm:$0xff] %v213_v34   ;;  %v223_v45 = vpack.c.bf16 %v81_v36, %v80_v35  ;;  %v228_v50 = vpack.c.bf16 %v83_v42, %v82_v41  ;;  %v69_v51 = vadd.f32 %v293_v5, %v46_v43  ;;  %v49_v52 = vmul.f32 %v286_v2, %v26_v38 }
   0xc   :  { %250 = vst [vmem:[%s394_s3 + $0x8] sm:$0xff] %v218_v40   ;;  %v50_v53 = vmul.f32 %v286_v2, %v27_v39  ;;  %v84_v54 = vmax.f32 %v68_v46, 0.0  ;;  %v70_v55 = vadd.f32 %v293_v5, %v47_v47  ;;  %v71_v56 = vadd.f32 %v293_v5, %v48_v48 }
   0xd   :  { %251 = vst [vmem:[%s394_s3 + $0x10] sm:$0xff] %v223_v45   ;;  %v51_v57 = vmul.f32 %v286_v2, %v28_v44  ;;  %252 = vst [vmem:[%s394_s3 + $0x18] sm:$0xff] %v228_v50   ;;  %v85_v58 = vmax.f32 %v69_v51, 0.0  ;;  %v72_v59 = vadd.f32 %v293_v5, %v49_v52  ;;  %v52_v61 = vmul.f32 %v286_v2, %v29_v49 }
   0xe   :  { %v73_v60 = vadd.f32 %v293_v5, %v50_v53  ;;  %v86_v62 = vmax.f32 %v70_v55, 0.0  ;;  %v87_v63 = vmax.f32 %v71_v56, 0.0 }
   0xf   :  { %v74_v0 = vadd.f32 %v293_v5, %v51_v57  ;;  %v233_v1 = vpack.c.bf16 %v85_v58, %v84_v54  ;;  %v88_v3 = vmax.f32 %v72_v59, 0.0  ;;  %v75_v6 = vadd.f32 %v293_v5, %v52_v61 }
  0x10   :  { %v89_v4 = vmax.f32 %v73_v60, 0.0  ;;  %v238_v7 = vpack.c.bf16 %v87_v63, %v86_v62 }
  0x11   :  { %v90_v8 = vmax.f32 %v74_v0, 0.0  ;;  %253 = vst [vmem:[%s394_s3 + $0x20] sm:$0xff] %v233_v1   ;;  %v91_v10 = vmax.f32 %v75_v6, 0.0 }
  0x12   :  { %v243_v9 = vpack.c.bf16 %v89_v4, %v88_v3  ;;  %254 = vst [vmem:[%s394_s3 + $0x28] sm:$0xff] %v238_v7  }
  0x13   :  { %v248_v2 = vpack.c.bf16 %v91_v10, %v90_v8 }
  0x14   :  { %255 = vst [vmem:[%s394_s3 + $0x30] sm:$0xff] %v243_v9  }
  0x15   :  { %256 = vst [vmem:[%s394_s3 + $0x38] sm:$0xff] %v248_v2  }

// kernel: cvae1_forward.25
= control target key start
LH: loop header
LB: loop body
LE: loop exit
PB: predicated region body
PF: predicated region fallthrough
CT: control target
= control target key end

     0   :  { %s1532_s12 = smov 0   ;;  %s1534_s13 = smov 0   ;;  %s1709_s0 = inlined_call_operand.vmem [shape: bf16[512,128], index: 0, kind: input, shape index: {}]   ;;  %s1710_s1 = inlined_call_operand.vmem [shape: bf16[128,128], index: 1, kind: input, shape index: {}]   ;;  %s1711_s2 = inlined_call_operand.vmem [shape: f32[1,128], index: 2, kind: input, shape index: {}]   ;;  %s1712_s3 = inlined_call_operand.vmem [shape: f32[512,128], index: 3, kind: output, shape index: {}]  }
   0x1   :  { %s1536_s14 = smov 0  }
   0x2 LB: > { %s32_s15 = sadd.s32 1, %s1506_s13  ;;  %p1160_p0 = scmp.ge.s32.totalorder %s1510_s14, 1  ;;  %s1510_s14 = sphi %s1536_s14, %s13_s14   ;;  %s1506_s13 = sphi %s1534_s13, %s1714_s13   ;;  %s1502_s12 = sphi %s1532_s12, %s1713_s12  }
   0x3   : > { %p34_p1 = scmp.ge.s32.totalorder %s32_s15, 2  ;;  %p188_p2 = scmp.lt.s32.totalorder %s1510_s14, 3 }
   0x5   : > { %s1716_s15 = smov (%p34_p1, %s32_s15), 0  ;;  %p189_p3 = pnand %p1160_p0, %p188_p2 }
   0x6   : > { %v1336_v0 = vld [vmem:[%s1710_s1] sm:$0xff] (!%p189_p3)   ;;  %s1161_s18 = sshll.u32 (!%p189_p3), %s1502_s12, 5  ;;  %v1337_v1 = vld [vmem:[%s1710_s1 + $0x8] sm:$0xff] (!%p189_p3)   ;;  %v1338_v2 = vld [vmem:[%s1710_s1 + $0x10] sm:$0xff] (!%p189_p3)  }
   0x7   : > { %192 = sbr.rel (%p189_p3) target bundleno = 339 (0x153), region = 32  ;;  %p230_p4 = scmp.lt.s32.totalorder (!%p189_p3), %s1161_s18, 63  ;;  %1248 = vmatprep.subr.bf16.mxu0 (!%p189_p3), %v1336_v0  ;;  %1296 = vmatprep.subr.bf16.mxu1 (!%p189_p3), %v1336_v0  ;;  %v1339_v3 = vld [vmem:[%s1710_s1 + $0x18] sm:$0xff] (!%p189_p3)   ;;  %v1340_v6 = vld [vmem:[%s1710_s1 + $0x20] sm:$0xff] (!%p189_p3)   ;;  %v1341_v7 = vld [vmem:[%s1710_s1 + $0x28] sm:$0xff] (!%p189_p3)  }
   0x8   : > { %1249 = vmatpush3.bf16.msra.mxu0 (!%p189_p3), %v1336_v0  ;;  %1304 = vmatpush3.bf16.msra.mxu1 (!%p189_p3), %v1336_v0  ;;  %v1342_v8 = vld [vmem:[%s1710_s1 + $0x30] sm:$0xff] (!%p189_p3)   ;;  %v1343_v9 = vld [vmem:[%s1710_s1 + $0x38] sm:$0xff] (!%p189_p3)   ;;  %v1601_v24 = vld [vmem:[%s1711_s2] ss:$0 sm:$0xff] (!%p189_p3) }
   0x9   : > { %1250 = vmatprep.subr.bf16.mxu0 (!%p189_p3), %v1337_v1  ;;  %1297 = vmatprep.subr.bf16.mxu1 (!%p189_p3), %v1337_v1 }
   0xc   : > { %1251 = vmatpush3.bf16.msra.mxu0 (!%p189_p3), %v1337_v1  ;;  %1305 = vmatpush3.bf16.msra.mxu1 (!%p189_p3), %v1337_v1 }
   0xd   : > { %1252 = vmatprep.subr.bf16.mxu0 (!%p189_p3), %v1338_v2  ;;  %1298 = vmatprep.subr.bf16.mxu1 (!%p189_p3), %v1338_v2 }
   0xe   : > { %s1718_s18 = smov (!%p230_p4, %s1161_s18), 63 }
   0xf   : > { %s1162_s23 = sshll.u32 %s1718_s18, 2  ;;  %s1164_s12 = sshll.u32 %s1718_s18, 3 }
  0x10   : > { %s1565_s26 = scalar_lea.vmem %s1709_s0, %s1162_s23  ;;  %1253 = vmatpush3.bf16.msra.mxu0 %v1338_v2  ;;  %1306 = vmatpush3.bf16.msra.mxu1 %v1338_v2  ;;  %s1631_s18 = scalar_lea.vmem %s1712_s3, %s1164_s12 }
  0x11   : > { %v1344_v4 = vld [vmem:[%s1565_s26] sm:$0xff]   ;;  %1254 = vmatprep.subr.bf16.mxu0 %v1339_v3  ;;  %1299 = vmatprep.subr.bf16.mxu1 %v1339_v3  ;;  %v1346_v10 = vld [vmem:[%s1565_s26 + $0x8] sm:$0xff]   ;;  %v1348_v12 = vld [vmem:[%s1565_s26 + $0x10] sm:$0xff]  }
  0x12   : > { %v1345_v5 = vld [vmem:[%s1565_s26 + $0x40] sm:$0xff]   ;;  %1264 = vmatprep.mubr.bf16.mxu0 %v1344_v4  ;;  %v1347_v11 = vld [vmem:[%s1565_s26 + $0x48] sm:$0xff]   ;;  %v1349_v13 = vld [vmem:[%s1565_s26 + $0x50] sm:$0xff]  }
  0x13   : > { %1280 = vmatprep.mubr.bf16.mxu1 %v1345_v5  ;;  %v1350_v14 = vld [vmem:[%s1565_s26 + $0x18] sm:$0xff]   ;;  %v1352_v16 = vld [vmem:[%s1565_s26 + $0x20] sm:$0xff]   ;;  %v1354_v18 = vld [vmem:[%s1565_s26 + $0x28] sm:$0xff]  }
  0x14   : > { %1255 = vmatpush3.bf16.msra.mxu0 %v1339_v3  ;;  %1307 = vmatpush3.bf16.msra.mxu1 %v1339_v3  ;;  %v1351_v15 = vld [vmem:[%s1565_s26 + $0x58] sm:$0xff]   ;;  %v1353_v17 = vld [vmem:[%s1565_s26 + $0x60] sm:$0xff]   ;;  %v1355_v19 = vld [vmem:[%s1565_s26 + $0x68] sm:$0xff]  }
  0x15   : > { %1256 = vmatprep.subr.bf16.mxu0 %v1340_v6  ;;  %1300 = vmatprep.subr.bf16.mxu1 %v1340_v6  ;;  %v1356_v20 = vld [vmem:[%s1565_s26 + $0x30] sm:$0xff]   ;;  %v1358_v22 = vld [vmem:[%s1565_s26 + $0x38] sm:$0xff]  }
  0x16   : > { %v1357_v21 = vld [vmem:[%s1565_s26 + $0x70] sm:$0xff]   ;;  %v1359_v23 = vld [vmem:[%s1565_s26 + $0x78] sm:$0xff]  }
  0x18   : > { %1257 = vmatpush3.bf16.msra.mxu0 %v1340_v6  ;;  %1308 = vmatpush3.bf16.msra.mxu1 %v1340_v6 }
  0x19   : > { %1258 = vmatprep.subr.bf16.mxu0 %v1341_v7  ;;  %1301 = vmatprep.subr.bf16.mxu1 %v1341_v7 }
  0x1c   : > { %1259 = vmatpush3.bf16.msra.mxu0 %v1341_v7  ;;  %1309 = vmatpush3.bf16.msra.mxu1 %v1341_v7 }
  0x1d   : > { %1260 = vmatprep.subr.bf16.mxu0 %v1342_v8  ;;  %1302 = vmatprep.subr.bf16.mxu1 %v1342_v8 }
  0x20   : > { %1261 = vmatpush3.bf16.msra.mxu0 %v1342_v8  ;;  %1310 = vmatpush3.bf16.msra.mxu1 %v1342_v8 }
  0x21   : > { %1262 = vmatprep.subr.bf16.mxu0 %v1343_v9  ;;  %1303 = vmatprep.subr.bf16.mxu1 %v1343_v9 }
  0x24   : > { %1263 = vmatpush3.bf16.msra.mxu0 %v1343_v9  ;;  %1311 = vmatpush3.bf16.msra.mxu1 %v1343_v9 }
  0x27   : > { %1265 = vmatmul.mubr.bf16.vlgmr.msra.gmra.mrb[0].mxu0 %v1346_v10  ;;  %1281 = vmatmul.mubr.bf16.vlgmr.msra.gmra.mrb[0].mxu1 %v1347_v11 }
  0x28   : > { %1268 = vmatprep.mubr.bf16.mxu0 %v1348_v12  ;;  %1284 = vmatprep.mubr.bf16.mxu1 %v1349_v13 }
  0x2f   : > { %1269 = vmatmul.mubr.bf16.gmra.mrb[4].mxu0 %v1350_v14  ;;  %1285 = vmatmul.mubr.bf16.gmra.mrb[4].mxu1 %v1351_v15 }
  0x30   : > { %1272 = vmatprep.mubr.bf16.mxu0 %v1352_v16  ;;  %1288 = vmatprep.mubr.bf16.mxu1 %v1353_v17 }
  0x37   : > { %1273 = vmatmul.mubr.bf16.gmra.mrb[8].mxu0 %v1354_v18  ;;  %1289 = vmatmul.mubr.bf16.gmra.mrb[8].mxu1 %v1355_v19 }
  0x38   : > { %1276 = vmatprep.mubr.bf16.mxu0 %v1356_v20  ;;  %1292 = vmatprep.mubr.bf16.mxu1 %v1357_v21 }
  0x3f   : > { %1277 = vmatmul.mubr.bf16.gmra.mrb[12].mxu0 %v1358_v22  ;;  %1293 = vmatmul.mubr.bf16.gmra.mrb[12].mxu1 %v1359_v23 }
  0xfa   : > { %v1266_v25 = vpop.f32.mrb[0].mxu0  ;;  %v1282_v26 = vpop.f32.mrb[0].mxu1 }
  0xfb   : > { %v789_v27 = vadd.f32 %v1266_v25, %v1601_v24  ;;  %v805_v28 = vadd.f32 %v1282_v26, %v1601_v24  ;;  %v554_v29 = vpop.f32.mrb[1].mxu0  ;;  %v618_v30 = vpop.f32.mrb[1].mxu1 }
  0xfc   : > { %v787_v31 = vadd.f32 %v1601_v24, %v554_v29  ;;  %v803_v32 = vadd.f32 %v1601_v24, %v618_v30  ;;  %v1267_v33 = vpop.f32.mrb[2].mxu0  ;;  %v1283_v34 = vpop.f32.mrb[2].mxu1 }
  0xfd   : > { %v1192_v35 = vmul.f32 -1.442695, %v789_v27  ;;  %v1208_v36 = vmul.f32 -1.442695, %v805_v28  ;;  %v790_v37 = vadd.f32 %v1267_v33, %v1601_v24  ;;  %v806_v38 = vadd.f32 %v1283_v34, %v1601_v24  ;;  %v557_v39 = vpop.f32.mrb[3].mxu0  ;;  %v621_v40 = vpop.f32.mrb[3].mxu1 }
  0xfe   : > { %v1190_v41 = vmul.f32 -1.442695, %v787_v31  ;;  %v1206_v42 = vmul.f32 -1.442695, %v803_v32  ;;  %v788_v43 = vadd.f32 %v1601_v24, %v557_v39  ;;  %v804_v44 = vadd.f32 %v1601_v24, %v621_v40 }
  0xff   : > { %1360 = vpow2.f32 %v1192_v35  ;;  %v1193_v45 = vmul.f32 -1.442695, %v790_v37  ;;  %v1209_v46 = vmul.f32 -1.442695, %v806_v38 }
 0x100   : > { %1362 = vpow2.f32 %v1208_v36  ;;  %v1191_v47 = vmul.f32 -1.442695, %v788_v43  ;;  %v1207_v48 = vmul.f32 -1.442695, %v804_v44 }
 0x101   : > { %1364 = vpow2.f32 %v1190_v41 }
 0x102   : > { %1366 = vpow2.f32 %v1206_v42  ;;  %v1270_v49 = vpop.f32.mrb[4].mxu0  ;;  %v1286_v50 = vpop.f32.mrb[4].mxu1 }
 0x103   : > { %1368 = vpow2.f32 %v1193_v45  ;;  %v793_v51 = vadd.f32 %v1270_v49, %v1601_v24  ;;  %v809_v52 = vadd.f32 %v1286_v50, %v1601_v24  ;;  %v570_v53 = vpop.f32.mrb[5].mxu0  ;;  %v634_v54 = vpop.f32.mrb[5].mxu1 }
 0x104   : > { %1370 = vpow2.f32 %v1209_v46  ;;  %v791_v55 = vadd.f32 %v1601_v24, %v570_v53  ;;  %v807_v56 = vadd.f32 %v1601_v24, %v634_v54  ;;  %v1271_v57 = vpop.f32.mrb[6].mxu0  ;;  %v1287_v58 = vpop.f32.mrb[6].mxu1 }
 0x105   : > { %1372 = vpow2.f32 %v1191_v47  ;;  %v1196_v59 = vmul.f32 -1.442695, %v793_v51  ;;  %v1212_v60 = vmul.f32 -1.442695, %v809_v52  ;;  %v794_v61 = vadd.f32 %v1271_v57, %v1601_v24  ;;  %v573_v62 = vpop.f32.mrb[7].mxu0  ;;  %v637_v63 = vpop.f32.mrb[7].mxu1 }
 0x106   : > { %1374 = vpow2.f32 %v1207_v48  ;;  %v1194_v0 = vmul.f32 -1.442695, %v791_v55  ;;  %v1210_v1 = vmul.f32 -1.442695, %v807_v56  ;;  %v810_v29 = vadd.f32 %v1287_v58, %v1601_v24 }
 0x107   : > { %1376 = vpow2.f32 %v1196_v59  ;;  %v1197_v2 = vmul.f32 -1.442695, %v794_v61  ;;  %v792_v32 = vadd.f32 %v1601_v24, %v573_v62  ;;  %v808_v36 = vadd.f32 %v1601_v24, %v637_v63 }
 0x108   : > { %1378 = vpow2.f32 %v1212_v60  ;;  %v1213_v46 = vmul.f32 -1.442695, %v810_v29 }
 0x109   : > { %v1361_v3 = vpop.eup %1360  ;;  %1380 = vpow2.f32 %v1194_v0  ;;  %v1195_v52 = vmul.f32 -1.442695, %v792_v32  ;;  %v1211_v56 = vmul.f32 -1.442695, %v808_v36 }
 0x10a   : > { %v1363_v4 = vpop.eup %1362  ;;  %v917_v5 = vadd.f32 1.0, %v1361_v3  ;;  %1382 = vpow2.f32 %v1210_v1  ;;  %v1274_v6 = vpop.f32.mrb[8].mxu0 }
 0x10b   : > { %v1290_v7 = vpop.f32.mrb[8].mxu1  ;;  %v1365_v8 = vpop.eup %1364  ;;  %v933_v9 = vadd.f32 1.0, %v1363_v4  ;;  %1384 = vpow2.f32 %v1197_v2  ;;  %v797_v41 = vadd.f32 %v1274_v6, %v1601_v24 }
 0x10c   : > { %v586_v10 = vpop.f32.mrb[9].mxu0  ;;  %v650_v11 = vpop.f32.mrb[9].mxu1  ;;  %1386 = vrcp.f32 %v917_v5  ;;  %v915_v13 = vadd.f32 1.0, %v1365_v8  ;;  %v813_v47 = vadd.f32 %v1290_v7, %v1601_v24 }
 0x10d   : > { %v1367_v12 = vpop.eup %1366  ;;  %v1275_v14 = vpop.f32.mrb[10].mxu0  ;;  %1388 = vrcp.f32 %v933_v9  ;;  %v795_v53 = vadd.f32 %v1601_v24, %v586_v10  ;;  %v811_v57 = vadd.f32 %v1601_v24, %v650_v11  ;;  %v1200_v59 = vmul.f32 -1.442695, %v797_v41 }
 0x10e   : > { %v1616_v15 = vpop.f32.mrb[10].mxu1  ;;  %v1369_v16 = vpop.eup %1368  ;;  %v931_v17 = vadd.f32 1.0, %v1367_v12  ;;  %1390 = vrcp.f32 %v915_v13  ;;  %v798_v60 = vadd.f32 %v1275_v14, %v1601_v24  ;;  %v1216_v62 = vmul.f32 -1.442695, %v813_v47 }
 0x10f   : > { %v1618_v18 = vpop.f32.mrb[11].mxu0  ;;  %v1371_v19 = vpop.eup %1370  ;;  %v918_v20 = vadd.f32 1.0, %v1369_v16  ;;  %v814_v63 = vadd.f32 %v1616_v15, %v1601_v24  ;;  %v1198_v1 = vmul.f32 -1.442695, %v795_v53  ;;  %v1214_v4 = vmul.f32 -1.442695, %v811_v57 }
 0x110   : > { %v1620_v21 = vpop.f32.mrb[11].mxu1  ;;  %v1373_v22 = vpop.eup %1372  ;;  %1392 = vrcp.f32 %v931_v17  ;;  %v934_v23 = vadd.f32 1.0, %v1371_v19  ;;  %v796_v2 = vadd.f32 %v1601_v24, %v1618_v18  ;;  %v1201_v7 = vmul.f32 -1.442695, %v798_v60 }
 0x111   : > { %v1375_v25 = vpop.eup %1374  ;;  %1394 = vrcp.f32 %v918_v20  ;;  %v916_v26 = vadd.f32 1.0, %v1373_v22  ;;  %v812_v5 = vadd.f32 %v1601_v24, %v1620_v21  ;;  %v1217_v10 = vmul.f32 -1.442695, %v814_v63 }
 0x112   : > { %v1377_v27 = vpop.eup %1376  ;;  %1396 = vrcp.f32 %v934_v23  ;;  %v932_v28 = vadd.f32 1.0, %v1375_v25  ;;  %v1278_v33 = vpop.f32.mrb[12].mxu0  ;;  %v1199_v13 = vmul.f32 -1.442695, %v796_v2 }
 0x113   : > { %v1379_v30 = vpop.eup %1378  ;;  %1398 = vrcp.f32 %v916_v26  ;;  %v921_v31 = vadd.f32 1.0, %v1377_v27  ;;  %v1294_v37 = vpop.f32.mrb[12].mxu1  ;;  %v801_v8 = vadd.f32 %v1278_v33, %v1601_v24  ;;  %v1215_v15 = vmul.f32 -1.442695, %v812_v5 }
 0x114   : > { %v1381_v34 = vpop.eup %1380  ;;  %1400 = vrcp.f32 %v932_v28  ;;  %v937_v35 = vadd.f32 1.0, %v1379_v30  ;;  %v1626_v38 = vpop.f32.mrb[13].mxu0  ;;  %v817_v11 = vadd.f32 %v1294_v37, %v1601_v24 }
 0x115   : > { %v1383_v39 = vpop.eup %1382  ;;  %1402 = vrcp.f32 %v921_v31  ;;  %v919_v40 = vadd.f32 1.0, %v1381_v34  ;;  %v1634_v42 = vpop.f32.mrb[13].mxu1  ;;  %v1204_v17 = vmul.f32 -1.442695, %v801_v8 }
 0x116   : > { %v1636_v43 = vpop.f32.mrb[14].mxu0  ;;  %v1385_v44 = vpop.eup %1384  ;;  %1404 = vrcp.f32 %v937_v35  ;;  %v935_v45 = vadd.f32 1.0, %v1383_v39  ;;  %v1220_v19 = vmul.f32 -1.442695, %v817_v11 }
 0x117   : > { %v1639_v48 = vpop.f32.mrb[14].mxu1  ;;  %v1641_v49 = vpop.f32.mrb[15].mxu0  ;;  %1406 = vrcp.f32 %v919_v40  ;;  %v922_v51 = vadd.f32 1.0, %v1385_v44  ;;  %v799_v40 = vadd.f32 %v1601_v24, %v1626_v38 }
 0x118   : > { %v1387_v50 = vpop.eup %1386  ;;  %v1644_v54 = vpop.f32.mrb[15].mxu1  ;;  %1408 = vrcp.f32 %v935_v45  ;;  %v815_v45 = vadd.f32 %v1601_v24, %v1634_v42  ;;  %v818_v53 = vadd.f32 %v1639_v48, %v1601_v24  ;;  %v800_v42 = vadd.f32 %v1601_v24, %v1641_v49 }
 0x119   : > { %v1389_v55 = vpop.eup %1388  ;;  %1013 = vst [vmem:[%s1631_s18 + $0x10] sm:$0xff] %v1387_v50  ;;  %1410 = vrcp.f32 %v922_v51  ;;  %v802_v50 = vadd.f32 %v1636_v43, %v1601_v24 }
 0x11a   : > { %v1391_v58 = vpop.eup %1390  ;;  %1029 = vst [vmem:[%s1631_s18 + $0x90] sm:$0xff] %v1389_v55  ;;  %1412 = vpow2.f32 %v1213_v46  ;;  %v1218_v43 = vmul.f32 -1.442695, %v815_v45  ;;  %v1203_v63 = vmul.f32 -1.442695, %v800_v42 }
 0x11b   : > { %v1393_v61 = vpop.eup %1392  ;;  %1011 = vst [vmem:[%s1631_s18] sm:$0xff] %v1391_v58  ;;  %1414 = vpow2.f32 %v1195_v52  ;;  %v1205_v48 = vmul.f32 -1.442695, %v802_v50 }
 0x11c   : > { %v1395_v0 = vpop.eup %1394  ;;  %1027 = vst [vmem:[%s1631_s18 + $0x80] sm:$0xff] %v1393_v61  ;;  %1416 = vpow2.f32 %v1211_v56  ;;  %v1202_v56 = vmul.f32 -1.442695, %v799_v40 }
 0x11d   : > { %v1397_v3 = vpop.eup %1396  ;;  %1014 = vst [vmem:[%s1631_s18 + $0x18] sm:$0xff] %v1395_v0  ;;  %1418 = vpow2.f32 %v1200_v59  ;;  %v816_v59 = vadd.f32 %v1601_v24, %v1644_v54 }
 0x11e   : > { %v1399_v6 = vpop.eup %1398  ;;  %1030 = vst [vmem:[%s1631_s18 + $0x98] sm:$0xff] %v1397_v3  ;;  %1420 = vpow2.f32 %v1216_v62  ;;  %v1221_v62 = vmul.f32 -1.442695, %v818_v53 }
 0x11f   : > { %v1401_v9 = vpop.eup %1400  ;;  %1012 = vst [vmem:[%s1631_s18 + $0x8] sm:$0xff] %v1399_v6  ;;  %1422 = vpow2.f32 %v1198_v1  ;;  %v1219_v24 = vmul.f32 -1.442695, %v816_v59 }
 0x120   : > { %v1403_v12 = vpop.eup %1402  ;;  %1028 = vst [vmem:[%s1631_s18 + $0x88] sm:$0xff] %v1401_v9  ;;  %1424 = vpow2.f32 %v1214_v4 }
 0x121   : > { %v1405_v14 = vpop.eup %1404  ;;  %1017 = vst [vmem:[%s1631_s18 + $0x30] sm:$0xff] %v1403_v12  ;;  %1426 = vpow2.f32 %v1201_v7 }
 0x122   : > { %v1407_v16 = vpop.eup %1406  ;;  %1033 = vst [vmem:[%s1631_s18 + $0xb0] sm:$0xff] %v1405_v14  ;;  %1428 = vpow2.f32 %v1217_v10 }
 0x123   : > { %v1409_v18 = vpop.eup %1408  ;;  %1015 = vst [vmem:[%s1631_s18 + $0x20] sm:$0xff] %v1407_v16  ;;  %1430 = vpow2.f32 %v1199_v13 }
 0x124   : > { %v1411_v20 = vpop.eup %1410  ;;  %1031 = vst [vmem:[%s1631_s18 + $0xa0] sm:$0xff] %v1409_v18  ;;  %1432 = vpow2.f32 %v1215_v15 }
 0x125   : > { %v1413_v21 = vpop.eup %1412  ;;  %1018 = vst [vmem:[%s1631_s18 + $0x38] sm:$0xff] %v1411_v20  ;;  %1434 = vpow2.f32 %v1204_v17 }
 0x126   : > { %v1415_v22 = vpop.eup %1414  ;;  %v938_v23 = vadd.f32 1.0, %v1413_v21  ;;  %1436 = vpow2.f32 %v1220_v19 }
 0x127   : > { %v1417_v25 = vpop.eup %1416  ;;  %v920_v26 = vadd.f32 1.0, %v1415_v22 }
 0x128   : > { %v1419_v27 = vpop.eup %1418  ;;  %1438 = vrcp.f32 %v938_v23  ;;  %v936_v28 = vadd.f32 1.0, %v1417_v25 }
 0x129   : > { %v1421_v29 = vpop.eup %1420  ;;  %1440 = vrcp.f32 %v920_v26  ;;  %v925_v30 = vadd.f32 1.0, %v1419_v27 }
 0x12a   : > { %v1423_v31 = vpop.eup %1422  ;;  %1442 = vrcp.f32 %v936_v28  ;;  %v941_v32 = vadd.f32 1.0, %v1421_v29 }
 0x12b   : > { %v1425_v33 = vpop.eup %1424  ;;  %1444 = vrcp.f32 %v925_v30  ;;  %v923_v34 = vadd.f32 1.0, %v1423_v31 }
 0x12c   : > { %v1427_v35 = vpop.eup %1426  ;;  %1446 = vrcp.f32 %v941_v32  ;;  %v939_v36 = vadd.f32 1.0, %v1425_v33 }
 0x12d   : > { %v1429_v37 = vpop.eup %1428  ;;  %1448 = vrcp.f32 %v923_v34  ;;  %v926_v39 = vadd.f32 1.0, %v1427_v35 }
 0x12e   : > { %v1431_v41 = vpop.eup %1430  ;;  %1450 = vrcp.f32 %v939_v36  ;;  %v942_v44 = vadd.f32 1.0, %v1429_v37 }
 0x12f   : > { %v1433_v46 = vpop.eup %1432  ;;  %1452 = vrcp.f32 %v926_v39  ;;  %v924_v47 = vadd.f32 1.0, %v1431_v41 }
 0x130   : > { %v1435_v51 = vpop.eup %1434  ;;  %1454 = vrcp.f32 %v942_v44  ;;  %v940_v52 = vadd.f32 1.0, %v1433_v46 }
 0x131   : > { %v1437_v38 = vpop.eup %1436  ;;  %1456 = vrcp.f32 %v924_v47  ;;  %v929_v55 = vadd.f32 1.0, %v1435_v51 }
 0x132   : > { %v1439_v57 = vpop.eup %1438  ;;  %1458 = vrcp.f32 %v940_v52  ;;  %v945_v58 = vadd.f32 1.0, %v1437_v38 }
 0x133   : > { %v1441_v60 = vpop.eup %1440  ;;  %1034 = vst [vmem:[%s1631_s18 + $0xb8] sm:$0xff] %v1439_v57  ;;  %1460 = vrcp.f32 %v929_v55 }
 0x134   : > { %v1443_v61 = vpop.eup %1442  ;;  %1016 = vst [vmem:[%s1631_s18 + $0x28] sm:$0xff] %v1441_v60  ;;  %1462 = vrcp.f32 %v945_v58 }
 0x135   : > { %v1445_v49 = vpop.eup %1444  ;;  %1032 = vst [vmem:[%s1631_s18 + $0xa8] sm:$0xff] %v1443_v61  ;;  %1464 = vpow2.f32 %v1202_v56 }
 0x136   : > { %v1447_v0 = vpop.eup %1446  ;;  %1021 = vst [vmem:[%s1631_s18 + $0x50] sm:$0xff] %v1445_v49  ;;  %1466 = vpow2.f32 %v1218_v43 }
 0x137   : > { %v1449_v54 = vpop.eup %1448  ;;  %1037 = vst [vmem:[%s1631_s18 + $0xd0] sm:$0xff] %v1447_v0  ;;  %1468 = vpow2.f32 %v1205_v48 }
 0x138   : > { %v1451_v1 = vpop.eup %1450  ;;  %1019 = vst [vmem:[%s1631_s18 + $0x40] sm:$0xff] %v1449_v54  ;;  %1470 = vpow2.f32 %v1221_v62 }
 0x139   : > { %v1453_v2 = vpop.eup %1452  ;;  %1035 = vst [vmem:[%s1631_s18 + $0xc0] sm:$0xff] %v1451_v1  ;;  %1472 = vpow2.f32 %v1203_v63 }
 0x13a   : > { %v1455_v3 = vpop.eup %1454  ;;  %1022 = vst [vmem:[%s1631_s18 + $0x58] sm:$0xff] %v1453_v2  ;;  %1474 = vpow2.f32 %v1219_v24 }
 0x13b   : > { %v1457_v4 = vpop.eup %1456  ;;  %1038 = vst [vmem:[%s1631_s18 + $0xd8] sm:$0xff] %v1455_v3 }
 0x13c   : > { %v1459_v5 = vpop.eup %1458  ;;  %1020 = vst [vmem:[%s1631_s18 + $0x48] sm:$0xff] %v1457_v4 }
 0x13d   : > { %v1461_v6 = vpop.eup %1460  ;;  %1036 = vst [vmem:[%s1631_s18 + $0xc8] sm:$0xff] %v1459_v5 }
 0x13e   : > { %v1463_v7 = vpop.eup %1462  ;;  %1025 = vst [vmem:[%s1631_s18 + $0x70] sm:$0xff] %v1461_v6 }
 0x13f   : > { %v1465_v8 = vpop.eup %1464  ;;  %1041 = vst [vmem:[%s1631_s18 + $0xf0] sm:$0xff] %v1463_v7 }
 0x140   : > { %v1467_v9 = vpop.eup %1466  ;;  %v927_v10 = vadd.f32 1.0, %v1465_v8 }
 0x141   : > { %v1469_v11 = vpop.eup %1468  ;;  %v943_v12 = vadd.f32 1.0, %v1467_v9 }
 0x142   : > { %v1471_v13 = vpop.eup %1470  ;;  %1476 = vrcp.f32 %v927_v10  ;;  %v930_v14 = vadd.f32 1.0, %v1469_v11 }
 0x143   : > { %v1473_v15 = vpop.eup %1472  ;;  %1478 = vrcp.f32 %v943_v12  ;;  %v946_v16 = vadd.f32 1.0, %v1471_v13 }
 0x144   : > { %v1475_v17 = vpop.eup %1474  ;;  %1480 = vrcp.f32 %v930_v14  ;;  %v928_v18 = vadd.f32 1.0, %v1473_v15 }
 0x145   : > { %1482 = vrcp.f32 %v946_v16  ;;  %v944_v19 = vadd.f32 1.0, %v1475_v17 }
 0x146   : > { %1484 = vrcp.f32 %v928_v18 }
 0x147   : > { %1486 = vrcp.f32 %v944_v19 }
 0x14c   : > { %v1477_v20 = vpop.eup %1476 }
 0x14d   : > { %v1479_v21 = vpop.eup %1478  ;;  %1023 = vst [vmem:[%s1631_s18 + $0x60] sm:$0xff] %v1477_v20 }
 0x14e   : > { %v1481_v22 = vpop.eup %1480  ;;  %1039 = vst [vmem:[%s1631_s18 + $0xe0] sm:$0xff] %v1479_v21 }
 0x14f   : > { %v1483_v23 = vpop.eup %1482  ;;  %1026 = vst [vmem:[%s1631_s18 + $0x78] sm:$0xff] %v1481_v22 }
 0x150   : > { %v1485_v25 = vpop.eup %1484  ;;  %1042 = vst [vmem:[%s1631_s18 + $0xf8] sm:$0xff] %v1483_v23 }
 0x151   : > { %v1487_v26 = vpop.eup %1486  ;;  %1024 = vst [vmem:[%s1631_s18 + $0x68] sm:$0xff] %v1485_v25 }
 0x152   : > { %1040 = vst [vmem:[%s1631_s18 + $0xe8] sm:$0xff] %v1487_v26 }
 0x153 PF: > { %s13_s14 = sadd.s32 1, %s1510_s14   ;;  %s1713_s12 = smov %s1506_s13 }
 0x154   : > { %p10_p5 = scmp.ge.s32.totalorder %s13_s14, 4   ;;  %s1714_s13 = smov %s1716_s15 }
 0x156   :  { %12 = sbr.rel (!%p10_p5) target bundleno = 2 (0x2), region = 76 }

</bundles_post_ra>
